<compile_context>
chip_gen: v5e
topology: v5e:2x2
jax: 0.10.0
libtpu: 0.0.40
codegen_flags: <defaults>
</compile_context>

<pallas_src>
import jax
import jax.numpy as jnp
from jax.experimental import pallas as pl
from jax.experimental.pallas import tpu as pltpu

GN_EPS = 1e-5
NUM_GROUPS = 32


def _group_matrices(C, groups=NUM_GROUPS):
    """Factored group membership: (C, G) scatter and (G, C) broadcast 0/1 matrices."""
    ids = jnp.arange(C, dtype=jnp.int32) // (C // groups)
    gids = jnp.arange(groups, dtype=jnp.int32)
    a = (ids[:, None] == gids[None, :]).astype(jnp.float32)   # (C, G)
    b = (gids[:, None] == ids[None, :]).astype(jnp.float32)   # (G, C)
    return a, b


def _group_norm(y, gamma_ref, beta_ref, a_ref, b_ref, nb, p,
                out_dtype=jnp.float32, groups=NUM_GROUPS):
    """GroupNorm over a flattened (nb*p, C) f32 tile with per-sample statistics.

    Stats (sums / mean / var / rsqrt) stay in f32; the folded scale/shift apply
    can optionally be done in bf16 (for outputs that feed a bf16 matmul).
    """
    C = y.shape[-1]
    cg = C // groups
    y3 = y.reshape(nb, p, C)
    s = jnp.sum(y3, axis=1)            # (nb, C) per-sample per-channel sums (f32)
    s2 = jnp.sum(y3 * y3, axis=1)      # (nb, C) per-sample per-channel sum of squares
    if cg > 1:
        a = a_ref[...]                 # (C, G) scatter
        b = b_ref[...]                 # (G, C) broadcast
        gs = jnp.dot(jnp.dot(s, a, preferred_element_type=jnp.float32), b,
                     preferred_element_type=jnp.float32)
        gs2 = jnp.dot(jnp.dot(s2, a, preferred_element_type=jnp.float32), b,
                      preferred_element_type=jnp.float32)
    else:                              # one channel per group: per-channel stats
        gs, gs2 = s, s2
    n = jnp.float32(cg * p)
    mean = gs / n
    var = jnp.maximum(gs2 / n - mean * mean, 0.0)   # clamp: E[x^2]-E[x]^2 can round < 0
    inv = jax.lax.rsqrt(var + GN_EPS)
    scale = inv * gamma_ref[...]                    # (nb, C) folded affine
    shift = beta_ref[...] - mean * scale            # (nb, C)
    if out_dtype == jnp.bfloat16:
        y3 = y3.astype(jnp.bfloat16)
        scale = scale.astype(jnp.bfloat16)
        shift = shift.astype(jnp.bfloat16)
    out = y3 * scale[:, None, :] + shift[:, None, :]
    return out.reshape(nb * p, C)


def residual_unit_kernel(x_ref, w1_ref, w2c_ref, w3_ref, wp_ref,
                         g1_ref, b1_ref, g2_ref, b2_ref,
                         g3_ref, b3_ref, gp_ref, bp_ref,
                         af_ref, bf_ref, a4_ref, b4_ref,
                         o_ref, col_ref):
    nb, H, W, Cin = x_ref.shape
    F = w1_ref.shape[1]
    C4 = w3_ref.shape[1]
    P = H * W
    F3 = 3 * F

    x = x_ref[...].reshape(nb * P, Cin)                  # bf16 MXU operand

    # --- projection shortcut first: conv_proj (1x1) -> gn_proj, staged in o_ref ---
    r = jnp.dot(x, wp_ref[...], preferred_element_type=jnp.float32)
    r = _group_norm(r, gp_ref, bp_ref, a4_ref, b4_ref, nb, P)
    o_ref[...] = r.reshape(nb, H, W, C4).astype(o_ref.dtype)

    # --- conv1 (1x1) -> gn1 -> relu (kept f32: feeds the sublane rolls) ---
    y = jnp.dot(x, w1_ref[...], preferred_element_type=jnp.float32)
    y = _group_norm(y, g1_ref, b1_ref, af_ref, bf_ref, nb, P)
    y = jnp.maximum(y, 0.0).reshape(nb, H, W, F)

    # --- conv2 (3x3, stride 1, pad 1) as one deep-K (9F) matmul ---
    # W-shifted taps via XLU roll + boundary mask (no sublane-crossing slices);
    # dh taps are aligned H-slices into the bf16 column buffer.
    w_idx = jax.lax.broadcasted_iota(jnp.int32, (nb, H, W, F), 2)
    left = jnp.where(w_idx == 0, 0.0, pltpu.roll(y, shift=1, axis=2))          # tap w-1
    right = jnp.where(w_idx == W - 1, 0.0, pltpu.roll(y, shift=W - 1, axis=2))  # tap w+1
    trip = jnp.concatenate([left, y, right], axis=-1).astype(jnp.bfloat16)     # (nb,H,W,3F)

    zrow = jnp.zeros((nb, 1, W, F3), jnp.bfloat16)
    col_ref[:, :, :, F3:2 * F3] = trip                 # dh = 1 (same row)
    col_ref[:, 0:1, :, 0:F3] = zrow                    # dh = 0 top border (rewritten every step)
    col_ref[:, 1:, :, 0:F3] = trip[:, :H - 1]          # dh = 0 (row above)
    col_ref[:, H - 1:H, :, 2 * F3:] = zrow             # dh = 2 bottom border
    col_ref[:, :H - 1, :, 2 * F3:] = trip[:, 1:]       # dh = 2 (row below)
    # TODO(synk): on v7x benchmark a per-dh 3-dot (K=3F) MRB-accumulated variant
    # against this single K=9F matmul (saves the 9x im2col expansion in VMEM).

    y = jnp.dot(col_ref[...].reshape(nb * P, 9 * F), w2c_ref[...],
                preferred_element_type=jnp.float32)
    # gn2 output feeds a bf16 matmul: apply scale/shift + relu in bf16 (stats stay f32)
    y = _group_norm(y, g2_ref, b2_ref, af_ref, bf_ref, nb, P, out_dtype=jnp.bfloat16)
    y = jnp.maximum(y, 0.0)

    # --- conv3 (1x1) -> gn3 (f32) ---
    y = jnp.dot(y, w3_ref[...], preferred_element_type=jnp.float32)
    y = _group_norm(y, g3_ref, b3_ref, a4_ref, b4_ref, nb, P)

    # --- residual add + relu in f32, cast on the final store (bf16 output) ---
    res = o_ref[...].astype(jnp.float32).reshape(nb * P, C4)
    o_ref[...] = jnp.maximum(y + res, 0.0).reshape(nb, H, W, C4).astype(o_ref.dtype)


def _vmem_limit_bytes():
    try:
        cap = int(pltpu.get_tpu_info().vmem_capacity_bytes)
    except Exception:
        cap = 64 * 1024 * 1024          # conservative fallback (fits every generation)
    return int(cap * 0.85)              # v7x: ~54 MiB of 64; v5e/v6e: ~108 MiB of 128


def _vmem_estimate(nb, P, Cin, F, C4):
    """Rough per-step VMEM footprint (bytes) used to bound nb."""
    rows = nb * P
    est = 2 * rows * Cin * 2                    # input block, double buffered (bf16)
    est += 2 * rows * C4 * 2                    # output block, double buffered (bf16)
    est += rows * 9 * F * 2                     # im2col scratch (bf16)
    est += rows * (5 * F + 2 * C4) * 4          # f32 intermediates / spill headroom
    est += 2 * 2 * (Cin * F + 9 * F * F + F * C4 + Cin * C4)   # bf16 weights (x2 buffers)
    return est


def residual_unit_forward(x_nchw, params, nb=None, out_dtype=jnp.bfloat16):
    """NCHW in / NCHW out; kernel runs in NHWC. strides=(1,1), projection shortcut."""
    # TODO(synk): strides=(2,2) variant and the identity (no-projection) shortcut
    # are not wired in.
    # TODO(synk): for best lane utilization F should be a multiple of 128 (small F
    # like 32 falls back to masked lane stores in the column buffer).
    N, Cin, H, W = x_nchw.shape
    w1, w2c, w3, wp, g1, b1, g2, b2, g3, b3, gp, bp = params
    F = w1.shape[1]
    C4 = w3.shape[1]
    P = H * W

    vmem_limit = _vmem_limit_bytes()

    if nb is None:
        # target ~256 MXU rows per step (v6e/v7x 256x256 MXUs; harmless on v5e)
        nb = max(1, min(N, 256 // max(1, P)))
        # keep >=2 grid steps when that still leaves >=128 rows per dot, so the
        # parallel grid axis can be split across v7x's two TensorCores
        if N >= 2 and -(-N // nb) < 2 and max(1, nb // 2) * P >= 128:
            nb = max(1, nb // 2)
        while nb > 1 and _vmem_estimate(nb, P, Cin, F, C4) > 0.6 * vmem_limit:
            nb -= 1
        # TODO(synk): when N*P is tiny (grid == 1) an H-strip parallel axis (with
        # cross-strip GN partial-sum accumulation) would be needed to occupy both
        # v7x TensorCores.

    steps = -(-N // nb)                  # cdiv: pad the batch instead of shrinking nb
    Npad = steps * nb

    x = jnp.transpose(x_nchw, (0, 2, 3, 1)).astype(jnp.bfloat16)   # NHWC, bf16 operands
    if Npad != N:
        x = jnp.pad(x, ((0, Npad - N), (0, 0), (0, 0), (0, 0)))

    w1b, w2b, w3b, wpb = (w.astype(jnp.bfloat16) for w in (w1, w2c, w3, wp))
    af, bfm = _group_matrices(F)
    a4, b4 = _group_matrices(C4)

    def _full(shape):
        return pl.BlockSpec(shape, lambda n, _nd=len(shape): (0,) * _nd)

    out = pl.pallas_call(
        residual_unit_kernel,
        out_shape=jax.ShapeDtypeStruct((Npad, H, W, C4), out_dtype),
        grid=(steps,),
        in_specs=[
            pl.BlockSpec((nb, H, W, Cin), lambda n: (n, 0, 0, 0)),
            _full((Cin, F)),                      # conv1 weight (Cin, F)       bf16
            _full((9 * F, F)),                    # conv2 weight, im2col (9F,F) bf16
            _full((F, C4)),                       # conv3 weight (F, 4F)        bf16
            _full((Cin, C4)),                     # conv_proj weight (Cin, 4F)  bf16
            _full((1, F)), _full((1, F)),         # gn1 gamma/beta (f32)
            _full((1, F)), _full((1, F)),         # gn2 gamma/beta (f32)
            _full((1, C4)), _full((1, C4)),       # gn3 gamma/beta (f32)
            _full((1, C4)), _full((1, C4)),       # gn_proj gamma/beta (f32)
            _full((F, NUM_GROUPS)), _full((NUM_GROUPS, F)),     # GN scatter/broadcast (F)
            _full((C4, NUM_GROUPS)), _full((NUM_GROUPS, C4)),   # GN scatter/broadcast (4F)
        ],
        out_specs=pl.BlockSpec((nb, H, W, C4), lambda n: (n, 0, 0, 0)),
        scratch_shapes=[
            pltpu.VMEM((nb, H, W, 9 * F), jnp.bfloat16),        # im2col column buffer
        ],
        compiler_params=pltpu.CompilerParams(
            dimension_semantics=("parallel",),
            vmem_limit_bytes=vmem_limit),
    )(x, w1b, w2b, w3b, wpb, g1, b1, g2, b2, g3, b3, gp, bp, af, bfm, a4, b4)
    out = out[:N]
    return jnp.transpose(out, (0, 3, 1, 2))      # back to NCHW


# ---------------- parameter init (deterministic, replicates StdConv init) ----------------
def _weight_standardize(w, axis, eps=1e-5):
    mean = jnp.mean(w, axis=axis, keepdims=True)
    std = jnp.std(w, axis=axis, keepdims=True, ddof=1)   # torch.std is unbiased
    return (w - mean) / (std + eps)


def make_params(key, in_channels, features):
    C4 = features * 4
    ks = jax.random.split(key, 12)

    def std_conv_weight(k, out_c, in_c, kh, kw):
        w = jax.random.normal(k, (out_c, in_c, kh, kw), jnp.float32) * 0.1
        # exactly mirrors StdConv.reset_parameters: axis=[0,1,2] on (O,I,kH,kW)
        return _weight_standardize(w, axis=(0, 1, 2))

    w1_t = std_conv_weight(ks[0], features, in_channels, 1, 1)   # (F, Cin, 1, 1)
    w2_t = std_conv_weight(ks[1], features, features, 3, 3)      # (F, F, 3, 3)
    w3_t = std_conv_weight(ks[2], C4, features, 1, 1)            # (4F, F, 1, 1)
    wp_t = std_conv_weight(ks[3], C4, in_channels, 1, 1)         # (4F, Cin, 1, 1)

    # kernel layouts (channels-last matmul forms, f32 master copies)
    w1 = jnp.transpose(w1_t[:, :, 0, 0], (1, 0))                               # (Cin, F)
    w2c = jnp.transpose(w2_t, (2, 3, 1, 0)).reshape(9 * features, features)    # (9F, F), tap-major
    w3 = jnp.transpose(w3_t[:, :, 0, 0], (1, 0))                               # (F, 4F)
    wp = jnp.transpose(wp_t[:, :, 0, 0], (1, 0))                               # (Cin, 4F)

    def gn_params(kg, kb, c):
        g = 1.0 + 0.1 * jax.random.normal(kg, (1, c), jnp.float32)
        b = 0.1 * jax.random.normal(kb, (1, c), jnp.float32)
        return g, b

    g1, b1 = gn_params(ks[4], ks[5], features)
    g2, b2 = gn_params(ks[6], ks[7], features)
    g3, b3 = gn_params(ks[8], ks[9], C4)
    gp, bp = gn_params(ks[10], ks[11], C4)
    return (w1, w2c, w3, wp, g1, b1, g2, b2, g3, b3, gp, bp)


# ---------------- pure-JAX f32 reference for validation ----------------
def reference_forward(x_nchw, params):
    w1, w2c, w3, wp, g1, b1, g2, b2, g3, b3, gp, bp = params
    F = w1.shape[1]
    x = jnp.transpose(x_nchw, (0, 2, 3, 1))
    w2 = w2c.reshape(3, 3, F, F)            # back to HWIO

    def gn(y, gamma, beta, groups):
        N, H, W, C = y.shape
        cg = C // groups
        yr = y.reshape(N, H, W, groups, cg)
        mean = jnp.mean(yr, axis=(1, 2, 4), keepdims=True)
        var = jnp.var(yr, axis=(1, 2, 4), keepdims=True)
        yn = ((yr - mean) / jnp.sqrt(var + GN_EPS)).reshape(N, H, W, C)
        return yn * gamma.reshape(1, 1, 1, C) + beta.reshape(1, 1, 1, C)

    def conv1x1(y, w):
        return jnp.einsum('nhwc,cd->nhwd', y, w)

    def conv3x3(y, w):
        return jax.lax.conv_general_dilated(
            y, w, (1, 1), ((1, 1), (1, 1)),
            dimension_numbers=('NHWC', 'HWIO', 'NHWC'))

    r = gn(conv1x1(x, wp), gp, bp, NUM_GROUPS)
    y = jax.nn.relu(gn(conv1x1(x, w1), g1, b1, NUM_GROUPS))
    y = jax.nn.relu(gn(conv3x3(y, w2), g2, b2, NUM_GROUPS))
    y = gn(conv1x1(y, w3), g3, b3, NUM_GROUPS)
    out = jax.nn.relu(y + r)
    return jnp.transpose(out, (0, 3, 1, 2))


if __name__ == "__main__":
    key = jax.random.PRNGKey(0)
    kx, kp = jax.random.split(key)

    # GroupNorm(32, C) requires channel counts that are multiples of 32.
    # N=4 exercises the multi-step grid path (2 steps of nb=2).
    N, Cin, H, W = 4, 64, 8, 8
    features = 32          # -> output channels = 4*features = 128 (needs_projection=True)

    x = jax.random.normal(kx, (N, Cin, H, W), jnp.float32)
    params = make_params(kp, Cin, features)

    out = residual_unit_forward(x, params)
    out = jax.block_until_ready(out)
    assert out.shape == (N, 4 * features, H, W), out.shape

    # bf16 MXU operands, a bf16-staged residual and a bf16 output vs. an all-f32
    # reference -> loose tolerance; structural bugs (wrong conv tap, wrong GN
    # grouping, missing residual) would exceed this by orders of magnitude.
    ref = reference_forward(x, params)
    out_f = out.astype(jnp.float32)
    max_err = float(jnp.max(jnp.abs(out_f - ref)))
    assert jnp.allclose(out_f, ref, rtol=1e-1, atol=1e-1), max_err

    print("KERNEL_OK")
</pallas_src>

<mosaic_0001>
module attributes {stable_mosaic.version = 11 : i64} {
  func.func @residual_unit_kernel(%arg0: i32, %arg1: memref<2x8x8x64xbf16, #tpu.memory_space<vmem>>, %arg2: memref<64x32xbf16, #tpu.memory_space<vmem>>, %arg3: memref<288x32xbf16, #tpu.memory_space<vmem>>, %arg4: memref<32x128xbf16, #tpu.memory_space<vmem>>, %arg5: memref<64x128xbf16, #tpu.memory_space<vmem>>, %arg6: memref<1x32xf32, #tpu.memory_space<vmem>>, %arg7: memref<1x32xf32, #tpu.memory_space<vmem>>, %arg8: memref<1x32xf32, #tpu.memory_space<vmem>>, %arg9: memref<1x32xf32, #tpu.memory_space<vmem>>, %arg10: memref<1x128xf32, #tpu.memory_space<vmem>>, %arg11: memref<1x128xf32, #tpu.memory_space<vmem>>, %arg12: memref<1x128xf32, #tpu.memory_space<vmem>>, %arg13: memref<1x128xf32, #tpu.memory_space<vmem>>, %arg14: memref<32x32xf32, #tpu.memory_space<vmem>>, %arg15: memref<32x32xf32, #tpu.memory_space<vmem>>, %arg16: memref<128x32xf32, #tpu.memory_space<vmem>>, %arg17: memref<32x128xf32, #tpu.memory_space<vmem>>, %arg18: memref<2x8x8x128xbf16, #tpu.memory_space<vmem>>, %arg19: memref<2x8x8x288xbf16, #tpu.memory_space<vmem>>) attributes {dimension_semantics = [#tpu.dimension_semantics<parallel>], iteration_bounds = array<i64: 2>, scalar_prefetch = 0 : i64, scratch_operands = 1 : i64, tpu.core_type = #tpu.core_type<tc>, window_params = [{transform_indices = @transform_0, window_bounds = array<i64: 2, 8, 8, 64>}, {pipeline_mode = #tpu.pipeline_mode<synchronous>, transform_indices = @transform_1, window_bounds = array<i64: 64, 32>}, {pipeline_mode = #tpu.pipeline_mode<synchronous>, transform_indices = @transform_2, window_bounds = array<i64: 288, 32>}, {pipeline_mode = #tpu.pipeline_mode<synchronous>, transform_indices = @transform_3, window_bounds = array<i64: 32, 128>}, {pipeline_mode = #tpu.pipeline_mode<synchronous>, transform_indices = @transform_4, window_bounds = array<i64: 64, 128>}, {pipeline_mode = #tpu.pipeline_mode<synchronous>, transform_indices = @transform_5, window_bounds = array<i64: 1, 32>}, {pipeline_mode = #tpu.pipeline_mode<synchronous>, transform_indices = @transform_6, window_bounds = array<i64: 1, 32>}, {pipeline_mode = #tpu.pipeline_mode<synchronous>, transform_indices = @transform_7, window_bounds = array<i64: 1, 32>}, {pipeline_mode = #tpu.pipeline_mode<synchronous>, transform_indices = @transform_8, window_bounds = array<i64: 1, 32>}, {pipeline_mode = #tpu.pipeline_mode<synchronous>, transform_indices = @transform_9, window_bounds = array<i64: 1, 128>}, {pipeline_mode = #tpu.pipeline_mode<synchronous>, transform_indices = @transform_10, window_bounds = array<i64: 1, 128>}, {pipeline_mode = #tpu.pipeline_mode<synchronous>, transform_indices = @transform_11, window_bounds = array<i64: 1, 128>}, {pipeline_mode = #tpu.pipeline_mode<synchronous>, transform_indices = @transform_12, window_bounds = array<i64: 1, 128>}, {pipeline_mode = #tpu.pipeline_mode<synchronous>, transform_indices = @transform_13, window_bounds = array<i64: 32, 32>}, {pipeline_mode = #tpu.pipeline_mode<synchronous>, transform_indices = @transform_14, window_bounds = array<i64: 32, 32>}, {pipeline_mode = #tpu.pipeline_mode<synchronous>, transform_indices = @transform_15, window_bounds = array<i64: 128, 32>}, {pipeline_mode = #tpu.pipeline_mode<synchronous>, transform_indices = @transform_16, window_bounds = array<i64: 32, 128>}, {transform_indices = @transform_17, window_bounds = array<i64: 2, 8, 8, 128>}]} {
    %c0 = arith.constant 0 : index
    %c0_0 = arith.constant 0 : index
    %c0_1 = arith.constant 0 : index
    %c0_2 = arith.constant 0 : index
    %0 = vector.load %arg1[%c0, %c0_0, %c0_1, %c0_2] : memref<2x8x8x64xbf16, #tpu.memory_space<vmem>>, vector<2x8x8x64xbf16>
    %1 = vector.shape_cast %0 : vector<2x8x8x64xbf16> to vector<128x64xbf16>
    %c0_3 = arith.constant 0 : index
    %c0_4 = arith.constant 0 : index
    %2 = vector.load %arg5[%c0_3, %c0_4] : memref<64x128xbf16, #tpu.memory_space<vmem>>, vector<64x128xbf16>
    %cst = arith.constant dense<0.000000e+00> : vector<128x128xf32>
    %3 = tpu.matmul %1, %2, %cst {dimension_numbers = #tpu.dot_dimension_numbers<[1], [0], [0], [1], [0, 0, 1, 1], [], []>} : vector<128x64xbf16>, vector<64x128xbf16>, vector<128x128xf32> -> vector<128x128xf32>
    %4 = vector.shape_cast %3 : vector<128x128xf32> to vector<2x64x128xf32>
    %cst_5 = arith.constant dense<0.000000e+00> : vector<2x128xf32>
    %5 = vector.multi_reduction <add>, %4, %cst_5 [1] : vector<2x64x128xf32> to vector<2x128xf32>
    %6 = arith.mulf %4, %4 : vector<2x64x128xf32>
    %cst_6 = arith.constant dense<0.000000e+00> : vector<2x128xf32>
    %7 = vector.multi_reduction <add>, %6, %cst_6 [1] : vector<2x64x128xf32> to vector<2x128xf32>
    %c0_7 = arith.constant 0 : index
    %c0_8 = arith.constant 0 : index
    %8 = vector.load %arg16[%c0_7, %c0_8] : memref<128x32xf32, #tpu.memory_space<vmem>>, vector<128x32xf32>
    %c0_9 = arith.constant 0 : index
    %c0_10 = arith.constant 0 : index
    %9 = vector.load %arg17[%c0_9, %c0_10] : memref<32x128xf32, #tpu.memory_space<vmem>>, vector<32x128xf32>
    %cst_11 = arith.constant dense<0.000000e+00> : vector<2x32xf32>
    %10 = tpu.matmul %5, %8, %cst_11 {dimension_numbers = #tpu.dot_dimension_numbers<[1], [0], [0], [1], [0, 0, 1, 1], [], []>} : vector<2x128xf32>, vector<128x32xf32>, vector<2x32xf32> -> vector<2x32xf32>
    %cst_12 = arith.constant dense<0.000000e+00> : vector<2x128xf32>
    %11 = tpu.matmul %10, %9, %cst_12 {dimension_numbers = #tpu.dot_dimension_numbers<[1], [0], [0], [1], [0, 0, 1, 1], [], []>} : vector<2x32xf32>, vector<32x128xf32>, vector<2x128xf32> -> vector<2x128xf32>
    %cst_13 = arith.constant dense<0.000000e+00> : vector<2x32xf32>
    %12 = tpu.matmul %7, %8, %cst_13 {dimension_numbers = #tpu.dot_dimension_numbers<[1], [0], [0], [1], [0, 0, 1, 1], [], []>} : vector<2x128xf32>, vector<128x32xf32>, vector<2x32xf32> -> vector<2x32xf32>
    %cst_14 = arith.constant dense<0.000000e+00> : vector<2x128xf32>
    %13 = tpu.matmul %12, %9, %cst_14 {dimension_numbers = #tpu.dot_dimension_numbers<[1], [0], [0], [1], [0, 0, 1, 1], [], []>} : vector<2x32xf32>, vector<32x128xf32>, vector<2x128xf32> -> vector<2x128xf32>
    %cst_15 = arith.constant 2.560000e+02 : f32
    %14 = vector.broadcast %cst_15 : f32 to vector<2x128xf32>
    %15 = arith.divf %11, %14 : vector<2x128xf32>
    %cst_16 = arith.constant 2.560000e+02 : f32
    %16 = vector.broadcast %cst_16 : f32 to vector<2x128xf32>
    %17 = arith.divf %13, %16 : vector<2x128xf32>
    %18 = arith.mulf %15, %15 : vector<2x128xf32>
    %19 = arith.subf %17, %18 : vector<2x128xf32>
    %cst_17 = arith.constant 0.000000e+00 : f32
    %20 = vector.broadcast %cst_17 : f32 to vector<2x128xf32>
    %21 = arith.maximumf %19, %20 : vector<2x128xf32>
    %cst_18 = arith.constant 9.99999974E-6 : f32
    %22 = vector.broadcast %cst_18 : f32 to vector<2x128xf32>
    %23 = arith.addf %21, %22 : vector<2x128xf32>
    %24 = math.rsqrt %23 : vector<2x128xf32>
    %c0_19 = arith.constant 0 : index
    %c0_20 = arith.constant 0 : index
    %25 = vector.load %arg12[%c0_19, %c0_20] : memref<1x128xf32, #tpu.memory_space<vmem>>, vector<1x128xf32>
    %26 = vector.broadcast %25 : vector<1x128xf32> to vector<2x128xf32>
    %27 = arith.mulf %24, %26 : vector<2x128xf32>
    %c0_21 = arith.constant 0 : index
    %c0_22 = arith.constant 0 : index
    %28 = vector.load %arg13[%c0_21, %c0_22] : memref<1x128xf32, #tpu.memory_space<vmem>>, vector<1x128xf32>
    %29 = arith.mulf %15, %27 : vector<2x128xf32>
    %30 = vector.broadcast %28 : vector<1x128xf32> to vector<2x128xf32>
    %31 = arith.subf %30, %29 : vector<2x128xf32>
    %32 = vector.shape_cast %27 : vector<2x128xf32> to vector<2x1x128xf32>
    %33 = vector.broadcast %32 : vector<2x1x128xf32> to vector<2x64x128xf32>
    %34 = arith.mulf %4, %33 : vector<2x64x128xf32>
    %35 = vector.shape_cast %31 : vector<2x128xf32> to vector<2x1x128xf32>
    %36 = vector.broadcast %35 : vector<2x1x128xf32> to vector<2x64x128xf32>
    %37 = arith.addf %34, %36 : vector<2x64x128xf32>
    %38 = vector.shape_cast %37 : vector<2x64x128xf32> to vector<128x128xf32>
    %39 = vector.shape_cast %38 : vector<128x128xf32> to vector<2x8x8x128xf32>
    %40 = arith.truncf %39 : vector<2x8x8x128xf32> to vector<2x8x8x128xbf16>
    %c0_23 = arith.constant 0 : index
    %c0_24 = arith.constant 0 : index
    %c0_25 = arith.constant 0 : index
    %c0_26 = arith.constant 0 : index
    %41 = vector.load %arg18[%c0_23, %c0_24, %c0_25, %c0_26] : memref<2x8x8x128xbf16, #tpu.memory_space<vmem>>, vector<2x8x8x128xbf16>
    tpu.vector_store %arg18[%c0_23, %c0_24, %c0_25, %c0_26], %40 {strides = array<i32>} : memref<2x8x8x128xbf16, #tpu.memory_space<vmem>>, vector<2x8x8x128xbf16>,
    %c0_27 = arith.constant 0 : index
    %c0_28 = arith.constant 0 : index
    %42 = vector.load %arg2[%c0_27, %c0_28] : memref<64x32xbf16, #tpu.memory_space<vmem>>, vector<64x32xbf16>
    %cst_29 = arith.constant dense<0.000000e+00> : vector<128x32xf32>
    %43 = tpu.matmul %1, %42, %cst_29 {dimension_numbers = #tpu.dot_dimension_numbers<[1], [0], [0], [1], [0, 0, 1, 1], [], []>} : vector<128x64xbf16>, vector<64x32xbf16>, vector<128x32xf32> -> vector<128x32xf32>
    %44 = vector.shape_cast %43 : vector<128x32xf32> to vector<2x64x32xf32>
    %cst_30 = arith.constant dense<0.000000e+00> : vector<2x32xf32>
    %45 = vector.multi_reduction <add>, %44, %cst_30 [1] : vector<2x64x32xf32> to vector<2x32xf32>
    %46 = arith.mulf %44, %44 : vector<2x64x32xf32>
    %cst_31 = arith.constant dense<0.000000e+00> : vector<2x32xf32>
    %47 = vector.multi_reduction <add>, %46, %cst_31 [1] : vector<2x64x32xf32> to vector<2x32xf32>
    %cst_32 = arith.constant 6.400000e+01 : f32
    %48 = vector.broadcast %cst_32 : f32 to vector<2x32xf32>
    %49 = arith.divf %45, %48 : vector<2x32xf32>
    %cst_33 = arith.constant 6.400000e+01 : f32
    %50 = vector.broadcast %cst_33 : f32 to vector<2x32xf32>
    %51 = arith.divf %47, %50 : vector<2x32xf32>
    %52 = arith.mulf %49, %49 : vector<2x32xf32>
    %53 = arith.subf %51, %52 : vector<2x32xf32>
    %cst_34 = arith.constant 0.000000e+00 : f32
    %54 = vector.broadcast %cst_34 : f32 to vector<2x32xf32>
    %55 = arith.maximumf %53, %54 : vector<2x32xf32>
    %cst_35 = arith.constant 9.99999974E-6 : f32
    %56 = vector.broadcast %cst_35 : f32 to vector<2x32xf32>
    %57 = arith.addf %55, %56 : vector<2x32xf32>
    %58 = math.rsqrt %57 : vector<2x32xf32>
    %c0_36 = arith.constant 0 : index
    %c0_37 = arith.constant 0 : index
    %59 = vector.load %arg6[%c0_36, %c0_37] : memref<1x32xf32, #tpu.memory_space<vmem>>, vector<1x32xf32>
    %60 = vector.broadcast %59 : vector<1x32xf32> to vector<2x32xf32>
    %61 = arith.mulf %58, %60 : vector<2x32xf32>
    %c0_38 = arith.constant 0 : index
    %c0_39 = arith.constant 0 : index
    %62 = vector.load %arg7[%c0_38, %c0_39] : memref<1x32xf32, #tpu.memory_space<vmem>>, vector<1x32xf32>
    %63 = arith.mulf %49, %61 : vector<2x32xf32>
    %64 = vector.broadcast %62 : vector<1x32xf32> to vector<2x32xf32>
    %65 = arith.subf %64, %63 : vector<2x32xf32>
    %66 = vector.shape_cast %61 : vector<2x32xf32> to vector<2x1x32xf32>
    %67 = vector.broadcast %66 : vector<2x1x32xf32> to vector<2x64x32xf32>
    %68 = arith.mulf %44, %67 : vector<2x64x32xf32>
    %69 = vector.shape_cast %65 : vector<2x32xf32> to vector<2x1x32xf32>
    %70 = vector.broadcast %69 : vector<2x1x32xf32> to vector<2x64x32xf32>
    %71 = arith.addf %68, %70 : vector<2x64x32xf32>
    %72 = vector.shape_cast %71 : vector<2x64x32xf32> to vector<128x32xf32>
    %cst_40 = arith.constant 0.000000e+00 : f32
    %73 = vector.broadcast %cst_40 : f32 to vector<128x32xf32>
    %74 = arith.maximumf %72, %73 : vector<128x32xf32>
    %75 = vector.shape_cast %74 : vector<128x32xf32> to vector<2x8x8x32xf32>
    %76 = tpu.iota {dimensions = array<i32: 2>} : vector<2x8x8x32xi32>
    %c0_i32 = arith.constant 0 : i32
    %77 = vector.broadcast %c0_i32 : i32 to vector<2x8x8x32xi32>
    %78 = arith.cmpi eq, %76, %77 : vector<2x8x8x32xi32>
    %c1_i32 = arith.constant 1 : i32
    %79 = tpu.dynamic_rotate %75 by %c1_i32 dim 2 : vector<2x8x8x32xf32>, i32 -> vector<2x8x8x32xf32>
    %cst_41 = arith.constant 0.000000e+00 : f32
    %80 = vector.broadcast %cst_41 : f32 to vector<2x8x8x32xf32>
    %81 = arith.select %78, %80, %79 : vector<2x8x8x32xi1>, vector<2x8x8x32xf32>
    %c7_i32 = arith.constant 7 : i32
    %82 = vector.broadcast %c7_i32 : i32 to vector<2x8x8x32xi32>
    %83 = arith.cmpi eq, %76, %82 : vector<2x8x8x32xi32>
    %c7_i32_42 = arith.constant 7 : i32
    %84 = tpu.dynamic_rotate %75 by %c7_i32_42 dim 2 : vector<2x8x8x32xf32>, i32 -> vector<2x8x8x32xf32>
    %cst_43 = arith.constant 0.000000e+00 : f32
    %85 = vector.broadcast %cst_43 : f32 to vector<2x8x8x32xf32>
    %86 = arith.select %83, %85, %84 : vector<2x8x8x32xi1>, vector<2x8x8x32xf32>
    %87 = tpu.concatenate %81, %75, %86 in 3 : vector<2x8x8x32xf32>, vector<2x8x8x32xf32>, vector<2x8x8x32xf32> -> vector<2x8x8x96xf32>
    %88 = arith.truncf %87 : vector<2x8x8x96xf32> to vector<2x8x8x96xbf16>
    %cst_44 = arith.constant 0.000000e+00 : bf16
    %89 = vector.broadcast %cst_44 : bf16 to vector<2x1x8x96xbf16>
    %c0_45 = arith.constant 0 : index
    %c0_46 = arith.constant 0 : index
    %c0_47 = arith.constant 0 : index
    %c96 = arith.constant 96 : index
    %90 = vector.load %arg19[%c0_45, %c0_46, %c0_47, %c96] : memref<2x8x8x288xbf16, #tpu.memory_space<vmem>>, vector<2x8x8x96xbf16>
    tpu.vector_store %arg19[%c0_45, %c0_46, %c0_47, %c96], %88 {strides = array<i32>} : memref<2x8x8x288xbf16, #tpu.memory_space<vmem>>, vector<2x8x8x96xbf16>,
    %c0_48 = arith.constant 0 : index
    %c0_49 = arith.constant 0 : index
    %c0_50 = arith.constant 0 : index
    %c0_51 = arith.constant 0 : index
    %91 = vector.load %arg19[%c0_48, %c0_49, %c0_50, %c0_51] : memref<2x8x8x288xbf16, #tpu.memory_space<vmem>>, vector<2x1x8x96xbf16>
    tpu.vector_store %arg19[%c0_48, %c0_49, %c0_50, %c0_51], %89 {strides = array<i32>} : memref<2x8x8x288xbf16, #tpu.memory_space<vmem>>, vector<2x1x8x96xbf16>,
    %92 = vector.extract_strided_slice %88 {offsets = [0, 0, 0, 0], sizes = [2, 7, 8, 96], strides = [1, 1, 1, 1]} : vector<2x8x8x96xbf16> to vector<2x7x8x96xbf16>
    %c0_52 = arith.constant 0 : index
    %c1 = arith.constant 1 : index
    %c0_53 = arith.constant 0 : index
    %c0_54 = arith.constant 0 : index
    %93 = vector.load %arg19[%c0_52, %c1, %c0_53, %c0_54] : memref<2x8x8x288xbf16, #tpu.memory_space<vmem>>, vector<2x7x8x96xbf16>
    tpu.vector_store %arg19[%c0_52, %c1, %c0_53, %c0_54], %92 {strides = array<i32>} : memref<2x8x8x288xbf16, #tpu.memory_space<vmem>>, vector<2x7x8x96xbf16>,
    %c0_55 = arith.constant 0 : index
    %c7 = arith.constant 7 : index
    %c0_56 = arith.constant 0 : index
    %c192 = arith.constant 192 : index
    %94 = vector.load %arg19[%c0_55, %c7, %c0_56, %c192] : memref<2x8x8x288xbf16, #tpu.memory_space<vmem>>, vector<2x1x8x96xbf16>
    tpu.vector_store %arg19[%c0_55, %c7, %c0_56, %c192], %89 {strides = array<i32>} : memref<2x8x8x288xbf16, #tpu.memory_space<vmem>>, vector<2x1x8x96xbf16>,
    %95 = vector.extract_strided_slice %88 {offsets = [0, 1, 0, 0], sizes = [2, 7, 8, 96], strides = [1, 1, 1, 1]} : vector<2x8x8x96xbf16> to vector<2x7x8x96xbf16>
    %c0_57 = arith.constant 0 : index
    %c0_58 = arith.constant 0 : index
    %c0_59 = arith.constant 0 : index
    %c192_60 = arith.constant 192 : index
    %96 = vector.load %arg19[%c0_57, %c0_58, %c0_59, %c192_60] : memref<2x8x8x288xbf16, #tpu.memory_space<vmem>>, vector<2x7x8x96xbf16>
    tpu.vector_store %arg19[%c0_57, %c0_58, %c0_59, %c192_60], %95 {strides = array<i32>} : memref<2x8x8x288xbf16, #tpu.memory_space<vmem>>, vector<2x7x8x96xbf16>,
    %c0_61 = arith.constant 0 : index
    %c0_62 = arith.constant 0 : index
    %c0_63 = arith.constant 0 : index
    %c0_64 = arith.constant 0 : index
    %97 = vector.load %arg19[%c0_61, %c0_62, %c0_63, %c0_64] : memref<2x8x8x288xbf16, #tpu.memory_space<vmem>>, vector<2x8x8x288xbf16>
    %98 = vector.shape_cast %97 : vector<2x8x8x288xbf16> to vector<128x288xbf16>
    %c0_65 = arith.constant 0 : index
    %c0_66 = arith.constant 0 : index
    %99 = vector.load %arg3[%c0_65, %c0_66] : memref<288x32xbf16, #tpu.memory_space<vmem>>, vector<288x32xbf16>
    %cst_67 = arith.constant dense<0.000000e+00> : vector<128x32xf32>
    %100 = tpu.matmul %98, %99, %cst_67 {dimension_numbers = #tpu.dot_dimension_numbers<[1], [0], [0], [1], [0, 0, 1, 1], [], []>} : vector<128x288xbf16>, vector<288x32xbf16>, vector<128x32xf32> -> vector<128x32xf32>
    %101 = vector.shape_cast %100 : vector<128x32xf32> to vector<2x64x32xf32>
    %cst_68 = arith.constant dense<0.000000e+00> : vector<2x32xf32>
    %102 = vector.multi_reduction <add>, %101, %cst_68 [1] : vector<2x64x32xf32> to vector<2x32xf32>
    %103 = arith.mulf %101, %101 : vector<2x64x32xf32>
    %cst_69 = arith.constant dense<0.000000e+00> : vector<2x32xf32>
    %104 = vector.multi_reduction <add>, %103, %cst_69 [1] : vector<2x64x32xf32> to vector<2x32xf32>
    %cst_70 = arith.constant 6.400000e+01 : f32
    %105 = vector.broadcast %cst_70 : f32 to vector<2x32xf32>
    %106 = arith.divf %102, %105 : vector<2x32xf32>
    %cst_71 = arith.constant 6.400000e+01 : f32
    %107 = vector.broadcast %cst_71 : f32 to vector<2x32xf32>
    %108 = arith.divf %104, %107 : vector<2x32xf32>
    %109 = arith.mulf %106, %106 : vector<2x32xf32>
    %110 = arith.subf %108, %109 : vector<2x32xf32>
    %cst_72 = arith.constant 0.000000e+00 : f32
    %111 = vector.broadcast %cst_72 : f32 to vector<2x32xf32>
    %112 = arith.maximumf %110, %111 : vector<2x32xf32>
    %cst_73 = arith.constant 9.99999974E-6 : f32
    %113 = vector.broadcast %cst_73 : f32 to vector<2x32xf32>
    %114 = arith.addf %112, %113 : vector<2x32xf32>
    %115 = math.rsqrt %114 : vector<2x32xf32>
    %c0_74 = arith.constant 0 : index
    %c0_75 = arith.constant 0 : index
    %116 = vector.load %arg8[%c0_74, %c0_75] : memref<1x32xf32, #tpu.memory_space<vmem>>, vector<1x32xf32>
    %117 = vector.broadcast %116 : vector<1x32xf32> to vector<2x32xf32>
    %118 = arith.mulf %115, %117 : vector<2x32xf32>
    %c0_76 = arith.constant 0 : index
    %c0_77 = arith.constant 0 : index
    %119 = vector.load %arg9[%c0_76, %c0_77] : memref<1x32xf32, #tpu.memory_space<vmem>>, vector<1x32xf32>
    %120 = arith.mulf %106, %118 : vector<2x32xf32>
    %121 = vector.broadcast %119 : vector<1x32xf32> to vector<2x32xf32>
    %122 = arith.subf %121, %120 : vector<2x32xf32>
    %123 = arith.truncf %101 : vector<2x64x32xf32> to vector<2x64x32xbf16>
    %124 = arith.truncf %118 : vector<2x32xf32> to vector<2x32xbf16>
    %125 = arith.truncf %122 : vector<2x32xf32> to vector<2x32xbf16>
    %126 = vector.shape_cast %124 : vector<2x32xbf16> to vector<2x1x32xbf16>
    %127 = vector.broadcast %126 : vector<2x1x32xbf16> to vector<2x64x32xbf16>
    %128 = arith.mulf %123, %127 : vector<2x64x32xbf16>
    %129 = vector.shape_cast %125 : vector<2x32xbf16> to vector<2x1x32xbf16>
    %130 = vector.broadcast %129 : vector<2x1x32xbf16> to vector<2x64x32xbf16>
    %131 = arith.addf %128, %130 : vector<2x64x32xbf16>
    %132 = vector.shape_cast %131 : vector<2x64x32xbf16> to vector<128x32xbf16>
    %cst_78 = arith.constant 0.000000e+00 : bf16
    %133 = vector.broadcast %cst_78 : bf16 to vector<128x32xbf16>
    %134 = arith.maximumf %132, %133 : vector<128x32xbf16>
    %c0_79 = arith.constant 0 : index
    %c0_80 = arith.constant 0 : index
    %135 = vector.load %arg4[%c0_79, %c0_80] : memref<32x128xbf16, #tpu.memory_space<vmem>>, vector<32x128xbf16>
    %cst_81 = arith.constant dense<0.000000e+00> : vector<128x128xf32>
    %136 = tpu.matmul %134, %135, %cst_81 {dimension_numbers = #tpu.dot_dimension_numbers<[1], [0], [0], [1], [0, 0, 1, 1], [], []>} : vector<128x32xbf16>, vector<32x128xbf16>, vector<128x128xf32> -> vector<128x128xf32>
    %137 = vector.shape_cast %136 : vector<128x128xf32> to vector<2x64x128xf32>
    %cst_82 = arith.constant dense<0.000000e+00> : vector<2x128xf32>
    %138 = vector.multi_reduction <add>, %137, %cst_82 [1] : vector<2x64x128xf32> to vector<2x128xf32>
    %139 = arith.mulf %137, %137 : vector<2x64x128xf32>
    %cst_83 = arith.constant dense<0.000000e+00> : vector<2x128xf32>
    %140 = vector.multi_reduction <add>, %139, %cst_83 [1] : vector<2x64x128xf32> to vector<2x128xf32>
    %c0_84 = arith.constant 0 : index
    %c0_85 = arith.constant 0 : index
    %141 = vector.load %arg16[%c0_84, %c0_85] : memref<128x32xf32, #tpu.memory_space<vmem>>, vector<128x32xf32>
    %c0_86 = arith.constant 0 : index
    %c0_87 = arith.constant 0 : index
    %142 = vector.load %arg17[%c0_86, %c0_87] : memref<32x128xf32, #tpu.memory_space<vmem>>, vector<32x128xf32>
    %cst_88 = arith.constant dense<0.000000e+00> : vector<2x32xf32>
    %143 = tpu.matmul %138, %141, %cst_88 {dimension_numbers = #tpu.dot_dimension_numbers<[1], [0], [0], [1], [0, 0, 1, 1], [], []>} : vector<2x128xf32>, vector<128x32xf32>, vector<2x32xf32> -> vector<2x32xf32>
    %cst_89 = arith.constant dense<0.000000e+00> : vector<2x128xf32>
    %144 = tpu.matmul %143, %142, %cst_89 {dimension_numbers = #tpu.dot_dimension_numbers<[1], [0], [0], [1], [0, 0, 1, 1], [], []>} : vector<2x32xf32>, vector<32x128xf32>, vector<2x128xf32> -> vector<2x128xf32>
    %cst_90 = arith.constant dense<0.000000e+00> : vector<2x32xf32>
    %145 = tpu.matmul %140, %141, %cst_90 {dimension_numbers = #tpu.dot_dimension_numbers<[1], [0], [0], [1], [0, 0, 1, 1], [], []>} : vector<2x128xf32>, vector<128x32xf32>, vector<2x32xf32> -> vector<2x32xf32>
    %cst_91 = arith.constant dense<0.000000e+00> : vector<2x128xf32>
    %146 = tpu.matmul %145, %142, %cst_91 {dimension_numbers = #tpu.dot_dimension_numbers<[1], [0], [0], [1], [0, 0, 1, 1], [], []>} : vector<2x32xf32>, vector<32x128xf32>, vector<2x128xf32> -> vector<2x128xf32>
    %cst_92 = arith.constant 2.560000e+02 : f32
    %147 = vector.broadcast %cst_92 : f32 to vector<2x128xf32>
    %148 = arith.divf %144, %147 : vector<2x128xf32>
    %cst_93 = arith.constant 2.560000e+02 : f32
    %149 = vector.broadcast %cst_93 : f32 to vector<2x128xf32>
    %150 = arith.divf %146, %149 : vector<2x128xf32>
    %151 = arith.mulf %148, %148 : vector<2x128xf32>
    %152 = arith.subf %150, %151 : vector<2x128xf32>
    %cst_94 = arith.constant 0.000000e+00 : f32
    %153 = vector.broadcast %cst_94 : f32 to vector<2x128xf32>
    %154 = arith.maximumf %152, %153 : vector<2x128xf32>
    %cst_95 = arith.constant 9.99999974E-6 : f32
    %155 = vector.broadcast %cst_95 : f32 to vector<2x128xf32>
    %156 = arith.addf %154, %155 : vector<2x128xf32>
    %157 = math.rsqrt %156 : vector<2x128xf32>
    %c0_96 = arith.constant 0 : index
    %c0_97 = arith.constant 0 : index
    %158 = vector.load %arg10[%c0_96, %c0_97] : memref<1x128xf32, #tpu.memory_space<vmem>>, vector<1x128xf32>
    %159 = vector.broadcast %158 : vector<1x128xf32> to vector<2x128xf32>
    %160 = arith.mulf %157, %159 : vector<2x128xf32>
    %c0_98 = arith.constant 0 : index
    %c0_99 = arith.constant 0 : index
    %161 = vector.load %arg11[%c0_98, %c0_99] : memref<1x128xf32, #tpu.memory_space<vmem>>, vector<1x128xf32>
    %162 = arith.mulf %148, %160 : vector<2x128xf32>
    %163 = vector.broadcast %161 : vector<1x128xf32> to vector<2x128xf32>
    %164 = arith.subf %163, %162 : vector<2x128xf32>
    %165 = vector.shape_cast %160 : vector<2x128xf32> to vector<2x1x128xf32>
    %166 = vector.broadcast %165 : vector<2x1x128xf32> to vector<2x64x128xf32>
    %167 = arith.mulf %137, %166 : vector<2x64x128xf32>
    %168 = vector.shape_cast %164 : vector<2x128xf32> to vector<2x1x128xf32>
    %169 = vector.broadcast %168 : vector<2x1x128xf32> to vector<2x64x128xf32>
    %170 = arith.addf %167, %169 : vector<2x64x128xf32>
    %171 = vector.shape_cast %170 : vector<2x64x128xf32> to vector<128x128xf32>
    %c0_100 = arith.constant 0 : index
    %c0_101 = arith.constant 0 : index
    %c0_102 = arith.constant 0 : index
    %c0_103 = arith.constant 0 : index
    %172 = vector.load %arg18[%c0_100, %c0_101, %c0_102, %c0_103] : memref<2x8x8x128xbf16, #tpu.memory_space<vmem>>, vector<2x8x8x128xbf16>
    %173 = arith.extf %172 : vector<2x8x8x128xbf16> to vector<2x8x8x128xf32>
    %174 = vector.shape_cast %173 : vector<2x8x8x128xf32> to vector<128x128xf32>
    %175 = arith.addf %171, %174 : vector<128x128xf32>
    %cst_104 = arith.constant 0.000000e+00 : f32
    %176 = vector.broadcast %cst_104 : f32 to vector<128x128xf32>
    %177 = arith.maximumf %175, %176 : vector<128x128xf32>
    %178 = vector.shape_cast %177 : vector<128x128xf32> to vector<2x8x8x128xf32>
    %179 = arith.truncf %178 : vector<2x8x8x128xf32> to vector<2x8x8x128xbf16>
    %c0_105 = arith.constant 0 : index
    %c0_106 = arith.constant 0 : index
    %c0_107 = arith.constant 0 : index
    %c0_108 = arith.constant 0 : index
    %180 = vector.load %arg18[%c0_105, %c0_106, %c0_107, %c0_108] : memref<2x8x8x128xbf16, #tpu.memory_space<vmem>>, vector<2x8x8x128xbf16>
    tpu.vector_store %arg18[%c0_105, %c0_106, %c0_107, %c0_108], %179 {strides = array<i32>} : memref<2x8x8x128xbf16, #tpu.memory_space<vmem>>, vector<2x8x8x128xbf16>,
    return
  }
  func.func @transform_0(%arg0: i32) -> (i32, i32, i32, i32) {
    %c0_i32 = arith.constant 0 : i32
    %c0_i32_0 = arith.constant 0 : i32
    %c0_i32_1 = arith.constant 0 : i32
    %c0_i32_2 = arith.constant 0 : i32
    return %arg0, %c0_i32, %c0_i32_0, %c0_i32_1 : i32, i32, i32, i32
  }
  func.func @transform_1(%arg0: i32) -> (i32, i32) {
    %c0_i32 = arith.constant 0 : i32
    %c0_i32_0 = arith.constant 0 : i32
    %c0_i32_1 = arith.constant 0 : i32
    return %c0_i32, %c0_i32_0 : i32, i32
  }
  func.func @transform_2(%arg0: i32) -> (i32, i32) {
    %c0_i32 = arith.constant 0 : i32
    %c0_i32_0 = arith.constant 0 : i32
    %c0_i32_1 = arith.constant 0 : i32
    return %c0_i32, %c0_i32_0 : i32, i32
  }
  func.func @transform_3(%arg0: i32) -> (i32, i32) {
    %c0_i32 = arith.constant 0 : i32
    %c0_i32_0 = arith.constant 0 : i32
    %c0_i32_1 = arith.constant 0 : i32
    return %c0_i32, %c0_i32_0 : i32, i32
  }
  func.func @transform_4(%arg0: i32) -> (i32, i32) {
    %c0_i32 = arith.constant 0 : i32
    %c0_i32_0 = arith.constant 0 : i32
    %c0_i32_1 = arith.constant 0 : i32
    return %c0_i32, %c0_i32_0 : i32, i32
  }
  func.func @transform_5(%arg0: i32) -> (i32, i32) {
    %c0_i32 = arith.constant 0 : i32
    %c0_i32_0 = arith.constant 0 : i32
    %c0_i32_1 = arith.constant 0 : i32
    return %c0_i32, %c0_i32_0 : i32, i32
  }
  func.func @transform_6(%arg0: i32) -> (i32, i32) {
    %c0_i32 = arith.constant 0 : i32
    %c0_i32_0 = arith.constant 0 : i32
    %c0_i32_1 = arith.constant 0 : i32
    return %c0_i32, %c0_i32_0 : i32, i32
  }
  func.func @transform_7(%arg0: i32) -> (i32, i32) {
    %c0_i32 = arith.constant 0 : i32
    %c0_i32_0 = arith.constant 0 : i32
    %c0_i32_1 = arith.constant 0 : i32
    return %c0_i32, %c0_i32_0 : i32, i32
  }
  func.func @transform_8(%arg0: i32) -> (i32, i32) {
    %c0_i32 = arith.constant 0 : i32
    %c0_i32_0 = arith.constant 0 : i32
    %c0_i32_1 = arith.constant 0 : i32
    return %c0_i32, %c0_i32_0 : i32, i32
  }
  func.func @transform_9(%arg0: i32) -> (i32, i32) {
    %c0_i32 = arith.constant 0 : i32
    %c0_i32_0 = arith.constant 0 : i32
    %c0_i32_1 = arith.constant 0 : i32
    return %c0_i32, %c0_i32_0 : i32, i32
  }
  func.func @transform_10(%arg0: i32) -> (i32, i32) {
    %c0_i32 = arith.constant 0 : i32
    %c0_i32_0 = arith.constant 0 : i32
    %c0_i32_1 = arith.constant 0 : i32
    return %c0_i32, %c0_i32_0 : i32, i32
  }
  func.func @transform_11(%arg0: i32) -> (i32, i32) {
    %c0_i32 = arith.constant 0 : i32
    %c0_i32_0 = arith.constant 0 : i32
    %c0_i32_1 = arith.constant 0 : i32
    return %c0_i32, %c0_i32_0 : i32, i32
  }
  func.func @transform_12(%arg0: i32) -> (i32, i32) {
    %c0_i32 = arith.constant 0 : i32
    %c0_i32_0 = arith.constant 0 : i32
    %c0_i32_1 = arith.constant 0 : i32
    return %c0_i32, %c0_i32_0 : i32, i32
  }
  func.func @transform_13(%arg0: i32) -> (i32, i32) {
    %c0_i32 = arith.constant 0 : i32
    %c0_i32_0 = arith.constant 0 : i32
    %c0_i32_1 = arith.constant 0 : i32
    return %c0_i32, %c0_i32_0 : i32, i32
  }
  func.func @transform_14(%arg0: i32) -> (i32, i32) {
    %c0_i32 = arith.constant 0 : i32
    %c0_i32_0 = arith.constant 0 : i32
    %c0_i32_1 = arith.constant 0 : i32
    return %c0_i32, %c0_i32_0 : i32, i32
  }
  func.func @transform_15(%arg0: i32) -> (i32, i32) {
    %c0_i32 = arith.constant 0 : i32
    %c0_i32_0 = arith.constant 0 : i32
    %c0_i32_1 = arith.constant 0 : i32
    return %c0_i32, %c0_i32_0 : i32, i32
  }
  func.func @transform_16(%arg0: i32) -> (i32, i32) {
    %c0_i32 = arith.constant 0 : i32
    %c0_i32_0 = arith.constant 0 : i32
    %c0_i32_1 = arith.constant 0 : i32
    return %c0_i32, %c0_i32_0 : i32, i32
  }
  func.func @transform_17(%arg0: i32) -> (i32, i32, i32, i32) {
    %c0_i32 = arith.constant 0 : i32
    %c0_i32_0 = arith.constant 0 : i32
    %c0_i32_1 = arith.constant 0 : i32
    %c0_i32_2 = arith.constant 0 : i32
    return %arg0, %c0_i32, %c0_i32_0, %c0_i32_1 : i32, i32, i32, i32
  }
}

</mosaic_0001>

<bundles_post_ra>
// kernel: tpu_custom_call.1
= control target key start
LH: loop header
LB: loop body
LE: loop exit
PB: predicated region body
PF: predicated region fallthrough
CT: control target
= control target key end

     0   :  { %s5335_s0 = inlined_call_operand.vmem [shape: bf16[4,8,8,64], index: 0, kind: input, shape index: {}]   ;;  %s5336_s1 = inlined_call_operand.vmem [shape: bf16[64,32], index: 1, kind: input, shape index: {}]   ;;  %s5337_s2 = inlined_call_operand.vmem [shape: bf16[288,32], index: 2, kind: input, shape index: {}]   ;;  %s5338_s3 = inlined_call_operand.vmem [shape: bf16[32,128], index: 3, kind: input, shape index: {}]   ;;  %s5339_s4 = inlined_call_operand.vmem [shape: bf16[64,128], index: 4, kind: input, shape index: {}]   ;;  %s5340_s5 = inlined_call_operand.vmem [shape: f32[1,32], index: 5, kind: input, shape index: {}]   ;;  %s5341_s6 = inlined_call_operand.vmem [shape: f32[1,32], index: 6, kind: input, shape index: {}]   ;;  %s5342_s7 = inlined_call_operand.vmem [shape: f32[1,32], index: 7, kind: input, shape index: {}]   ;;  %s5343_s8 = inlined_call_operand.vmem [shape: f32[1,32], index: 8, kind: input, shape index: {}]   ;;  %s5344_s9 = inlined_call_operand.vmem [shape: f32[1,128], index: 9, kind: input, shape index: {}]   ;;  %s5345_s10 = inlined_call_operand.vmem [shape: f32[1,128], index: 10, kind: input, shape index: {}]   ;;  %s5346_s11 = inlined_call_operand.vmem [shape: f32[1,128], index: 11, kind: input, shape index: {}]   ;;  %s5347_s12 = inlined_call_operand.vmem [shape: f32[1,128], index: 12, kind: input, shape index: {}]   ;;  %s5348_s13 = inlined_call_operand.vmem [shape: f32[32,32], index: 13, kind: input, shape index: {}]   ;;  %s5349_s14 = inlined_call_operand.vmem [shape: f32[32,32], index: 14, kind: input, shape index: {}]   ;;  %s5350_s15 = inlined_call_operand.vmem [shape: f32[128,32], index: 15, kind: input, shape index: {}]   ;;  %s5351_s16 = inlined_call_operand.vmem [shape: f32[32,128], index: 16, kind: input, shape index: {}]   ;;  %s5352_s17 = inlined_call_operand.hbm [shape: bf16[4,8,8,128], index: 17, kind: output, shape index: {}]  }
   0x1   :  { %5362 = sst [smem:[#allocation10_spill]] %s5335_s0 }
   0x2   :  { %5363 = sst [smem:[#allocation11_spill]] %s5336_s1 }
   0x3   :  { %5364 = sst [smem:[#allocation12_spill]] %s5337_s2 }
   0x4   :  { %22 = vsyncpa [#allocation4], 0 }
   0x5   :  { %24 = vsyncpa [#allocation4 + $0x1], 0  ;;  %s3889_s24 = smov 0   ;;  %s3891_s25 = smov 0  }
   0x6   :  { %s3893_s26 = smov 0   ;;  %s3895_s13 = smov 0  }
   0x7 LB: > { %5365 = sst [smem:[#allocation6_spill]] %s3786_s26  ;;  %s3910_s14 = sadd.s32 4294967295, %s3790_s13   ;;  %s3790_s13 = sphi %s3895_s13, %s5387_s13   ;;  %s3786_s26 = sphi %s3893_s26, %s5392_s26   ;;  %s3782_s25 = sphi %s3891_s25, %s5391_s25   ;;  %s3778_s24 = sphi %s3889_s24, %s5390_s24  }
   0x8   : > { %s3095_s27 = sadd.s32 4294967294, %s3790_s13   ;;  %s3914_s28 = sadd.s32 1, %s3790_s13  }
   0x9   : > { %5366 = sst [smem:[#allocation7_spill]] %s3914_s28  ;;  %s399_s29 = sadd.s32 1, %s3786_s26 }
   0xa   : > { %s396_s0 = ssub.s32 %s3790_s13, %s3914_s28  ;;  %p409_p0 = scmp.ne.s32.totalorder %s3786_s26, %s3782_s25 }
   0xb   : > { %p397_p1 = scmp.eq.s32.totalorder %s396_s0, 0  ;;  %p410_p2 = scmp.eq.s32.totalorder %s3910_s14, 1 }
   0xc   : > { %p415_p3 = scmp.ne.s32.totalorder %s3782_s25, %s3778_s24  ;;  %p416_p4 = scmp.eq.s32.totalorder %s3095_s27, 1 }
   0xd   : > { %s3925_s30 = scalar_select %p397_p1, %s3786_s26, %s399_s29  }
   0xe   : > { %p3927_p5 = por %p410_p2, %p409_p0  ;;  %p3931_p6 = por %p416_p4, %p415_p3 }
   0xf   : > { %5367 = sst [smem:[#allocation8_spill]] %s3925_s30  ;;  %p3098_p7 = scmp.ge.s32.totalorder %s3790_s13, 1 }
  0x10   : > { %s5369_s19 = scalar_select %p3931_p6, 1, 0 }
  0x11   : > { %p492_p8 = scmp.lt.s32.totalorder %s3790_s13, 3 }
  0x12   : > { %5370 = sst [smem:[#allocation9_spill]] %s5369_s19 }
  0x13   : > { %p493_p9 = pnand %p3098_p7, %p492_p8 }
  0x14   : > { %s3100_s21 = sshll.u32 (!%p493_p9), %s3910_s14, 1  ;;  %s5371_s28 = sld [smem:[#allocation10_spill]] (!%p493_p9) }
  0x15   : > { %496 = sbr.rel (%p493_p9) target bundleno = 2080 (0x820), region = 88  ;;  %p546_p10 = scmp.lt.s32.totalorder (!%p493_p9), %s3100_s21, 3 }
  0x16   : > { %s5372_s23 = sld [smem:[#allocation11_spill]] (!%p493_p9)  ;;  %s5358_s22 = smov (!%p493_p9), 32  }
  0x17   : > { %s5361_s27 = smov (!%p493_p9), 64   ;;  %s5359_s29 = smov (!%p493_p9), 96  }
  0x18   : > { %s5378_s2 = sld [smem:[#allocation12_spill]] (!%p493_p9) }
  0x1a   : > { %v3398_v0 = vld [vmem:[%s5339_s4 + $0x18] sm:$0xff]  ;;  %v3397_v1 = vld [vmem:[%s5339_s4 + $0x10] sm:$0xff]  ;;  %s5394_s21 = smov (!%p546_p10, %s3100_s21), 3  ;;  %v3396_v2 = vld [vmem:[%s5339_s4 + $0x8] sm:$0xff]  ;;  %vm642_vm0 = vcmask 523264   ;;  %vm806_vm1 = vcmask 1041409  }
  0x1b   : > { %671 = vmatpush.bf16.msra.mxu0 %v3398_v0  ;;  %s3386_s0 = sshll.u32 %s5394_s21, 5  ;;  %v3395_v3 = vld [vmem:[%s5339_s4] sm:$0xff]  ;;  %v799_v22 = vld [vmem:[%s5350_s15 + $0x78] sm:$0xff]  ;;  %v798_v23 = vld [vmem:[%s5350_s15 + $0x70] sm:$0xff]  ;;  %vm829_vm2 = vcmask 261120   ;;  %vm1645_vm12 = vcmask 1044224  }
  0x1c   : > { %s550_s19 = scalar_lea.vmem %s5371_s28, %s3386_s0  ;;  %809 = vmatpush.msra.mxu1 %v799_v22  ;;  %857 = vmatpush.msra.mxu3 %v799_v22  ;;  %v797_v24 = vld [vmem:[%s5350_s15 + $0x68] sm:$0xff]  ;;  %v796_v25 = vld [vmem:[%s5350_s15 + $0x60] sm:$0xff]  ;;  %v795_v27 = vld [vmem:[%s5350_s15 + $0x58] sm:$0xff]  ;;  %vm1646_vm13 = vcmask 523268   ;;  %vm1612_vm14 = vcmask 785408   ;;  %s5384_s21 = smov 32  }
  0x1d   : > { %v3953_v4 = vld [vmem:[%s550_s19] sm:$0xff]  ;;  %v3957_v5 = vld [vmem:[%s550_s19 + $0x8] sm:$0xff]  ;;  %v3961_v6 = vld [vmem:[%s550_s19 + $0x10] sm:$0xff]  ;;  %s542_s28 = sand.u32 1, %s3782_s25  }
  0x1e   : > { %v3965_v7 = vld [vmem:[%s550_s19 + $0x18] sm:$0xff]  ;;  %v3969_v8 = vld [vmem:[%s550_s19 + $0x20] sm:$0xff]  ;;  %v3973_v9 = vld [vmem:[%s550_s19 + $0x28] sm:$0xff]  ;;  %810 = vmatpush.msra.mxu1 %v798_v23  ;;  %858 = vmatpush.msra.mxu3 %v798_v23  ;;  %s3099_s30 = sshll.u32 %s542_s28, 6  ;;  %s3017_s20 = scalar_lea.sflag [#allocation4], %s542_s28 }
  0x1f   : > { %672 = vmatpush.bf16.msra.mxu0 %v3397_v1  ;;  %v3977_v10 = vld [vmem:[%s550_s19 + $0x30] sm:$0xff]  ;;  %v3981_v11 = vld [vmem:[%s550_s19 + $0x38] sm:$0xff]  ;;  %v793_v29 = vld [vmem:[%s5350_s15 + $0x48] sm:$0xff]  ;;  %s5383_s19 = smov 96   ;;  %s544_s0 = scalar_lea.vmem [#allocation3], %s3099_s30 }
  0x20   : > { %811 = vmatpush.msra.mxu1 %v797_v24  ;;  %859 = vmatpush.msra.mxu3 %v797_v24  ;;  %v794_v28 = vld [vmem:[%s5350_s15 + $0x50] sm:$0xff]  ;;  %v792_v30 = vld [vmem:[%s5350_s15 + $0x40] sm:$0xff]  ;;  %v791_v32 = vld [vmem:[%s5350_s15 + $0x38] sm:$0xff] }
  0x21   : > { %v790_v33 = vld [vmem:[%s5350_s15 + $0x30] sm:$0xff]  ;;  %v789_v34 = vld [vmem:[%s5350_s15 + $0x28] sm:$0xff]  ;;  %v788_v36 = vld [vmem:[%s5350_s15 + $0x20] sm:$0xff] }
  0x22   : > { %812 = vmatpush.msra.mxu1 %v796_v25  ;;  %860 = vmatpush.msra.mxu3 %v796_v25  ;;  %v787_v37 = vld [vmem:[%s5350_s15 + $0x18] sm:$0xff]  ;;  %v786_v41 = vld [vmem:[%s5350_s15 + $0x10] sm:$0xff]  ;;  %v785_v45 = vld [vmem:[%s5350_s15 + $0x8] sm:$0xff] }
  0x23   : > { %673 = vmatpush.bf16.msra.mxu0 %v3396_v2  ;;  %v784_v49 = vld [vmem:[%s5350_s15] sm:$0xff]  ;;  %v803_v59 = vld [vmem:[%s5351_s16 + $0x18] sm:$0xff]  ;;  %v802_v60 = vld [vmem:[%s5351_s16 + $0x10] sm:$0xff] }
  0x24   : > { %813 = vmatpush.msra.mxu1 %v795_v27  ;;  %861 = vmatpush.msra.mxu3 %v795_v27  ;;  %v801_v1 = vld [vmem:[%s5351_s16 + $0x8] sm:$0xff]  ;;  %v800_v24 = vld [vmem:[%s5351_s16] sm:$0xff]  ;;  %vm4640_vm15 = vmor %vm1646_vm13, %vm1645_vm12  ;;  %vm2469_vm12 = vcmask 1040384  }
  0x25   : > { %845 = vmatpush.msra.mxu2 %v803_v59 }
  0x26   : > { %814 = vmatpush.msra.mxu1 %v794_v28  ;;  %862 = vmatpush.msra.mxu3 %v794_v28 }
  0x27   : > { %674 = vmatpush.bf16.msra.mxu0 %v3395_v3  ;;  %846 = vmatpush.msra.mxu2 %v802_v60 }
  0x28   : > { %815 = vmatpush.msra.mxu1 %v793_v29  ;;  %863 = vmatpush.msra.mxu3 %v793_v29 }
  0x29   : > { %847 = vmatpush.msra.mxu2 %v801_v1 }
  0x2a   : > { %3151 = vmatmul.msk.bf16.vlgmr.msra.gmra.mxu0 %vm642_vm0, %v3953_v4  ;;  %816 = vmatpush.msra.mxu1 %v792_v30 }
  0x2b   : > { %864 = vmatpush.msra.mxu3 %v792_v30  ;;  %848 = vmatpush.msra.mxu2 %v800_v24 }
  0x2c   : > { %817 = vmatpush.msra.mxu1 %v791_v32 }
  0x2d   : > { %865 = vmatpush.msra.mxu3 %v791_v32  ;;  %892 = vmatpush.msrb.mxu2 %v803_v59 }
  0x2e   : > { %818 = vmatpush.msra.mxu1 %v790_v33 }
  0x2f   : > { %866 = vmatpush.msra.mxu3 %v790_v33  ;;  %893 = vmatpush.msrb.mxu2 %v802_v60 }
  0x30   : > { %819 = vmatpush.msra.mxu1 %v789_v34 }
  0x31   : > { %867 = vmatpush.msra.mxu3 %v789_v34  ;;  %894 = vmatpush.msrb.mxu2 %v801_v1 }
  0x32   : > { %820 = vmatpush.msra.mxu1 %v788_v36 }
  0x33   : > { %868 = vmatpush.msra.mxu3 %v788_v36  ;;  %895 = vmatpush.msrb.mxu2 %v800_v24 }
  0x34   : > { %821 = vmatpush.msra.mxu1 %v787_v37 }
  0x35   : > { %869 = vmatpush.msra.mxu3 %v787_v37 }
  0x36   : > { %822 = vmatpush.msra.mxu1 %v786_v41 }
  0x37   : > { %870 = vmatpush.msra.mxu3 %v786_v41 }
  0x38   : > { %823 = vmatpush.msra.mxu1 %v785_v45 }
  0x39   : > { %871 = vmatpush.msra.mxu3 %v785_v45 }
  0x3a   : > { %3152 = vmatmul.msk.bf16.gmra.mxu0 %vm642_vm0, %v3957_v5  ;;  %824 = vmatpush.msra.mxu1 %v784_v49 }
  0x3b   : > { %872 = vmatpush.msra.mxu3 %v784_v49 }
  0x4a   : > { %3153 = vmatmul.msk.bf16.gmra.mxu0 %vm642_vm0, %v3961_v6 }
  0x5a   : > { %3154 = vmatmul.msk.bf16.gmra.mxu0 %vm642_vm0, %v3965_v7 }
  0x6a   : > { %3155 = vmatmul.msk.bf16.gmra.mxu0 %vm642_vm0, %v3969_v8 }
  0x7a   : > { %3156 = vmatmul.msk.bf16.gmra.mxu0 %vm642_vm0, %v3973_v9 }
  0x8a   : > { %3157 = vmatmul.msk.bf16.gmra.mxu0 %vm642_vm0, %v3977_v10 }
  0x9a   : > { %3158 = vmatmul.msk.bf16.gmra.mxu0 %vm642_vm0, %v3981_v11 }
  0xa7   : > { %v3985_v12 = vpop.f32.mrf.mxu0 }
  0xa8   : > { %v742_v38 = vmul.f32 %v3985_v12, %v3985_v12 }
  0xaf   : > { %v3987_v13 = vpop.f32.mrf.mxu0 }
  0xb0   : > { %v743_v35 = vmul.f32 %v3987_v13, %v3987_v13  ;;  %v716_v42 = vadd.f32 %v3987_v13, %v3985_v12 }
  0xb2   : > { %v758_v43 = vadd.f32 %v743_v35, %v742_v38 }
  0xb7   : > { %v3989_v14 = vpop.f32.mrf.mxu0 }
  0xb8   : > { %v744_v39 = vmul.f32 %v3989_v14, %v3989_v14  ;;  %v717_v46 = vadd.f32 %v716_v42, %v3989_v14 }
  0xba   : > { %v759_v47 = vadd.f32 %v758_v43, %v744_v39 }
  0xbf   : > { %v3991_v15 = vpop.f32.mrf.mxu0 }
  0xc0   : > { %v745_v44 = vmul.f32 %v3991_v15, %v3991_v15  ;;  %v718_v50 = vadd.f32 %v717_v46, %v3991_v15 }
  0xc2   : > { %v760_v51 = vadd.f32 %v759_v47, %v745_v44 }
  0xc7   : > { %v3993_v16 = vpop.f32.mrf.mxu0 }
  0xc8   : > { %v746_v48 = vmul.f32 %v3993_v16, %v3993_v16  ;;  %v719_v53 = vadd.f32 %v718_v50, %v3993_v16 }
  0xca   : > { %v761_v54 = vadd.f32 %v760_v51, %v746_v48 }
  0xcf   : > { %v3995_v17 = vpop.f32.mrf.mxu0 }
  0xd0   : > { %v747_v52 = vmul.f32 %v3995_v17, %v3995_v17  ;;  %v720_v57 = vadd.f32 %v719_v53, %v3995_v17 }
  0xd2   : > { %v762_v58 = vadd.f32 %v761_v54, %v747_v52 }
  0xd7   : > { %v3997_v18 = vpop.f32.mrf.mxu0 }
  0xd8   : > { %v748_v55 = vmul.f32 %v3997_v18, %v3997_v18  ;;  %v721_v61 = vadd.f32 %v720_v57, %v3997_v18 }
  0xda   : > { %v763_v0 = vadd.f32 %v762_v58, %v748_v55 }
  0xdf   : > { %v3999_v19 = vpop.f32.mrf.mxu0 }
  0xe0   : > { %v749_v62 = vmul.f32 %v3999_v19, %v3999_v19  ;;  %v722_v2 = vadd.f32 %v721_v61, %v3999_v19 }
  0xe2   : > { %v764_v25 = vadd.f32 %v763_v0, %v749_v62  ;;  %v723_v32 = vrot.slane %v722_v2, 4 }
  0xe4   : > { %v765_v36 = vrot.slane %v764_v25, 4  ;;  %v724_v41 = vadd.f32 %v723_v32, %v722_v2 }
  0xe6   : > { %v766_v45 = vadd.f32 %v765_v36, %v764_v25  ;;  %v725_v49 = vrot.slane %v724_v41, 2  ;;  %v3399_v36 = vld [vmem:[%s5372_s23] sm:$0xff] }
  0xe7   : > { %v4001_v20 = vpop.f32.mrf.mxu0 }
  0xe8   : > { %v750_v3 = vmul.f32 %v4001_v20, %v4001_v20  ;;  %v767_v55 = vrot.slane %v766_v45, 2  ;;  %v726_v59 = vadd.f32 %v725_v49, %v724_v41 }
  0xea   : > { %v768_v62 = vadd.f32 %v767_v55, %v766_v45 }
  0xef   : > { %v4003_v21 = vpop.f32.mrf.mxu0 }
  0xf0   : > { %v751_v63 = vmul.f32 %v4003_v21, %v4003_v21  ;;  %v729_v22 = vadd.f32 %v4003_v21, %v4001_v20 }
  0xf2   : > { %v771_v27 = vadd.f32 %v751_v63, %v750_v3  ;;  %v727_v63 = vrot.slane %v726_v59, 1  ;;  %v769_v3 = vrot.slane %v768_v62, 1 }
  0xf7   : > { %v4017_v26 = vpop.f32.mrf.mxu0 }
  0xf8   : > { %v752_v23 = vmul.f32 %v4017_v26, %v4017_v26  ;;  %v730_v28 = vadd.f32 %v729_v22, %v4017_v26 }
  0xfa   : > { %v772_v33 = vadd.f32 %v771_v27, %v752_v23  ;;  %v728_v23 = vadd.f32 %v727_v63, %v726_v59 }
  0xff   : > { %v4031_v31 = vpop.f32.mrf.mxu0 }
 0x100   : > { %v753_v29 = vmul.f32 %v4031_v31, %v4031_v31  ;;  %v731_v34 = vadd.f32 %v730_v28, %v4031_v31  ;;  %v770_v28 = vadd.f32 %v769_v3, %v768_v62 }
 0x102   : > { %v773_v37 = vadd.f32 %v772_v33, %v753_v29  ;;  %v3402_v33 = vld [vmem:[%s5372_s23 + $0x18] sm:$0xff] }
 0x103   : > { %3582 = vmatpush.bf16.msrb.mxu3 %v3402_v33 }
 0x107   : > { %v4054_v40 = vpop.f32.mrf.mxu0 }
 0x108   : > { %v754_v35 = vmul.f32 %v4054_v40, %v4054_v40  ;;  %v732_v38 = vadd.f32 %v731_v34, %v4054_v40  ;;  %v3401_v34 = vld [vmem:[%s5372_s23 + $0x10] sm:$0xff] }
 0x109   : > { %3583 = vmatpush.bf16.msrb.mxu3 %v3401_v34 }
 0x10a   : > { %v774_v42 = vadd.f32 %v773_v37, %v754_v35  ;;  %v3400_v35 = vld [vmem:[%s5372_s23 + $0x8] sm:$0xff] }
 0x10d   : > { %3584 = vmatpush.bf16.msrb.mxu3 %v3400_v35 }
 0x10f   : > { %v4078_v56 = vpop.f32.mrf.mxu0 }
 0x110   : > { %v755_v39 = vmul.f32 %v4078_v56, %v4078_v56  ;;  %v733_v43 = vadd.f32 %v732_v38, %v4078_v56 }
 0x111   : > { %3585 = vmatpush.bf16.msrb.mxu3 %v3399_v36 }
 0x112   : > { %v775_v46 = vadd.f32 %v774_v42, %v755_v39 }
 0x117   : > { %v4108_v30 = vpop.f32.mrf.mxu0 }
 0x118   : > { %v756_v44 = vmul.f32 %v4108_v30, %v4108_v30  ;;  %v734_v47 = vadd.f32 %v733_v43, %v4108_v30 }
 0x11a   : > { %v776_v50 = vadd.f32 %v775_v46, %v756_v44 }
 0x11f   : > { %v4120_v48 = vpop.f32.mrf.mxu0 }
 0x120   : > { %v735_v51 = vadd.f32 %v734_v47, %v4120_v48  ;;  %v757_v52 = vmul.f32 %v4120_v48, %v4120_v48 }
 0x122   : > { %v736_v53 = vrot.slane %v735_v51, 4  ;;  %v777_v54 = vadd.f32 %v776_v50, %v757_v52 }
 0x124   : > { %v737_v57 = vadd.f32 %v736_v53, %v735_v51  ;;  %v778_v58 = vrot.slane %v777_v54, 4 }
 0x126   : > { %v738_v60 = vrot.slane %v737_v57, 2  ;;  %v779_v61 = vadd.f32 %v778_v58, %v777_v54 }
 0x128   : > { %v739_v0 = vadd.f32 %v738_v60, %v737_v57  ;;  %v780_v1 = vrot.slane %v779_v61, 2 }
 0x12a   : > { %v740_v2 = vrot.slane %v739_v0, 1  ;;  %v781_v22 = vadd.f32 %v780_v1, %v779_v61 }
 0x12c   : > { %v741_v24 = vadd.f32 %v740_v2, %v739_v0  ;;  %v782_v25 = vrot.slane %v781_v22, 1 }
 0x12e   : > { %v807_v27 = vsel %vm806_vm1, %v741_v24, %v728_v23  ;;  %v783_v29 = vadd.f32 %v782_v25, %v781_v22 }
 0x12f   : > { %825 = vmatmul.f32.vlgmr.msra.gmra.mxu1 %v807_v27 }
 0x130   : > { %v855_v32 = vsel %vm806_vm1, %v783_v29, %v770_v28 }
 0x131   : > { %873 = vmatmul.f32.vlgmr.msra.gmra.mxu3 %v855_v32 }
 0x139   : > { %3183 = vmatmul.msk.bf16.vlgmr.msrb.gmra.mxu3 %vm642_vm0, %v3977_v10 }
 0x149   : > { %3184 = vmatmul.msk.bf16.gmra.mxu3 %vm642_vm0, %v3981_v11 }
 0x1ac   : > { %v826_v37 = vpop.f32.mrf.mxu1 }
 0x1ad   : > { %3159 = vmatmul.msk.f32.vlgmr.msra.gmra.mxu2 %vm829_vm2, %v826_v37 }
 0x1ae   : > { %1046 = vmatpush.bf16.msra.mxu2 %v3402_v33 }
 0x1b2   : > { %1047 = vmatpush.bf16.msra.mxu2 %v3401_v34 }
 0x1b4   : > { %v874_v38 = vpop.f32.mrf.mxu3 }
 0x1b5   : > { %3160 = vmatmul.msk.f32.vlgmr.msrb.gmra.mxu2 %vm829_vm2, %v874_v38 }
 0x1b6   : > { %1048 = vmatpush.bf16.msra.mxu2 %v3400_v35 }
 0x1ba   : > { %1049 = vmatpush.bf16.msra.mxu2 %v3399_v36  ;;  %v3792_v36 = vmov 64.0  }
 0x1bb   : > { %3712 = vrcp.f32 %v3792_v36 }
 0x1bd   : > { %3177 = vmatmul.msk.bf16.vlgmr.msra.gmra.mxu2 %vm642_vm0, %v3953_v4 }
 0x1cd   : > { %3178 = vmatmul.msk.bf16.gmra.mxu2 %vm642_vm0, %v3957_v5 }
 0x1dd   : > { %3179 = vmatmul.msk.bf16.gmra.mxu2 %vm642_vm0, %v3961_v6 }
 0x1ed   : > { %3180 = vmatmul.msk.bf16.gmra.mxu2 %vm642_vm0, %v3965_v7 }
 0x1fd   : > { %3181 = vmatmul.msk.bf16.gmra.mxu2 %vm642_vm0, %v3969_v8 }
 0x20d   : > { %3182 = vmatmul.msk.bf16.gmra.mxu2 %vm642_vm0, %v3973_v9 }
 0x230   : > { %v4157_v10 = vpop.f32.mrf.mxu2 }
 0x238   : > { %v4159_v11 = vpop.f32.mrf.mxu2 }
 0x240   : > { %v4161_v4 = vpop.f32.mrf.mxu2 }
 0x241   : > { %v1091_v42 = vsel %vm829_vm2, %v4161_v4, 0.0  ;;  %v1133_v43 = vmul.f32 %v4161_v4, %v4161_v4 }
 0x243   : > { %v1149_v53 = vsel %vm829_vm2, %v1133_v43, 0.0  ;;  %v3713_v43 = vpop.eup %3712 }
 0x244   : > { %vm1196_vm3 = vweird.f32 %v3713_v43 }
 0x248   : > { %v4163_v39 = vpop.f32.mrf.mxu2 }
 0x249   : > { %v1092_v8 = vsel %vm829_vm2, %v4163_v39, 0.0  ;;  %v1134_v9 = vmul.f32 %v4163_v39, %v4163_v39 }
 0x24a   : > { %v1093_v46 = vadd.f32 %v1092_v8, %v1091_v42  ;;  %v4217_v42 = vpop.f32.mrf.mxu3 }
 0x24b   : > { %v1150_v47 = vsel %vm829_vm2, %v1134_v9, 0.0 }
 0x24c   : > { %v1151_v58 = vadd.f32 %v1150_v47, %v1149_v53  ;;  %v1192_v47 = vmul.f32 64.0, %v3713_v43 }
 0x250   : > { %v4165_v5 = vpop.f32.mrf.mxu2 }
 0x251   : > { %v1094_v44 = vsel %vm829_vm2, %v4165_v5, 0.0  ;;  %v1135_v45 = vmul.f32 %v4165_v5, %v4165_v5 }
 0x252   : > { %v1095_v51 = vadd.f32 %v1094_v44, %v1093_v46 }
 0x253   : > { %v1152_v54 = vsel %vm829_vm2, %v1135_v45, 0.0 }
 0x254   : > { %v1153_v63 = vadd.f32 %v1152_v54, %v1151_v58  ;;  %v4223_v54 = vpop.f32.mrf.mxu3 }
 0x258   : > { %v4167_v6 = vpop.f32.mrf.mxu2 }
 0x259   : > { %v1096_v49 = vsel %vm829_vm2, %v4167_v6, 0.0  ;;  %v1136_v50 = vmul.f32 %v4167_v6, %v4167_v6 }
 0x25a   : > { %v1097_v59 = vadd.f32 %v1096_v49, %v1095_v51  ;;  %v1193_v51 = vsub.f32 1.0, %v1192_v47 }
 0x25b   : > { %v1154_v60 = vsel %vm829_vm2, %v1136_v50, 0.0 }
 0x25c   : > { %v1155_v22 = vadd.f32 %v1154_v60, %v1153_v63  ;;  %v1194_v58 = vmul.f32 %v3713_v43, %v1193_v51  ;;  %v1119_v51 = vsel %vm829_vm2, %v4217_v42, 0.0 }
 0x260   : > { %v4169_v41 = vpop.f32.mrf.mxu2 }
 0x261   : > { %v1098_v55 = vsel %vm829_vm2, %v4169_v41, 0.0  ;;  %v1137_v57 = vmul.f32 %v4169_v41, %v4169_v41 }
 0x262   : > { %v1099_v0 = vadd.f32 %v1098_v55, %v1097_v59 }
 0x263   : > { %v1156_v1 = vsel %vm829_vm2, %v1137_v57, 0.0 }
 0x264   : > { %v1157_v25 = vadd.f32 %v1156_v1, %v1155_v22 }
 0x268   : > { %v4171_v7 = vpop.f32.mrf.mxu2 }
 0x269   : > { %v1100_v61 = vsel %vm829_vm2, %v4171_v7, 0.0  ;;  %v1138_v62 = vmul.f32 %v4171_v7, %v4171_v7 }
 0x26a   : > { %v1101_v23 = vadd.f32 %v1100_v61, %v1099_v0  ;;  %v1195_v61 = vadd.f32 %v3713_v43, %v1194_v58 }
 0x26b   : > { %v1158_v24 = vsel %vm829_vm2, %v1138_v62, 0.0 }
 0x26c   : > { %v1159_v34 = vadd.f32 %v1158_v24, %v1157_v25 }
 0x270   : > { %v4190_v52 = vpop.f32.mrf.mxu2 }
 0x271   : > { %v1102_v2 = vsel %vm829_vm2, %v4190_v52, 0.0  ;;  %v1139_v3 = vmul.f32 %v4190_v52, %v4190_v52 }
 0x272   : > { %v1103_v27 = vadd.f32 %v1102_v2, %v1101_v23  ;;  %v4229_v2 = vpop.f32.mrf.mxu3 }
 0x273   : > { %v1160_v29 = vsel %vm829_vm2, %v1139_v3, 0.0  ;;  %v4231_v3 = vsel %vm1196_vm3, %v3713_v43, %v1195_v61  ;;  %vm1664_vm3 = vcmask 781312  }
 0x274   : > { %v1161_v38 = vadd.f32 %v1160_v29, %v1159_v34 }
 0x278   : > { %v4209_v28 = vpop.f32.mrf.mxu2 }
 0x279   : > { %v1104_v32 = vsel %vm829_vm2, %v4209_v28, 0.0  ;;  %v1140_v33 = vmul.f32 %v4209_v28, %v4209_v28 }
 0x27a   : > { %v1105_v35 = vadd.f32 %v1104_v32, %v1103_v27 }
 0x27b   : > { %v1162_v37 = vsel %vm829_vm2, %v1140_v33, 0.0 }
 0x27c   : > { %v1106_v8 = vrot.slane %v1105_v35, 4  ;;  %v1163_v9 = vadd.f32 %v1162_v37, %v1161_v38 }
 0x27e   : > { %v1107_v45 = vadd.f32 %v1106_v8, %v1105_v35  ;;  %v1164_v46 = vrot.slane %v1163_v9, 4 }
 0x280   : > { %v4219_v44 = vpop.f32.mrf.mxu2  ;;  %v1108_v49 = vrot.slane %v1107_v45, 2  ;;  %v1165_v50 = vadd.f32 %v1164_v46, %v1163_v9  ;;  %v1145_v9 = vmul.f32 %v4217_v42, %v4217_v42 }
 0x281   : > { %v1141_v22 = vmul.f32 %v4219_v44, %v4219_v44  ;;  %v1112_v25 = vsel %vm829_vm2, %v4219_v44, 0.0 }
 0x282   : > { %v1109_v55 = vadd.f32 %v1108_v49, %v1107_v45  ;;  %v1166_v57 = vrot.slane %v1165_v50, 2  ;;  %v1177_v61 = vsel %vm829_vm2, %v1145_v9, 0.0 }
 0x283   : > { %v1170_v35 = vsel %vm829_vm2, %v1141_v22, 0.0 }
 0x284   : > { %v1110_v59 = vrot.slane %v1109_v55, 1  ;;  %v1167_v60 = vadd.f32 %v1166_v57, %v1165_v50 }
 0x286   : > { %v1111_v0 = vadd.f32 %v1110_v59, %v1109_v55  ;;  %v1168_v1 = vrot.slane %v1167_v60, 1  ;;  %v1146_v55 = vmul.f32 %v4223_v54, %v4223_v54 }
 0x288   : > { %v4221_v53 = vpop.f32.mrf.mxu2  ;;  %v1169_v32 = vadd.f32 %v1168_v1, %v1167_v60  ;;  %v4245_v33 = vmul.f32 %v4231_v3, %v1111_v0  ;;  %v4265_v60 = vpop.f32.mrf.mxu3  ;;  %v1147_v0 = vmul.f32 %v4229_v2, %v4229_v2 }
 0x289   : > { %v1142_v63 = vmul.f32 %v4221_v53, %v4221_v53  ;;  %v1113_v23 = vsel %vm829_vm2, %v4221_v53, 0.0 }
 0x28a   : > { %v1114_v34 = vadd.f32 %v1113_v23, %v1112_v25  ;;  %v1200_v46 = vmul.f32 %v4231_v3, %v1169_v32  ;;  %v1202_v47 = vmul.f32 %v4245_v33, %v4245_v33  ;;  %v1123_v25 = vsel %vm829_vm2, %v4229_v2, 0.0 }
 0x28b   : > { %v1171_v27 = vsel %vm829_vm2, %v1142_v63, 0.0  ;;  %v1121_v63 = vsel %vm829_vm2, %v4223_v54, 0.0 }
 0x28c   : > { %v1172_v37 = vadd.f32 %v1171_v27, %v1170_v35  ;;  %v1204_v1 = vsub.f32 %v1200_v46, %v1202_v47  ;;  %v1148_v27 = vmul.f32 %v4265_v60, %v4265_v60  ;;  %v1125_v35 = vsel %vm829_vm2, %v4265_v60, 0.0 }
 0x28e   : > { %v1183_v9 = vsel %vm829_vm2, %v1148_v27, 0.0 }
 0x290   : > { %v4225_v62 = vpop.f32.mrf.mxu2 }
 0x291   : > { %v1143_v24 = vmul.f32 %v4225_v62, %v4225_v62  ;;  %v1115_v29 = vsel %vm829_vm2, %v4225_v62, 0.0 }
 0x292   : > { %v1116_v38 = vadd.f32 %v1115_v29, %v1114_v34  ;;  %v1181_v34 = vsel %vm829_vm2, %v1147_v0, 0.0 }
 0x293   : > { %v1173_v36 = vsel %vm829_vm2, %v1143_v24, 0.0  ;;  %v1179_v24 = vsel %vm829_vm2, %v1146_v55, 0.0 }
 0x294   : > { %v1174_v49 = vadd.f32 %v1173_v36, %v1172_v37  ;;  %v1206_v36 = vmax.f32 %v1204_v1, 0.0 }
 0x296   : > { %v1208_v46 = vadd.f32 1e-05, %v1206_v36 }
 0x298   : > { %v4249_v8 = vpop.f32.mrf.mxu2  ;;  %3714 = vrsqrt.f32 %v1208_v46  ;;  %vm1216_vm5 = vweird.f32 %v1208_v46 }
 0x299   : > { %v1117_v43 = vsel %vm829_vm2, %v4249_v8, 0.0  ;;  %v1144_v45 = vmul.f32 %v4249_v8, %v4249_v8 }
 0x29a   : > { %v1118_v50 = vadd.f32 %v1117_v43, %v1116_v38 }
 0x29b   : > { %v1175_v57 = vsel %vm829_vm2, %v1144_v45, 0.0 }
 0x29c   : > { %v1120_v58 = vadd.f32 %v1119_v51, %v1118_v50  ;;  %v1176_v59 = vadd.f32 %v1175_v57, %v1174_v49 }
 0x29e   : > { %v1178_v22 = vadd.f32 %v1177_v61, %v1176_v59  ;;  %v1122_v23 = vadd.f32 %v1121_v63, %v1120_v58  ;;  %v3715_v0 = vpop.eup %3714 }
 0x29f   : > { %vm1217_vm4 = vweird.f32 %v3715_v0 }
 0x2a0   : > { %v1124_v29 = vadd.f32 %v1123_v25, %v1122_v23  ;;  %v1180_v32 = vadd.f32 %v1179_v24, %v1178_v22  ;;  %v1211_v25 = vmul.f32 %v3715_v0, %v1208_v46  ;;  %vm1218_vm6 = vmor %vm1216_vm5, %vm1217_vm4  ;;  %v3707_v46 = vld [vmem:[%s5341_s6] ss:$0 sm:$0xff]  ;;  %vm1683_vm4 = vcmask 1043968  }
 0x2a1   : > { %vm1684_vm5 = vcmask 261124  }
 0x2a2   : > { %v1126_v37 = vadd.f32 %v1125_v35, %v1124_v29  ;;  %v1182_v38 = vadd.f32 %v1181_v34, %v1180_v32  ;;  %v1212_v32 = vmul.f32 %v3715_v0, %v1211_v25 }
 0x2a4   : > { %v1127_v43 = vrot.slane %v1126_v37, 4  ;;  %v1184_v45 = vadd.f32 %v1183_v9, %v1182_v38  ;;  %v1213_v35 = vmul.f32 0.5, %v1212_v32 }
 0x2a6   : > { %v1128_v47 = vadd.f32 %v1127_v43, %v1126_v37  ;;  %v1185_v49 = vrot.slane %v1184_v45, 4  ;;  %v1214_v36 = vsub.f32 1.5, %v1213_v35 }
 0x2a8   : > { %v1129_v50 = vrot.slane %v1128_v47, 2  ;;  %v1186_v51 = vadd.f32 %v1185_v49, %v1184_v45  ;;  %v1215_v9 = vmul.f32 %v3715_v0, %v1214_v36 }
 0x2aa   : > { %v1130_v55 = vadd.f32 %v1129_v50, %v1128_v47  ;;  %v1187_v57 = vrot.slane %v1186_v51, 2  ;;  %v3706_v47 = vld [vmem:[%s5340_s5] ss:$0 sm:$0xff]  ;;  %v1219_v49 = vsel %vm1218_vm6, %v3715_v0, %v1215_v9  ;;  %vm4660_vm6 = vmor %vm1684_vm5, %vm1683_vm4 }
 0x2ac   : > { %v1131_v58 = vrot.slane %v1130_v55, 1  ;;  %v1188_v59 = vadd.f32 %v1187_v57, %v1186_v51 }
 0x2ae   : > { %v1132_v61 = vadd.f32 %v1131_v58, %v1130_v55  ;;  %v1189_v63 = vrot.slane %v1188_v59, 1  ;;  %v1234_v55 = vmul.f32 %v3706_v47, %v1219_v49 }
 0x2b0   : > { %v1190_v1 = vadd.f32 %v1189_v63, %v1188_v59  ;;  %v1199_v22 = vmul.f32 %v4231_v3, %v1132_v61  ;;  %v1304_v59 = vlaneseq  ;;  %v1248_v61 = vperm.slane %v1234_v55, 0 }
 0x2b2   : > { %v1201_v23 = vmul.f32 %v4231_v3, %v1190_v1  ;;  %v1203_v24 = vmul.f32 %v1199_v22, %v1199_v22  ;;  %v4290_v0 = vshrl.u32 %v1304_v59, 7  ;;  %v1254_v32 = vmul.f32 %v1248_v61, %v4169_v41 }
 0x2b3   : > { %v1250_v35 = vmul.f32 %v1248_v61, %v4161_v4  ;;  %v1251_v36 = vmul.f32 %v1248_v61, %v4163_v39 }
 0x2b4   : > { %v1205_v27 = vsub.f32 %v1201_v23, %v1203_v24  ;;  %v1237_v23 = vmul.f32 %v1234_v55, %v4245_v33  ;;  %vm1339_vm10 = vcmp.eq.s32.totalorder %v4290_v0, 7  ;;  %v1252_v33 = vmul.f32 %v1248_v61, %v4165_v5 }
 0x2b5   : > { %vm1306_vm11 = vcmp.eq.s32.totalorder %v4290_v0, 0 }
 0x2b6   : > { %v1207_v29 = vmax.f32 %v1205_v27, 0.0  ;;  %v1257_v27 = vmul.f32 %v1248_v61, %v4209_v28 }
 0x2b8   : > { %v1209_v34 = vadd.f32 1e-05, %v1207_v29 }
 0x2ba   : > { %3716 = vrsqrt.f32 %v1209_v34  ;;  %vm1226_vm8 = vweird.f32 %v1209_v34 }
 0x2c0   : > { %v3717_v37 = vpop.eup %3716 }
 0x2c1   : > { %v1221_v38 = vmul.f32 %v3717_v37, %v1209_v34  ;;  %vm1227_vm7 = vweird.f32 %v3717_v37  ;;  %v1255_v34 = vmul.f32 %v1248_v61, %v4171_v7 }
 0x2c2   : > { %vm1228_vm9 = vmor %vm1226_vm8, %vm1227_vm7 }
 0x2c3   : > { %v1222_v43 = vmul.f32 %v3717_v37, %v1221_v38 }
 0x2c5   : > { %v1223_v45 = vmul.f32 0.5, %v1222_v43 }
 0x2c7   : > { %v1224_v50 = vsub.f32 1.5, %v1223_v45 }
 0x2c9   : > { %v1225_v51 = vmul.f32 %v3717_v37, %v1224_v50 }
 0x2cb   : > { %v1229_v57 = vsel %vm1228_vm9, %v3717_v37, %v1225_v51  ;;  %v1256_v37 = vmul.f32 %v1248_v61, %v4190_v52 }
 0x2cc   : > { %v1235_v58 = vmul.f32 %v3706_v47, %v1229_v57 }
 0x2ce   : > { %v1238_v63 = vmul.f32 %v1235_v58, %v1199_v22  ;;  %v1249_v1 = vperm.slane %v1235_v58, 0 }
 0x2d0   : > { %v1244_v24 = vrot.slane %v1238_v63, 7  ;;  %v4293_v25 = vmul.f32 %v1249_v1, %v4225_v62  ;;  %v1253_v62 = vmul.f32 %v1248_v61, %v4167_v6  ;;  %v1265_v28 = vmul.f32 %v1249_v1, %v4265_v60 }
 0x2d1   : > { %v4307_v41 = vmul.f32 %v1249_v1, %v4219_v44  ;;  %v4310_v7 = vmul.f32 %v1249_v1, %v4221_v53  ;;  %v4313_v4 = vmul.f32 %v1249_v1, %v4249_v8  ;;  %v4316_v39 = vmul.f32 %v1249_v1, %v4217_v42 }
 0x2d2   : > { %v1245_v29 = vsel %vm806_vm1, %v1244_v24, %v1237_v23  ;;  %v4319_v5 = vmul.f32 %v1249_v1, %v4223_v54  ;;  %v1264_v63 = vmul.f32 %v1249_v1, %v4229_v2 }
 0x2d3   : > { %v1247_v22 = vsub.f32 %v3707_v46, %v1245_v29 }
 0x2d5   : > { %v1267_v38 = vrot.slane %v1247_v22, 1  ;;  %v1268_v9 = vperm.slane %v1247_v22, 0 }
 0x2d7   : > { %v4321_v6 = vperm.slane %v1267_v38, 0  ;;  %v1276_v52 = vadd.f32 %v1268_v9, %v1254_v32  ;;  %v1277_v60 = vadd.f32 %v1268_v9, %v1255_v34  ;;  %v1272_v43 = vadd.f32 %v1268_v9, %v1250_v35 }
 0x2d8   : > { %v1273_v45 = vadd.f32 %v1268_v9, %v1251_v36  ;;  %v1274_v44 = vadd.f32 %v1268_v9, %v1252_v33  ;;  %v1275_v53 = vadd.f32 %v1268_v9, %v1253_v62  ;;  %v1278_v47 = vadd.f32 %v1268_v9, %v1256_v37 }
 0x2d9   : > { %v4325_v8 = vadd.f32 %v4321_v6, %v1265_v28  ;;  %v1292_v49 = vmax.f32 %v1276_v52, 0.0  ;;  %v1293_v42 = vmax.f32 %v1277_v60, 0.0  ;;  %v1288_v50 = vmax.f32 %v1272_v43, 0.0 }
 0x2da   : > { %v1289_v51 = vmax.f32 %v1273_v45, 0.0  ;;  %v1290_v54 = vmax.f32 %v1274_v44, 0.0  ;;  %v1291_v55 = vmax.f32 %v1275_v53, 0.0  ;;  %v1279_v57 = vadd.f32 %v1268_v9, %v1257_v27 }
 0x2db   : > { %v3654_v58 = vpack.i.bf16 %v1293_v42, %v1292_v49  ;;  %v1340_v59 = vrot.slane %v1288_v50, 1  ;;  %v1344_v61 = vrot.slane %v1292_v49, 1  ;;  %v1345_v24 = vrot.slane %v1293_v42, 1 }
 0x2dc   : > { %v3634_v46 = vpack.i.bf16 %v1289_v51, %v1288_v50  ;;  %v1341_v23 = vrot.slane %v1289_v51, 1  ;;  %v3639_v29 = vpack.i.bf16 %v1291_v55, %v1290_v54  ;;  %v1342_v34 = vrot.slane %v1290_v54, 1 }
 0x2dd   : > { %3655 = vrot.lane.b32.xlu2 %v3654_v58, %s5358_s22  ;;  %v1356_v32 = vsel %vm1339_vm10, 0.0, %v1340_v59  ;;  %v1360_v22 = vsel %vm1339_vm10, 0.0, %v1344_v61  ;;  %v1343_v27 = vrot.slane %v1291_v55, 1  ;;  %v1361_v1 = vsel %vm1339_vm10, 0.0, %v1345_v24 }
 0x2de   : > { %3635 = vrot.lane.b32.xlu0 %v3634_v46, %s5358_s22  ;;  %v1357_v2 = vsel %vm1339_vm10, 0.0, %v1341_v23  ;;  %v4338_v35 = vmax.f32 %v1278_v47, 0.0  ;;  %v4340_v36 = vmax.f32 %v1279_v57, 0.0  ;;  %v3659_v62 = vpack.i.bf16 %v1361_v1, %v1360_v22 }
 0x2df   : > { %v3644_v33 = vpack.i.bf16 %v1357_v2, %v1356_v32  ;;  %v1358_v37 = vsel %vm1339_vm10, 0.0, %v1342_v34  ;;  %v1359_v28 = vsel %vm1339_vm10, 0.0, %v1343_v27  ;;  %v1312_v43 = vrot.slane %v1293_v42, 7 }
 0x2e0   : > { %v3649_v38 = vpack.i.bf16 %v1359_v28, %v1358_v37  ;;  %v3664_v9 = vpack.i.bf16 %v4340_v36, %v4338_v35  ;;  %v1346_v52 = vrot.slane %v4338_v35, 1  ;;  %v1347_v60 = vrot.slane %v4340_v36, 1 }
 0x2e1   : > { %3645 = vrot.lane.b32.xlu1 %v3644_v33, %s5361_s27  ;;  %v1311_v45 = vrot.slane %v1292_v49, 7  ;;  %v1308_v44 = vrot.slane %v1289_v51, 7  ;;  %v1307_v53 = vrot.slane %v1288_v50, 7  ;;  %v1309_v58 = vrot.slane %v1290_v54, 7 }
 0x2e2   : > { %v4353_v47 = vsel %vm1339_vm10, 0.0, %v1346_v52  ;;  %v1363_v57 = vsel %vm1339_vm10, 0.0, %v1347_v60  ;;  %v1310_v59 = vrot.slane %v1291_v55, 7  ;;  %v4360_v46 = vsel %vm1306_vm11, 0.0, %v1312_v43 }
 0x2e3   : > { %v3669_v61 = vpack.i.bf16 %v1363_v57, %v4353_v47  ;;  %v4364_v49 = vsel %vm1306_vm11, 0.0, %v1311_v45  ;;  %v4368_v42 = vsel %vm1306_vm11, 0.0, %v1308_v44  ;;  %v4372_v50 = vsel %vm1306_vm11, 0.0, %v1307_v53 }
 0x2e4   : > { %v4376_v51 = vsel %vm1306_vm11, 0.0, %v1309_v58  ;;  %v4380_v54 = vsel %vm1306_vm11, 0.0, %v1310_v59  ;;  %v1313_v55 = vrot.slane %v4338_v35, 7  ;;  %v1314_v23 = vrot.slane %v4340_v36, 7 }
 0x2e5   : > { %3660 = vrot.lane.b32.xlu2 %v3659_v62, %s5361_s27  ;;  %v1280_v24 = vadd.f32 %v4321_v6, %v4307_v41  ;;  %v1281_v32 = vadd.f32 %v4321_v6, %v4310_v7  ;;  %v1282_v22 = vadd.f32 %v4321_v6, %v4293_v25  ;;  %v1283_v27 = vadd.f32 %v4321_v6, %v4313_v4 }
 0x2e6   : > { %3640 = vrot.lane.b32.xlu0 %v3639_v29, %s5358_s22  ;;  %v4394_v34 = vsel %vm1306_vm11, 0.0, %v1313_v55  ;;  %v1284_v2 = vadd.f32 %v4321_v6, %v4316_v39  ;;  %v1285_v41 = vadd.f32 %v4321_v6, %v4319_v5  ;;  %v4404_v7 = vsel %vm1306_vm11, 0.0, %v1314_v23 }
 0x2e7   : > { %v4406_v25 = vmax.f32 %v1280_v24, 0.0  ;;  %v4408_v29 = vmax.f32 %v1281_v32, 0.0  ;;  %v4410_v1 = vmax.f32 %v1282_v22, 0.0  ;;  %v4412_v35 = vmax.f32 %v1283_v27, 0.0 }
 0x2e8   : > { %v4414_v36 = vmax.f32 %v1284_v2, 0.0  ;;  %v1286_v4 = vadd.f32 %v4321_v6, %v1264_v63  ;;  %v4417_v39 = vmax.f32 %v1285_v41, 0.0 }
 0x2e9   : > { %3650 = vrot.lane.b32.xlu1 %v3649_v38, %s5361_s27  ;;  %v3674_v5 = vpack.i.bf16 %v4408_v29, %v4406_v25  ;;  %v1350_v33 = vrot.slane %v4410_v1, 1  ;;  %v1348_v62 = vrot.slane %v4406_v25, 1  ;;  %v1349_v37 = vrot.slane %v4408_v29, 1 }
 0x2ea   : > { %v1351_v52 = vrot.slane %v4412_v35, 1  ;;  %v1352_v6 = vrot.slane %v4414_v36, 1  ;;  %v4429_v63 = vmax.f32 %v1286_v4, 0.0  ;;  %v1353_v45 = vrot.slane %v4417_v39, 1 }
 0x2eb   : > { %v4433_v38 = vsel %vm1339_vm10, 0.0, %v1350_v33  ;;  %v4437_v60 = vsel %vm1339_vm10, 0.0, %v1348_v62  ;;  %v4441_v43 = vsel %vm1339_vm10, 0.0, %v1349_v37  ;;  %v1318_v23 = vrot.slane %v4412_v35, 7 }
 0x2ec   : > { %v4448_v53 = vsel %vm1339_vm10, 0.0, %v1351_v52  ;;  %v4452_v47 = vsel %vm1339_vm10, 0.0, %v1352_v6  ;;  %v1354_v59 = vrot.slane %v4429_v63, 1  ;;  %v4461_v55 = vsel %vm1339_vm10, 0.0, %v1353_v45 }
 0x2ed   : > { %v1316_v24 = vrot.slane %v4408_v29, 7  ;;  %v1315_v32 = vrot.slane %v4406_v25, 7  ;;  %v1317_v22 = vrot.slane %v4410_v1, 7  ;;  %v1320_v27 = vrot.slane %v4417_v39, 7 }
 0x2ee   : > { %3665 = vrot.lane.b32.xlu0 %v3664_v9, %s5358_s22  ;;  %v4471_v2 = vsel %vm1339_vm10, 0.0, %v1354_v59  ;;  %v4475_v41 = vsel %vm1306_vm11, 0.0, %v1318_v23  ;;  %v1321_v4 = vrot.slane %v4429_v63, 7  ;;  %v5374_v29 = vpack.i.bf16 %v4441_v43, %v4437_v60 }
 0x2ef   : > { %v4482_v33 = vsel %vm1306_vm11, 0.0, %v1316_v24  ;;  %v4486_v62 = vsel %vm1306_vm11, 0.0, %v1315_v32  ;;  %v4490_v37 = vsel %vm1306_vm11, 0.0, %v1317_v22  ;;  %v4495_v52 = vsel %vm1306_vm11, 0.0, %v1320_v27 }
 0x2f0   : > { %v4499_v6 = vsel %vm1306_vm11, 0.0, %v1321_v4 }
 0x2f1   : > { %3670 = vrot.lane.b32.xlu1 %v3669_v61, %s5361_s27 }
 0x337   : > { %v3656_v24 = vpop.permute.xlu2 %3655 }
 0x350   : > { %v3636_v45 = vpop.permute.xlu0 %3635 }
 0x351   : > { %v3638_v59 = vunpack.i.h.bf16 %v3636_v45  ;;  %v3637_v23 = vunpack.i.l.bf16 %v3636_v45 }
 0x353   : > { %v3646_v32 = vpop.permute.xlu1 %3645  ;;  %v1501_v22 = vsel %vm829_vm2, %v4368_v42, %v3638_v59  ;;  %v1500_v61 = vsel %vm829_vm2, %v4372_v50, %v3637_v23  ;;  %v3657_v59 = vunpack.i.l.bf16 %v3656_v24 }
 0x354   : > { %v3648_v57 = vunpack.i.h.bf16 %v3646_v32  ;;  %v3647_v9 = vunpack.i.l.bf16 %v3646_v32 }
 0x356   : > { %v1517_v27 = vsel %vm642_vm0, %v1501_v22, %v3648_v57  ;;  %v1516_v58 = vsel %vm642_vm0, %v1500_v61, %v3647_v9  ;;  %v3661_v57 = vpop.permute.xlu2 %3660 }
 0x357   : > { %v4507_v44 = vpack.c.bf16 %v1517_v27, %v1517_v27  ;;  %v4509_v4 = vpack.c.bf16 %v1516_v58, %v1516_v58  ;;  %v3662_v22 = vunpack.i.l.bf16 %v3661_v57  ;;  %v3663_v25 = vunpack.i.h.bf16 %v3661_v57 }
 0x358   : > { %v3641_v28 = vpop.permute.xlu0 %3640 }
 0x359   : > { %v3642_v45 = vunpack.i.l.bf16 %v3641_v28  ;;  %1688 = vrot.lane.b32.xlu1 %v4507_v44, %s5361_s27  ;;  %1566 = vrot.lane.b32.xlu0 %v4507_v44, %s5359_s29  ;;  %v3643_v23 = vunpack.i.h.bf16 %v3641_v28 }
 0x35a   : > { %1564 = vrot.lane.b32.xlu2 %v4509_v4, %s5359_s29 }
 0x35b   : > { %v3651_v42 = vpop.permute.xlu1 %3650  ;;  %v1502_v9 = vsel %vm829_vm2, %v4376_v51, %v3642_v45  ;;  %v1504_v51 = vsel %vm829_vm2, %v4364_v49, %v3657_v59  ;;  %v1503_v28 = vsel %vm829_vm2, %v4380_v54, %v3643_v23  ;;  %v5373_v49 = vpack.i.bf16 %v4412_v35, %v4410_v1 }
 0x35c   : > { %v3652_v50 = vunpack.i.l.bf16 %v3651_v42  ;;  %v3653_v61 = vunpack.i.h.bf16 %v3651_v42  ;;  %v1520_v27 = vsel %vm642_vm0, %v1504_v51, %v3662_v22  ;;  %v3658_v54 = vunpack.i.h.bf16 %v3656_v24  ;;  %v3442_v51 = vld [vmem:[%s5378_s2 + $0x78] sm:$0xff] }
 0x35d   : > { %v4536_v42 = vpack.c.bf16 %v1520_v27, %v1520_v27  ;;  %v5375_v23 = vpack.i.bf16 %v4452_v47, %v4448_v53  ;;  %v5376_v53 = vpack.i.bf16 %v4471_v2, %v4461_v55  ;;  %v5377_v47 = vpack.i.bf16 %v4429_v63, %v4417_v39  ;;  %2142 = vmatpush.bf16.msra.mxu3 %v3442_v51  ;;  %v3433_v55 = vld [vmem:[%s5378_s2 + $0x30] sm:$0xff]  ;;  %v3432_v39 = vld [vmem:[%s5378_s2 + $0x28] sm:$0xff]  ;;  %v3439_v27 = vld [vmem:[%s5378_s2 + $0x60] sm:$0xff] }
 0x35e   : > { %v1518_v58 = vsel %vm642_vm0, %v1502_v9, %v3652_v50  ;;  %v1519_v45 = vsel %vm642_vm0, %v1503_v28, %v3653_v61  ;;  %v3441_v2 = vld [vmem:[%s5378_s2 + $0x70] sm:$0xff]  ;;  %v3440_v63 = vld [vmem:[%s5378_s2 + $0x68] sm:$0xff]  ;;  %v3431_v28 = vld [vmem:[%s5378_s2 + $0x20] sm:$0xff] }
 0x35f   : > { %v4520_v32 = vpack.c.bf16 %v1518_v58, %v1518_v58  ;;  %v4538_v50 = vpack.c.bf16 %v1519_v45, %v1519_v45  ;;  %v3430_v45 = vld [vmem:[%s5378_s2 + $0x18] sm:$0xff] }
 0x360   : > { %v3666_v1 = vpop.permute.xlu0 %3665 }
 0x361   : > { %1568 = vrot.lane.b32.xlu0 %v4520_v32, %s5359_s29  ;;  %3675 = vrot.lane.b32.xlu1 %v3674_v5, %s5358_s22  ;;  %v1505_v5 = vsel %vm829_vm2, %v4360_v46, %v3658_v54  ;;  %v3667_v57 = vunpack.i.l.bf16 %v3666_v1  ;;  %v3668_v60 = vunpack.i.h.bf16 %v3666_v1  ;;  %v3429_v54 = vld [vmem:[%s5378_s2 + $0x10] sm:$0xff]  ;;  %v3436_v1 = vld [vmem:[%s5378_s2 + $0x48] sm:$0xff] }
 0x362   : > { %1690 = vrot.lane.b32.xlu2 %v4520_v32, %s5361_s27  ;;  %v1521_v9 = vsel %vm642_vm0, %v1505_v5, %v3663_v25  ;;  %2143 = vmatpush.bf16.msra.mxu3 %v3441_v2  ;;  %v3437_v25 = vld [vmem:[%s5378_s2 + $0x50] sm:$0xff] }
 0x363   : > { %v3671_v35 = vpop.permute.xlu1 %3670  ;;  %v4559_v24 = vpack.c.bf16 %v1521_v9, %v1521_v9  ;;  %v1506_v46 = vsel %vm829_vm2, %v4394_v34, %v3667_v57  ;;  %v1507_v34 = vsel %vm829_vm2, %v4404_v7, %v3668_v60  ;;  %v3434_v7 = vld [vmem:[%s5378_s2 + $0x38] sm:$0xff]  ;;  %v3428_v9 = vld [vmem:[%s5378_s2 + $0x8] sm:$0xff]  ;;  %v3435_v60 = vld [vmem:[%s5378_s2 + $0x40] sm:$0xff] }
 0x364   : > { %v3672_v58 = vunpack.i.l.bf16 %v3671_v35  ;;  %v3673_v43 = vunpack.i.h.bf16 %v3671_v35  ;;  %2093 = vmatpush.bf16.msrb.mxu1 %v3434_v7 }
 0x366   : > { %v1523_v22 = vsel %vm642_vm0, %v1507_v34, %v3673_v43  ;;  %2144 = vmatpush.bf16.msra.mxu3 %v3440_v63  ;;  %v3443_v43 = vld [vmem:[%s5378_s2 + $0x80] sm:$0xff] }
 0x367   : > { %v1539_v61 = vpack.c.bf16 %v1523_v22, %v1523_v22 }
 0x368   : > { %2094 = vmatpush.bf16.msrb.mxu1 %v3433_v55 }
 0x369   : > { %1694 = vrot.lane.b32.xlu0 %v4536_v42, %s5361_s27  ;;  %1570 = vrot.lane.b32.xlu1 %v4538_v50, %s5359_s29 }
 0x36a   : > { %3680 = vrot.lane.b32.xlu2 %v5373_v49, %s5358_s22  ;;  %2145 = vmatpush.bf16.msra.mxu3 %v3439_v27  ;;  %v3438_v49 = vld [vmem:[%s5378_s2 + $0x58] sm:$0xff] }
 0x36c   : > { %2095 = vmatpush.bf16.msrb.mxu1 %v3432_v39 }
 0x36e   : > { %2146 = vmatpush.bf16.msra.mxu3 %v3438_v49 }
 0x370   : > { %2096 = vmatpush.bf16.msrb.mxu1 %v3431_v28 }
 0x371   : > { %1472 = vrot.lane.b32.xlu1 %v4433_v38, %s5361_s27  ;;  %3685 = vrot.lane.b32.xlu0 %v5374_v29, %s5361_s27  ;;  %v1522_v38 = vsel %vm642_vm0, %v1506_v46, %v3672_v58  ;;  %v3444_v29 = vld [vmem:[%s5378_s2 + $0x88] sm:$0xff]  ;;  %v3796_v46 = vmov 0  }
 0x372   : > { %1692 = vrot.lane.b32.xlu2 %v4538_v50, %s5361_s27  ;;  %v4570_v59 = vpack.c.bf16 %v1522_v38, %v1522_v38  ;;  %2147 = vmatpush.bf16.msra.mxu3 %v3437_v25  ;;  %v3427_v38 = vld [vmem:[%s5378_s2] sm:$0xff] }
 0x373   : > { %2197 = vmatpush.bf16.msrb.mxu0 %v3444_v29 }
 0x374   : > { %2097 = vmatpush.bf16.msrb.mxu1 %v3430_v45 }
 0x376   : > { %2148 = vmatpush.bf16.msra.mxu3 %v3436_v1 }
 0x377   : > { %2198 = vmatpush.bf16.msrb.mxu0 %v3443_v43 }
 0x378   : > { %2098 = vmatpush.bf16.msrb.mxu1 %v3429_v54 }
 0x379   : > { %1696 = vrot.lane.b32.xlu1 %v4559_v24, %s5361_s27  ;;  %1574 = vrot.lane.b32.xlu0 %v4559_v24, %s5359_s29 }
 0x37a   : > { %1572 = vrot.lane.b32.xlu2 %v4536_v42, %s5359_s29  ;;  %2149 = vmatpush.bf16.msra.mxu3 %v3435_v60 }
 0x37c   : > { %2099 = vmatpush.bf16.msrb.mxu1 %v3428_v9 }
 0x37e   : > { %3586 = vmatpush.bf16.msrb.mxu3 %v3444_v29 }
 0x380   : > { %2100 = vmatpush.bf16.msrb.mxu1 %v3427_v38 }
 0x381   : > { %3690 = vrot.lane.b32.xlu1 %v5375_v23, %s5361_s27  ;;  %1412 = vrot.lane.b32.xlu0 %v4414_v36, %s5358_s22 }
 0x382   : > { %1698 = vrot.lane.b32.xlu2 %v4570_v59, %s5361_s27  ;;  %3587 = vmatpush.bf16.msrb.mxu3 %v3443_v43 }
 0x389   : > { %1700 = vrot.lane.b32.xlu1 %v1539_v61, %s5361_s27  ;;  %1578 = vrot.lane.b32.xlu0 %v1539_v61, %s5359_s29 }
 0x38a   : > { %1576 = vrot.lane.b32.xlu2 %v4570_v59, %s5359_s29 }
 0x391   : > { %3700 = vrot.lane.b32.xlu0 %v5376_v53, %s5361_s27 }
 0x392   : > { %3695 = vrot.lane.b32.xlu2 %v5377_v47, %s5358_s22  ;;  %s3748_s22 = scalar_lea.hbm %s5352_s17, 128 }
 0x3b4   : > { %v1565_v5 = vpop.permute.xlu2 %1564 }
 0x3b5   : > { %v1596_v57 = vrot.slane %v1565_v5, 4 }
 0x3b7   : > { %v1613_v58 = vsel %vm1612_vm14, %v1596_v57, %v1565_v5 }
 0x3b8   : > { %1648 = vst.msk [vmem:[#allocation2] sm:$0xff] %vm4640_vm15, %v1613_v58 }
 0x3b9   : > { %1665 = vst.msk [vmem:[#allocation2] sm:$0xf] %vm1664_vm3, %v3796_v46 }
 0x3bc   : > { %v1691_v23 = vpop.permute.xlu2 %1690 }
 0x3bd   : > { %v1717_v55 = vrot.slane %v1691_v23, 4 }
 0x3bf   : > { %v1732_v63 = vsel %vm642_vm0, %v1717_v55, %v1691_v23 }
 0x3c0   : > { %v3187_v5 = vld [vmem:[#allocation2] sm:$0xf] }
 0x3c4   : > { %v4658_v34 = vpop.permute.xlu2 %3680 }
 0x3cb   : > { %v1689_v22 = vpop.permute.xlu1 %1688  ;;  %v1567_v61 = vpop.permute.xlu0 %1566 }
 0x3cc   : > { %v1716_v47 = vrot.slane %v1689_v22, 4  ;;  %v1597_v7 = vrot.slane %v1567_v61, 4  ;;  %v1693_v51 = vpop.permute.xlu2 %1692 }
 0x3cd   : > { %v1718_v45 = vrot.slane %v1693_v51, 4 }
 0x3ce   : > { %v1731_v2 = vsel %vm642_vm0, %v1716_v47, %v1689_v22  ;;  %v1614_v39 = vsel %vm1612_vm14, %v1597_v7, %v1567_v61 }
 0x3cf   : > { %1759 = vst.msk [vmem:[#allocation2 + $0x4] sm:$0xff] %vm4660_vm6, %v1731_v2 }
 0x3d0   : > { %1649 = vst.msk [vmem:[#allocation2 + $0xc] sm:$0xff] %vm4640_vm15, %v1614_v39 }
 0x3d1   : > { %1668 = vst.msk [vmem:[#allocation2 + $0xc] sm:$0xf] %vm1664_vm3, %v4509_v4  ;;  %v1733_v4 = vsel %vm642_vm0, %v1718_v45, %v1693_v51 }
 0x3d2   : > { %1760 = vst.msk [vmem:[#allocation2 + $0x10] sm:$0xff] %vm4660_vm6, %v1732_v63 }
 0x3d3   : > { %v1569_v28 = vpop.permute.xlu0 %1568  ;;  %v3676_v27 = vpop.permute.xlu1 %3675 }
 0x3d4   : > { %v1598_v49 = vrot.slane %v1569_v28, 4  ;;  %v1573_v54 = vpop.permute.xlu2 %1572  ;;  %v3677_v39 = vunpack.i.l.bf16 %v3676_v27 }
 0x3d5   : > { %v1600_v25 = vrot.slane %v1573_v54, 4 }
 0x3d6   : > { %v1615_v29 = vsel %vm1612_vm14, %v1598_v49, %v1569_v28  ;;  %v3403_v1 = vld [vmem:[#allocation2 + $0x4] sm:$0xf]  ;;  %v3195_v57 = vld [vmem:[#allocation2 + $0x8] sm:$0xf] }
 0x3d7   : > { %1650 = vst.msk [vmem:[#allocation2 + $0x18] sm:$0xff] %vm4640_vm15, %v1615_v29  ;;  %v1617_v9 = vsel %vm1612_vm14, %v1600_v25, %v1573_v54  ;;  %v1508_v29 = vsel %vm829_vm2, %v4486_v62, %v3677_v39  ;;  %v3682_v62 = vunpack.i.l.bf16 %v4658_v34 }
 0x3d8   : > { %1669 = vst.msk [vmem:[#allocation2 + $0x18] sm:$0xf] %vm1664_vm3, %v4507_v44  ;;  %v3404_v58 = vld [vmem:[#allocation2 + $0x8] sm:$0xf0] }
 0x3d9   : > { %1761 = vst.msk [vmem:[#allocation2 + $0x1c] sm:$0xff] %vm4660_vm6, %v1733_v4  ;;  %v3188_v38 = vor.u32 %v3404_v58, %v3187_v5  ;;  %v3189_v60 = vld [vmem:[#allocation2 + $0xc] sm:$0xf0]  ;;  %v3405_v43 = vld [vmem:[#allocation2 + $0x10] sm:$0xf0] }
 0x3da   : > { %1652 = vst.msk [vmem:[#allocation2 + $0x30] sm:$0xff] %vm4640_vm15, %v1617_v9  ;;  %v3192_v23 = vor.u32 %v3403_v1, %v3189_v60  ;;  %v3196_v22 = vor.u32 %v3405_v43, %v3195_v57 }
 0x3db   : > { %1671 = vst.msk [vmem:[#allocation2 + $0x30] sm:$0xf] %vm1664_vm3, %v4538_v50  ;;  %2101 = vmatmul.bf16.vlgmr.msrb.gmra.mxu1 %v3188_v38  ;;  %v1695_v61 = vpop.permute.xlu0 %1694  ;;  %v1571_v47 = vpop.permute.xlu1 %1570  ;;  %v3678_v50 = vunpack.i.h.bf16 %v3676_v27 }
 0x3dc   : > { %2150 = vmatmul.bf16.vlgmr.msra.gmra.mxu3 %v3192_v23  ;;  %3353 = vmatmul.msk.bf16.vlgmr.msrb.gmra.mxu0 %vm829_vm2, %v3196_v22  ;;  %v1719_v44 = vrot.slane %v1695_v61, 4  ;;  %v1699_v7 = vpop.permute.xlu2 %1698  ;;  %v1599_v51 = vrot.slane %v1571_v47, 4 }
 0x3dd   : > { %v1509_v25 = vsel %vm829_vm2, %v4482_v33, %v3678_v50  ;;  %v4709_v33 = vmax.f32 %v4325_v8, 0.0  ;;  %v1721_v50 = vrot.slane %v1699_v7, 4 }
 0x3de   : > { %v1734_v55 = vsel %vm642_vm0, %v1719_v44, %v1695_v61  ;;  %v1616_v2 = vsel %vm1612_vm14, %v1599_v51, %v1571_v47  ;;  %v1510_v51 = vsel %vm829_vm2, %v4490_v37, %v3682_v62 }
 0x3df   : > { %1651 = vst.msk [vmem:[#allocation2 + $0x24] sm:$0xff] %vm4640_vm15, %v1616_v2  ;;  %v3199_v27 = vld [vmem:[#allocation2 + $0x18] sm:$0xf]  ;;  %v1355_v2 = vrot.slane %v4709_v33, 1 }
 0x3e0   : > { %1670 = vst.msk [vmem:[#allocation2 + $0x24] sm:$0xf] %vm1664_vm3, %v4520_v32  ;;  %v3406_v38 = vld [vmem:[#allocation2 + $0x1c] sm:$0xf]  ;;  %v3207_v60 = vld [vmem:[#allocation2 + $0x20] sm:$0xf] }
 0x3e1   : > { %1762 = vst.msk [vmem:[#allocation2 + $0x28] sm:$0xff] %vm4660_vm6, %v1734_v55  ;;  %v1371_v37 = vsel %vm1339_vm10, 0.0, %v1355_v2 }
 0x3e3   : > { %v1473_v63 = vpop.permute.xlu1 %1472  ;;  %v3686_v28 = vpop.permute.xlu0 %3685 }
 0x3e4   : > { %v1577_v45 = vpop.permute.xlu2 %1576  ;;  %v3688_v49 = vunpack.i.h.bf16 %v3686_v28  ;;  %v3687_v54 = vunpack.i.l.bf16 %v3686_v28  ;;  %v1526_v39 = vsel %vm642_vm0, %v1510_v51, %v1473_v63 }
 0x3e5   : > { %v1602_v5 = vrot.slane %v1577_v45, 4 }
 0x3e6   : > { %v1525_v9 = vsel %vm642_vm0, %v1509_v25, %v3688_v49  ;;  %v1524_v32 = vsel %vm642_vm0, %v1508_v29, %v3687_v54  ;;  %v4731_v49 = vpack.c.bf16 %v1526_v39, %v1526_v39  ;;  %v3683_v54 = vunpack.i.h.bf16 %v4658_v34 }
 0x3e7   : > { %v1619_v1 = vsel %vm1612_vm14, %v1602_v5, %v1577_v45  ;;  %v4704_v57 = vpack.c.bf16 %v1525_v9, %v1525_v9  ;;  %v4706_v4 = vpack.c.bf16 %v1524_v32, %v1524_v32  ;;  %v3407_v58 = vld [vmem:[#allocation2 + $0x20] sm:$0xf0]  ;;  %v1736_v25 = vsel %vm642_vm0, %v1721_v50, %v1699_v7 }
 0x3e8   : > { %1654 = vst.msk [vmem:[#allocation2 + $0x48] sm:$0xff] %vm4640_vm15, %v1619_v1  ;;  %v3200_v43 = vor.u32 %v3407_v58, %v3199_v27  ;;  %v3201_v23 = vld [vmem:[#allocation2 + $0x24] sm:$0xf0]  ;;  %v3408_v22 = vld [vmem:[#allocation2 + $0x28] sm:$0xf0]  ;;  %v1319_v34 = vrot.slane %v4414_v36, 7  ;;  %v1511_v7 = vsel %vm829_vm2, %v4475_v41, %v3683_v54 }
 0x3e9   : > { %1673 = vst.msk [vmem:[#allocation2 + $0x48] sm:$0xf] %vm1664_vm3, %v4559_v24  ;;  %1702 = vrot.lane.b32.xlu0 %v4704_v57, %s5361_s27  ;;  %1582 = vrot.lane.b32.xlu2 %v4704_v57, %s5383_s19  ;;  %v3204_v61 = vor.u32 %v3406_v38, %v3201_v23  ;;  %v3208_v8 = vor.u32 %v3408_v22, %v3207_v60  ;;  %v3211_v38 = vld [vmem:[#allocation2 + $0x30] sm:$0xf] }
 0x3ea   : > { %1580 = vrot.lane.b32.xlu1 %v4706_v4, %s5383_s19  ;;  %v1335_v58 = vsel %vm1306_vm11, 0.0, %v1319_v34 }
 0x3eb   : > { %2106 = vmatmul.bf16.gmra.mxu1 %v3200_v43  ;;  %v1697_v47 = vpop.permute.xlu1 %1696  ;;  %v1575_v44 = vpop.permute.xlu0 %1574 }
 0x3ec   : > { %2155 = vmatmul.bf16.gmra.mxu3 %v3204_v61  ;;  %3354 = vmatmul.msk.bf16.gmra.mxu0 %vm829_vm2, %v3208_v8  ;;  %v1720_v24 = vrot.slane %v1697_v47, 4  ;;  %v1601_v55 = vrot.slane %v1575_v44, 4 }
 0x3ee   : > { %v1735_v28 = vsel %vm642_vm0, %v1720_v24, %v1697_v47  ;;  %v1618_v45 = vsel %vm1612_vm14, %v1601_v55, %v1575_v44  ;;  %v3696_v24 = vpop.permute.xlu2 %3695 }
 0x3ef   : > { %1763 = vst.msk [vmem:[#allocation2 + $0x34] sm:$0xff] %vm4660_vm6, %v1735_v28  ;;  %v3698_v39 = vunpack.i.h.bf16 %v3696_v24  ;;  %v3697_v28 = vunpack.i.l.bf16 %v3696_v24 }
 0x3f0   : > { %1653 = vst.msk [vmem:[#allocation2 + $0x3c] sm:$0xff] %vm4640_vm15, %v1618_v45 }
 0x3f1   : > { %1672 = vst.msk [vmem:[#allocation2 + $0x3c] sm:$0xf] %vm1664_vm3, %v4536_v42  ;;  %1482 = vrot.lane.b32.xlu0 %v1371_v37, %s5361_s27  ;;  %1418 = vrot.lane.b32.xlu2 %v4709_v33, %s5384_s21 }
 0x3f2   : > { %1764 = vst.msk [vmem:[#allocation2 + $0x40] sm:$0xff] %vm4660_vm6, %v1736_v25  ;;  %1704 = vrot.lane.b32.xlu1 %v4731_v49, %s5361_s27  ;;  %v1514_v25 = vsel %vm829_vm2, %v4499_v6, %v3698_v39 }
 0x3f3   : > { %v3691_v63 = vpop.permute.xlu1 %3690  ;;  %v1413_v29 = vpop.permute.xlu0 %1412 }
 0x3f4   : > { %v3692_v5 = vunpack.i.l.bf16 %v3691_v63  ;;  %v3693_v1 = vunpack.i.h.bf16 %v3691_v63  ;;  %v1512_v62 = vsel %vm829_vm2, %v1335_v58, %v1413_v29  ;;  %v1513_v63 = vsel %vm829_vm2, %v4495_v52, %v3697_v28 }
 0x3f6   : > { %v1527_v42 = vsel %vm642_vm0, %v1511_v7, %v3692_v5  ;;  %v3409_v32 = vld [vmem:[#allocation2 + $0x34] sm:$0xf]  ;;  %v3219_v27 = vld [vmem:[#allocation2 + $0x38] sm:$0xf]  ;;  %v1528_v47 = vsel %vm642_vm0, %v1512_v62, %v3693_v1 }
 0x3f7   : > { %v4752_v9 = vpack.c.bf16 %v1527_v42, %v1527_v42  ;;  %v4769_v50 = vpack.c.bf16 %v1528_v47, %v1528_v47 }
 0x3f8   : > { %v3410_v60 = vld [vmem:[#allocation2 + $0x38] sm:$0xf0] }
 0x3f9   : > { %1706 = vrot.lane.b32.xlu0 %v4752_v9, %s5361_s27  ;;  %1586 = vrot.lane.b32.xlu2 %v4752_v9, %s5383_s19  ;;  %v3212_v36 = vor.u32 %v3410_v60, %v3211_v38  ;;  %v3213_v41 = vld [vmem:[#allocation2 + $0x3c] sm:$0xf0]  ;;  %v3411_v43 = vld [vmem:[#allocation2 + $0x40] sm:$0xf0] }
 0x3fa   : > { %1584 = vrot.lane.b32.xlu1 %v4731_v49, %s5383_s19  ;;  %v3216_v23 = vor.u32 %v3409_v32, %v3213_v41  ;;  %v3220_v22 = vor.u32 %v3411_v43, %v3219_v27  ;;  %v3223_v32 = vld [vmem:[#allocation2 + $0x48] sm:$0xf] }
 0x3fb   : > { %2111 = vmatmul.bf16.gmra.mxu1 %v3212_v36  ;;  %v1701_v61 = vpop.permute.xlu1 %1700  ;;  %v1579_v8 = vpop.permute.xlu0 %1578 }
 0x3fc   : > { %2160 = vmatmul.bf16.gmra.mxu3 %v3216_v23  ;;  %3355 = vmatmul.msk.bf16.gmra.mxu0 %vm829_vm2, %v3220_v22  ;;  %v1722_v44 = vrot.slane %v1701_v61, 4  ;;  %v1603_v51 = vrot.slane %v1579_v8, 4 }
 0x3fe   : > { %v1737_v55 = vsel %vm642_vm0, %v1722_v44, %v1701_v61  ;;  %v1620_v2 = vsel %vm1612_vm14, %v1603_v51, %v1579_v8 }
 0x3ff   : > { %1765 = vst.msk [vmem:[#allocation2 + $0x4c] sm:$0xff] %vm4660_vm6, %v1737_v55 }
 0x400   : > { %1655 = vst.msk [vmem:[#allocation2 + $0x54] sm:$0xff] %vm4640_vm15, %v1620_v2 }
 0x401   : > { %1674 = vst.msk [vmem:[#allocation2 + $0x54] sm:$0xf] %vm1664_vm3, %v4570_v59  ;;  %1588 = vrot.lane.b32.xlu2 %v4769_v50, %s5383_s19 }
 0x402   : > { %1686 = vst.msk [vmem:[#allocation2 + $0x58] sm:$0xff] %vm4660_vm6, %v3796_v46  ;;  %1708 = vrot.lane.b32.xlu1 %v4769_v50, %s5361_s27 }
 0x403   : > { %v3701_v45 = vpop.permute.xlu0 %3700 }
 0x404   : > { %v3703_v37 = vunpack.i.h.bf16 %v3701_v45  ;;  %v3702_v54 = vunpack.i.l.bf16 %v3701_v45 }
 0x406   : > { %v1529_v59 = vsel %vm642_vm0, %v1513_v63, %v3702_v54  ;;  %v1530_v29 = vsel %vm642_vm0, %v1514_v25, %v3703_v37  ;;  %v3412_v7 = vld [vmem:[#allocation2 + $0x4c] sm:$0xf]  ;;  %v3231_v42 = vld [vmem:[#allocation2 + $0x50] sm:$0xf] }
 0x407   : > { %v4788_v5 = vpack.c.bf16 %v1529_v59, %v1529_v59  ;;  %v4790_v34 = vpack.c.bf16 %v1530_v29, %v1530_v29 }
 0x408   : > { %v3413_v27 = vld [vmem:[#allocation2 + $0x50] sm:$0xf0] }
 0x409   : > { %1590 = vrot.lane.b32.xlu0 %v4788_v5, %s5383_s19  ;;  %1712 = vrot.lane.b32.xlu2 %v4790_v34, %s5361_s27  ;;  %v3224_v6 = vor.u32 %v3413_v27, %v3223_v32  ;;  %v3225_v52 = vld [vmem:[#allocation2 + $0x54] sm:$0xf0]  ;;  %v3414_v1 = vld [vmem:[#allocation2 + $0x58] sm:$0xf0] }
 0x40a   : > { %1710 = vrot.lane.b32.xlu1 %v4788_v5, %s5361_s27  ;;  %v3228_v58 = vor.u32 %v3412_v7, %v3225_v52  ;;  %v3232_v38 = vor.u32 %v3414_v1, %v3231_v42 }
 0x40b   : > { %2116 = vmatmul.bf16.gmra.mxu1 %v3224_v6 }
 0x40c   : > { %2165 = vmatmul.bf16.gmra.mxu3 %v3228_v58  ;;  %3356 = vmatmul.msk.bf16.gmra.mxu0 %vm829_vm2, %v3232_v38 }
 0x411   : > { %1592 = vrot.lane.b32.xlu0 %v4790_v34, %s5383_s19 }
 0x443   : > { %v1583_v60 = vpop.permute.xlu2 %1582 }
 0x444   : > { %v1605_v62 = vrot.slane %v1583_v60, 4 }
 0x446   : > { %v1622_v36 = vsel %vm1612_vm14, %v1605_v62, %v1583_v60 }
 0x447   : > { %1657 = vst.msk [vmem:[#allocation2 + $0x6c] sm:$0xff] %vm4640_vm15, %v1622_v36 }
 0x448   : > { %1675 = vst.msk [vmem:[#allocation2 + $0x6c] sm:$0xf] %vm1664_vm3, %v4706_v4  ;;  %v1322_v4 = vrot.slane %v4709_v33, 7 }
 0x44a   : > { %v1338_v33 = vsel %vm1306_vm11, 0.0, %v1322_v4 }
 0x44b   : > { %v1419_v41 = vpop.permute.xlu2 %1418 }
 0x44c   : > { %v1515_v59 = vsel %vm829_vm2, %v1338_v33, %v1419_v41 }
 0x44f   : > { %v3416_v38 = vld [vmem:[#allocation2 + $0x68] sm:$0xf0] }
 0x453   : > { %v1587_v43 = vpop.permute.xlu2 %1586 }
 0x454   : > { %v1607_v23 = vrot.slane %v1587_v43, 4 }
 0x456   : > { %v1624_v22 = vsel %vm1612_vm14, %v1607_v23, %v1587_v43 }
 0x457   : > { %1659 = vst.msk [vmem:[#allocation2 + $0x84] sm:$0xff] %vm4640_vm15, %v1624_v22 }
 0x458   : > { %1677 = vst.msk [vmem:[#allocation2 + $0x84] sm:$0xf] %vm1664_vm3, %v4731_v49  ;;  %v2102_v61 = vpop.f32.mrf.mxu1 }
 0x459   : > { %v2200_v8 = vpop.f32.mrf.mxu0 }
 0x45b   : > { %v1703_v47 = vpop.permute.xlu0 %1702  ;;  %v1589_v44 = vpop.permute.xlu2 %1588 }
 0x45c   : > { %v1723_v51 = vrot.slane %v1703_v47, 4  ;;  %v1608_v24 = vrot.slane %v1589_v44, 4  ;;  %v1581_v55 = vpop.permute.xlu1 %1580 }
 0x45d   : > { %v1604_v2 = vrot.slane %v1581_v55, 4 }
 0x45e   : > { %v1625_v39 = vsel %vm1612_vm14, %v1608_v24, %v1589_v44  ;;  %v1738_v49 = vsel %vm642_vm0, %v1723_v51, %v1703_v47 }
 0x45f   : > { %1660 = vst.msk [vmem:[#allocation2 + $0x90] sm:$0xff] %vm4640_vm15, %v1625_v39  ;;  %v1621_v28 = vsel %vm1612_vm14, %v1604_v2, %v1581_v55  ;;  %v2151_v45 = vpop.f32.mrf.mxu3 }
 0x460   : > { %1678 = vst.msk [vmem:[#allocation2 + $0x90] sm:$0xf] %vm1664_vm3, %v4752_v9  ;;  %v2152_v37 = vadd.f32 %v2151_v45, %v2102_v61  ;;  %v2104_v54 = vpop.f32.mrf.mxu1 }
 0x461   : > { %1656 = vst.msk [vmem:[#allocation2 + $0x60] sm:$0xff] %vm4640_vm15, %v1621_v28  ;;  %v2202_v25 = vpop.f32.mrf.mxu0 }
 0x462   : > { %1666 = vst.msk [vmem:[#allocation2 + $0x60] sm:$0xf] %vm1664_vm3, %v3796_v46  ;;  %v4825_v63 = vadd.f32 %v2200_v8, %v2152_v37 }
 0x463   : > { %1766 = vst.msk [vmem:[#allocation2 + $0x64] sm:$0xff] %vm4660_vm6, %v1738_v49  ;;  %v1483_v9 = vpop.permute.xlu0 %1482 }
 0x464   : > { %v1531_v29 = vsel %vm642_vm0, %v1515_v59, %v1483_v9  ;;  %v1705_v7 = vpop.permute.xlu1 %1704  ;;  %v2282_v60 = vmul.f32 %v4825_v63, %v4825_v63  ;;  %v2240_v43 = vsel %vm829_vm2, %v4825_v63, 0.0 }
 0x465   : > { %v1547_v42 = vpack.c.bf16 %v1531_v29, %v1531_v29  ;;  %v1724_v32 = vrot.slane %v1705_v7, 4 }
 0x466   : > { %v2298_v51 = vsel %vm829_vm2, %v2282_v60, 0.0  ;;  %v3419_v60 = vld [vmem:[#allocation2 + $0x80] sm:$0xf0] }
 0x467   : > { %v1739_v27 = vsel %vm642_vm0, %v1724_v32, %v1705_v7  ;;  %v2153_v0 = vpop.f32.mrf.mxu3  ;;  %1714 = vrot.lane.b32.xlu2 %v1547_v42, %s5361_s27  ;;  %1594 = vrot.lane.b32.xlu1 %v1547_v42, %s5383_s19  ;;  %s3448_s19 = sshll.u32 %s3910_s14, 6  ;;  %s3030_s14 = sshll.u32 %s544_s0, 4  ;;  %s3031_s14 = int_to_ptr.vmem [resolvable:$true] %s3030_s14 }
 0x468   : > { %1767 = vst.msk [vmem:[#allocation2 + $0x70] sm:$0xff] %vm4660_vm6, %v1739_v27  ;;  %v2154_v6 = vadd.f32 %v2153_v0, %v2104_v54  ;;  %v2107_v52 = vpop.f32.mrf.mxu1  ;;  %s3029_s29 = scalar_lea.hbm %s5352_s17, %s3448_s19 }
 0x469   : > { %v2205_v1 = vpop.f32.mrf.mxu0  ;;  %v3235_v58 = vld [vmem:[#allocation2 + $0x60] sm:$0xf]  ;;  %s3032_s1 = sshll.u32 %s3029_s29, 4  ;;  %s3033_s1 = int_to_ptr.hbm [resolvable:$true] %s3032_s1 }
 0x46a   : > { %v4838_v62 = vadd.f32 %v2202_v25, %v2154_v6  ;;  %v3236_v36 = vor.u32 %v3416_v38, %v3235_v58  ;;  %v3415_v55 = vld [vmem:[#allocation2 + $0x64] sm:$0xf]  ;;  %v3243_v49 = vld [vmem:[#allocation2 + $0x68] sm:$0xf]  ;;  %s3742_s26 = sshra.s32 %s3033_s1, 4  ;;  %s3743_s26 = int_to_ptr.hbm [resolvable:$true] %s3742_s26 }
 0x46b   : > { %v1707_v41 = vpop.permute.xlu0 %1706  ;;  %s3744_s30 = scalar_lea.hbm %s3743_s26, 64  ;;  %p3749_p0 = scmp.lt.s32.totalorder %s3743_s26, %s5352_s17 }
 0x46c   : > { %v2241_v23 = vsel %vm829_vm2, %v4838_v62, 0.0  ;;  %v2283_v22 = vmul.f32 %v4838_v62, %v4838_v62  ;;  %2121 = vmatmul.bf16.gmra.mxu1 %v3236_v36  ;;  %v1725_v61 = vrot.slane %v1707_v41, 4  ;;  %v1585_v8 = vpop.permute.xlu1 %1584  ;;  %v1713_v36 = vpop.permute.xlu2 %1712  ;;  %p3745_p11 = scmp.ne.s32.totalorder %s3743_s26, %s3744_s30  ;;  %p3750_p1 = scmp.lt.s32.totalorder %s3748_s22, %s3744_s30 }
 0x46d   : > { %v2242_v47 = vadd.f32 %v2241_v23, %v2240_v43  ;;  %v1606_v44 = vrot.slane %v1585_v8, 4 }
 0x46e   : > { %v2299_v24 = vsel %vm829_vm2, %v2283_v22, 0.0  ;;  %v1740_v4 = vsel %vm642_vm0, %v1725_v61, %v1707_v41  ;;  %p3746_p12 = pnand %p3745_p11, %p3927_p5  ;;  %p3751_p2 = por %p3750_p1, %p3749_p0 }
 0x46f   : > { %v2300_v2 = vadd.f32 %v2299_v24, %v2298_v51  ;;  %v1623_v39 = vsel %vm1612_vm14, %v1606_v44, %v1585_v8  ;;  %v2156_v28 = vpop.f32.mrf.mxu3  ;;  %v3237_v45 = vld [vmem:[#allocation2 + $0x6c] sm:$0xf0]  ;;  %v3417_v37 = vld [vmem:[#allocation2 + $0x70] sm:$0xf0]  ;;  %v1728_v8 = vrot.slane %v1713_v36, 4 }
 0x470   : > { %1658 = vst.msk [vmem:[#allocation2 + $0x78] sm:$0xff] %vm4640_vm15, %v1623_v39  ;;  %v2157_v54 = vadd.f32 %v2156_v28, %v2107_v52  ;;  %v2109_v25 = vpop.f32.mrf.mxu1  ;;  %v3240_v33 = vor.u32 %v3415_v55, %v3237_v45  ;;  %v3244_v59 = vor.u32 %v3417_v37, %v3243_v49  ;;  %p3747_p13 = pneg %p3746_p12 }
 0x471   : > { %1676 = vst.msk [vmem:[#allocation2 + $0x78] sm:$0xf] %vm1664_vm3, %v4704_v57  ;;  %v2207_v9 = vpop.f32.mrf.mxu0 }
 0x472   : > { %1768 = vst.msk [vmem:[#allocation2 + $0x7c] sm:$0xff] %vm4660_vm6, %v1740_v4  ;;  %v4856_v29 = vadd.f32 %v2205_v1, %v2157_v54  ;;  %2170 = vmatmul.bf16.gmra.mxu3 %v3240_v33  ;;  %3357 = vmatmul.msk.bf16.gmra.mxu0 %vm829_vm2, %v3244_v59  ;;  %v1743_v59 = vsel %vm642_vm0, %v1728_v8, %v1713_v36  ;;  %p3752_p3 = pnand %p3751_p2, %p3747_p13 }
 0x474   : > { %v2243_v7 = vsel %vm829_vm2, %v4856_v29, 0.0  ;;  %v2284_v42 = vmul.f32 %v4856_v29, %v4856_v29  ;;  %v1709_v32 = vpop.permute.xlu1 %1708 }
 0x475   : > { %v2244_v27 = vadd.f32 %v2243_v7, %v2242_v47  ;;  %v1726_v0 = vrot.slane %v1709_v32, 4 }
 0x476   : > { %v2301_v57 = vsel %vm829_vm2, %v2284_v42, 0.0 }
 0x477   : > { %v2302_v6 = vadd.f32 %v2301_v57, %v2300_v2  ;;  %v1741_v52 = vsel %vm642_vm0, %v1726_v0, %v1709_v32  ;;  %v2158_v58 = vpop.f32.mrf.mxu3 }
 0x478   : > { %1769 = vst.msk [vmem:[#allocation2 + $0x88] sm:$0xff] %vm4660_vm6, %v1741_v52  ;;  %v2159_v1 = vadd.f32 %v2158_v58, %v2109_v25  ;;  %v3247_v38 = vld [vmem:[#allocation2 + $0x78] sm:$0xf]  ;;  %v2112_v41 = vpop.f32.mrf.mxu1 }
 0x479   : > { %v3248_v43 = vor.u32 %v3419_v60, %v3247_v38  ;;  %v2210_v22 = vpop.f32.mrf.mxu0  ;;  %v3418_v28 = vld [vmem:[#allocation2 + $0x7c] sm:$0xf]  ;;  %v3255_v45 = vld [vmem:[#allocation2 + $0x80] sm:$0xf] }
 0x47a   : > { %v4867_v23 = vadd.f32 %v2207_v9, %v2159_v1 }
 0x47b   : > { %v1591_v61 = vpop.permute.xlu0 %1590 }
 0x47c   : > { %v2245_v47 = vsel %vm829_vm2, %v4867_v23, 0.0  ;;  %v2285_v44 = vmul.f32 %v4867_v23, %v4867_v23  ;;  %2126 = vmatmul.bf16.gmra.mxu1 %v3248_v43  ;;  %v1609_v51 = vrot.slane %v1591_v61, 4  ;;  %v1711_v24 = vpop.permute.xlu1 %1710 }
 0x47d   : > { %v2246_v55 = vadd.f32 %v2245_v47, %v2244_v27  ;;  %v1727_v2 = vrot.slane %v1711_v24, 4 }
 0x47e   : > { %v2303_v4 = vsel %vm829_vm2, %v2285_v44, 0.0  ;;  %v1626_v39 = vsel %vm1612_vm14, %v1609_v51, %v1591_v61 }
 0x47f   : > { %v2304_v49 = vadd.f32 %v2303_v4, %v2302_v6  ;;  %1661 = vst.msk [vmem:[#allocation2 + $0x9c] sm:$0xff] %vm4640_vm15, %v1626_v39  ;;  %v1742_v37 = vsel %vm642_vm0, %v1727_v2, %v1711_v24  ;;  %v2161_v54 = vpop.f32.mrf.mxu3  ;;  %v3249_v25 = vld [vmem:[#allocation2 + $0x84] sm:$0xf0]  ;;  %v3420_v33 = vld [vmem:[#allocation2 + $0x88] sm:$0xf0] }
 0x480   : > { %1679 = vst.msk [vmem:[#allocation2 + $0x9c] sm:$0xf] %vm1664_vm3, %v4769_v50  ;;  %v2162_v9 = vadd.f32 %v2161_v54, %v2112_v41  ;;  %v3252_v7 = vor.u32 %v3418_v28, %v3249_v25  ;;  %v3256_v42 = vor.u32 %v3420_v33, %v3255_v45  ;;  %v2114_v27 = vpop.f32.mrf.mxu1  ;;  %v3259_v41 = vld [vmem:[#allocation2 + $0x90] sm:$0xf] }
 0x481   : > { %1771 = vst.msk [vmem:[#allocation2 + $0xa0] sm:$0xff] %vm4660_vm6, %v1743_v59  ;;  %v2212_v58 = vpop.f32.mrf.mxu0 }
 0x482   : > { %1770 = vst.msk [vmem:[#allocation2 + $0x94] sm:$0xff] %vm4660_vm6, %v1742_v37  ;;  %v4885_v32 = vadd.f32 %v2210_v22, %v2162_v9  ;;  %2175 = vmatmul.bf16.gmra.mxu3 %v3252_v7  ;;  %3358 = vmatmul.msk.bf16.gmra.mxu0 %vm829_vm2, %v3256_v42 }
 0x483   : > { %v1593_v0 = vpop.permute.xlu0 %1592 }
 0x484   : > { %v2247_v57 = vsel %vm829_vm2, %v4885_v32, 0.0  ;;  %v2286_v50 = vmul.f32 %v4885_v32, %v4885_v32  ;;  %v1610_v6 = vrot.slane %v1593_v0, 4 }
 0x485   : > { %v2248_v52 = vadd.f32 %v2247_v57, %v2246_v55 }
 0x486   : > { %v2305_v1 = vsel %vm829_vm2, %v2286_v50, 0.0  ;;  %v1627_v38 = vsel %vm1612_vm14, %v1610_v6, %v1593_v0 }
 0x487   : > { %v2306_v60 = vadd.f32 %v2305_v1, %v2304_v49  ;;  %1662 = vst.msk [vmem:[#allocation2 + $0xa8] sm:$0xff] %vm4640_vm15, %v1627_v38  ;;  %v2163_v36 = vpop.f32.mrf.mxu3  ;;  %v3422_v43 = vld [vmem:[#allocation2 + $0x98] sm:$0xf0] }
 0x488   : > { %1680 = vst.msk [vmem:[#allocation2 + $0xa8] sm:$0xf] %vm1664_vm3, %v4788_v5  ;;  %v2164_v22 = vadd.f32 %v2163_v36, %v2114_v27  ;;  %v3260_v61 = vor.u32 %v3422_v43, %v3259_v41  ;;  %v3261_v51 = vld [vmem:[#allocation2 + $0x9c] sm:$0xf0]  ;;  %v2117_v55 = vpop.f32.mrf.mxu1  ;;  %v3423_v39 = vld [vmem:[#allocation2 + $0xa0] sm:$0xf0] }
 0x489   : > { %v3421_v2 = vld [vmem:[#allocation2 + $0x94] sm:$0xf]  ;;  %v3267_v4 = vld [vmem:[#allocation2 + $0x98] sm:$0xf]  ;;  %v2215_v45 = vpop.f32.mrf.mxu0 }
 0x48a   : > { %v4898_v8 = vadd.f32 %v2212_v58, %v2164_v22  ;;  %v3264_v54 = vor.u32 %v3421_v2, %v3261_v51  ;;  %v3268_v25 = vor.u32 %v3423_v39, %v3267_v4 }
 0x48c   : > { %v2249_v47 = vsel %vm829_vm2, %v4898_v8, 0.0  ;;  %v2287_v44 = vmul.f32 %v4898_v8, %v4898_v8  ;;  %2131 = vmatmul.bf16.gmra.mxu1 %v3260_v61 }
 0x48d   : > { %v2250_v24 = vadd.f32 %v2249_v47, %v2248_v52 }
 0x48e   : > { %v2307_v28 = vsel %vm829_vm2, %v2287_v44, 0.0 }
 0x48f   : > { %v2308_v5 = vadd.f32 %v2307_v28, %v2306_v60  ;;  %v2166_v49 = vpop.f32.mrf.mxu3 }
 0x490   : > { %v2167_v37 = vadd.f32 %v2166_v49, %v2117_v55  ;;  %v2119_v0 = vpop.f32.mrf.mxu1 }
 0x491   : > { %v2217_v6 = vpop.f32.mrf.mxu0 }
 0x492   : > { %v4905_v33 = vadd.f32 %v2215_v45, %v2167_v37  ;;  %2180 = vmatmul.bf16.gmra.mxu3 %v3264_v54  ;;  %3359 = vmatmul.msk.bf16.gmra.mxu0 %vm829_vm2, %v3268_v25 }
 0x494   : > { %v2251_v59 = vsel %vm829_vm2, %v4905_v33, 0.0  ;;  %v2288_v9 = vmul.f32 %v4905_v33, %v4905_v33 }
 0x495   : > { %v2252_v7 = vadd.f32 %v2251_v59, %v2250_v24 }
 0x496   : > { %v2309_v42 = vsel %vm829_vm2, %v2288_v9, 0.0 }
 0x497   : > { %v2310_v27 = vadd.f32 %v2309_v42, %v2308_v5  ;;  %v2168_v57 = vpop.f32.mrf.mxu3 }
 0x498   : > { %v2169_v50 = vadd.f32 %v2168_v57, %v2119_v0  ;;  %v4920_v57 = vld [vmem:[%s5342_s7] ss:$0 sm:$0xff] }
 0x49a   : > { %v2218_v52 = vadd.f32 %v2217_v6, %v2169_v50 }
 0x49c   : > { %v2253_v58 = vsel %vm829_vm2, %v2218_v52, 0.0  ;;  %v2289_v1 = vmul.f32 %v2218_v52, %v2218_v52 }
 0x49d   : > { %v2254_v38 = vadd.f32 %v2253_v58, %v2252_v7 }
 0x49e   : > { %v2311_v60 = vsel %vm829_vm2, %v2289_v1, 0.0 }
 0x49f   : > { %v2255_v36 = vrot.slane %v2254_v38, 4  ;;  %v2312_v41 = vadd.f32 %v2311_v60, %v2310_v27 }
 0x4a1   : > { %v2256_v43 = vadd.f32 %v2255_v36, %v2254_v38  ;;  %v2313_v22 = vrot.slane %v2312_v41, 4  ;;  %v2390_v36 = vpack.c.bf16 %v4825_v63, %v4825_v63  ;;  %v2397_v63 = vpack.c.bf16 %v2218_v52, %v2218_v52 }
 0x4a3   : > { %v2257_v61 = vrot.slane %v2256_v43, 2  ;;  %v2314_v47 = vadd.f32 %v2313_v22, %v2312_v41  ;;  %v2391_v41 = vpack.c.bf16 %v4838_v62, %v4838_v62  ;;  %v2393_v22 = vpack.c.bf16 %v4867_v23, %v4867_v23 }
 0x4a5   : > { %v2258_v44 = vadd.f32 %v2257_v61, %v2256_v43  ;;  %v2315_v51 = vrot.slane %v2314_v47, 2  ;;  %v2392_v43 = vpack.c.bf16 %v4856_v29, %v4856_v29  ;;  %v2418_v62 = vunpack.c.l.bf16 %v2391_v41 }
 0x4a7   : > { %v2259_v24 = vrot.slane %v2258_v44, 1  ;;  %v2316_v55 = vadd.f32 %v2315_v51, %v2314_v47  ;;  %v2394_v47 = vpack.c.bf16 %v4885_v32, %v4885_v32  ;;  %v2396_v51 = vpack.c.bf16 %v4905_v33, %v4905_v33 }
 0x4a9   : > { %v2260_v2 = vadd.f32 %v2259_v24, %v2258_v44  ;;  %v2317_v4 = vrot.slane %v2316_v55, 1  ;;  %v2395_v44 = vpack.c.bf16 %v4898_v8, %v4898_v8  ;;  %v2423_v23 = vunpack.c.l.bf16 %v2396_v51 }
 0x4ab   : > { %v2318_v39 = vadd.f32 %v2317_v4, %v2316_v55  ;;  %v2340_v28 = vmul.f32 %v2260_v2, %v4231_v3  ;;  %v2417_v55 = vunpack.c.l.bf16 %v2390_v36  ;;  %v2419_v2 = vunpack.c.l.bf16 %v2392_v43 }
 0x4ac   : > { %v2420_v4 = vunpack.c.l.bf16 %v2393_v22 }
 0x4ad   : > { %v2342_v5 = vmul.f32 %v2318_v39, %v4231_v3  ;;  %v2344_v45 = vmul.f32 %v2340_v28, %v2340_v28  ;;  %v2421_v39 = vunpack.c.l.bf16 %v2394_v47 }
 0x4af   : > { %v2346_v49 = vsub.f32 %v2342_v5, %v2344_v45  ;;  %v2424_v5 = vunpack.c.l.bf16 %v2397_v63 }
 0x4b1   : > { %v2348_v37 = vmax.f32 %v2346_v49, 0.0 }
 0x4b3   : > { %v2350_v54 = vadd.f32 1e-05, %v2348_v37 }
 0x4b5   : > { %3718 = vrsqrt.f32 %v2350_v54  ;;  %vm2358_vm8 = vweird.f32 %v2350_v54 }
 0x4bb   : > { %v3719_v25 = vpop.eup %3718 }
 0x4bc   : > { %v2353_v59 = vmul.f32 %v3719_v25, %v2350_v54  ;;  %vm2359_vm7 = vweird.f32 %v3719_v25 }
 0x4bd   : > { %vm2360_vm9 = vmor %vm2358_vm8, %vm2359_vm7 }
 0x4be   : > { %v2354_v9 = vmul.f32 %v3719_v25, %v2353_v59 }
 0x4c0   : > { %v2355_v7 = vmul.f32 0.5, %v2354_v9 }
 0x4c1   : > { %v1715_v42 = vpop.permute.xlu2 %1714 }
 0x4c2   : > { %v2356_v27 = vsub.f32 1.5, %v2355_v7  ;;  %v1729_v0 = vrot.slane %v1715_v42, 4  ;;  %v3271_v7 = vld [vmem:[#allocation2 + $0xa8] sm:$0xf] }
 0x4c4   : > { %v2357_v50 = vmul.f32 %v3719_v25, %v2356_v27  ;;  %v1744_v6 = vsel %vm642_vm0, %v1729_v0, %v1715_v42 }
 0x4c5   : > { %1772 = vst.msk [vmem:[#allocation2 + $0xac] sm:$0xff] %vm4660_vm6, %v1744_v6 }
 0x4c6   : > { %v2361_v58 = vsel %vm2360_vm9, %v3719_v25, %v2357_v50 }
 0x4c7   : > { %v2376_v1 = vmul.f32 %v4920_v57, %v2361_v58 }
 0x4c9   : > { %v4926_v38 = vmul.f32 %v2376_v1, %v2340_v28  ;;  %v2406_v60 = vpack.c.bf16 %v2376_v1, %v2376_v1  ;;  %v2422_v28 = vunpack.c.l.bf16 %v2395_v44 }
 0x4cb   : > { %v2410_v61 = vpack.i.b16 %v2406_v60, %v2406_v60 }
 0x4cc   : > { %v3424_v0 = vld [vmem:[#allocation2 + $0xac] sm:$0xf]  ;;  %v3279_v1 = vld [vmem:[#allocation2 + $0xb0] sm:$0xf] }
 0x4cd   : > { %v2412_v24 = vperm.slane %v2410_v61, 0 }
 0x4cf   : > { %v2433_v29 = vunpack.c.l.bf16 %v2412_v24 }
 0x4d1   : > { %v4942_v45 = vmul.f32 %v2433_v29, %v2417_v55  ;;  %v4944_v32 = vmul.f32 %v2433_v29, %v2418_v62  ;;  %v4946_v49 = vmul.f32 %v2433_v29, %v2419_v2  ;;  %v4948_v8 = vmul.f32 %v2433_v29, %v2420_v4 }
 0x4d2   : > { %v4950_v33 = vmul.f32 %v2433_v29, %v2421_v39  ;;  %v4952_v52 = vmul.f32 %v2433_v29, %v2422_v28  ;;  %v4954_v37 = vmul.f32 %v2433_v29, %v2423_v23  ;;  %v4956_v54 = vmul.f32 %v2433_v29, %v2424_v5 }
 0x4d9   : > { %v1595_v25 = vpop.permute.xlu1 %1594 }
 0x4da   : > { %v1611_v59 = vrot.slane %v1595_v25, 4 }
 0x4dc   : > { %v1628_v9 = vsel %vm1612_vm14, %v1611_v59, %v1595_v25 }
 0x4dd   : > { %1663 = vst.msk [vmem:[#allocation2 + $0xb4] sm:$0xff] %vm4640_vm15, %v1628_v9 }
 0x4de   : > { %1681 = vst.msk [vmem:[#allocation2 + $0xb4] sm:$0xf] %vm1664_vm3, %v4790_v34 }
 0x4df   : > { %1687 = vst.msk [vmem:[#allocation2 + $0xb8] sm:$0xff] %vm4660_vm6, %v3796_v46  ;;  %v3446_v46 = vld [vmem:[%s5338_s3 + $0x8] sm:$0xff] }
 0x4e0   : > { %2624 = vmatpush.bf16.msrb.mxu2 %v3446_v46 }
 0x4e5   : > { %v3425_v42 = vld [vmem:[#allocation2 + $0xb0] sm:$0xf0] }
 0x4e6   : > { %v3272_v27 = vor.u32 %v3425_v42, %v3271_v7  ;;  %v3273_v50 = vld [vmem:[#allocation2 + $0xb4] sm:$0xf0]  ;;  %v3426_v58 = vld [vmem:[#allocation2 + $0xb8] sm:$0xf0] }
 0x4e7   : > { %v3276_v6 = vor.u32 %v3424_v0, %v3273_v50  ;;  %v3280_v60 = vor.u32 %v3426_v58, %v3279_v1 }
 0x4e8   : > { %2136 = vmatmul.bf16.gmra.mxu1 %v3272_v27 }
 0x4e9   : > { %2185 = vmatmul.bf16.gmra.mxu3 %v3276_v6  ;;  %v2122_v34 = vpop.f32.mrf.mxu1 }
 0x4ef   : > { %v2220_v43 = vpop.f32.mrf.mxu0 }
 0x4f1   : > { %v2124_v53 = vpop.f32.mrf.mxu1 }
 0x4f5   : > { %v2171_v35 = vpop.f32.mrf.mxu3 }
 0x4f6   : > { %v2172_v29 = vadd.f32 %v2171_v35, %v2122_v34 }
 0x4f7   : > { %v2222_v61 = vpop.f32.mrf.mxu0 }
 0x4f8   : > { %v4972_v59 = vadd.f32 %v2220_v43, %v2172_v29 }
 0x4f9   : > { %3360 = vmatmul.msk.bf16.vlgmr.msrb.gmra.mxu3 %vm829_vm2, %v3280_v60  ;;  %v2127_v47 = vpop.f32.mrf.mxu1 }
 0x4fa   : > { %v2290_v6 = vmul.f32 %v4972_v59, %v4972_v59 }
 0x4fd   : > { %v2173_v36 = vpop.f32.mrf.mxu3 }
 0x4fe   : > { %v2174_v4 = vadd.f32 %v2173_v36, %v2124_v53  ;;  %v2261_v36 = vsel %vm829_vm2, %v4972_v59, 0.0 }
 0x4ff   : > { %v2225_v51 = vpop.f32.mrf.mxu0 }
 0x500   : > { %v4970_v5 = vadd.f32 %v2222_v61, %v2174_v4  ;;  %v2319_v61 = vsel %vm829_vm2, %v2290_v6, 0.0 }
 0x501   : > { %v2129_v63 = vpop.f32.mrf.mxu1 }
 0x502   : > { %v2291_v27 = vmul.f32 %v4970_v5, %v4970_v5  ;;  %v2262_v1 = vsel %vm829_vm2, %v4970_v5, 0.0 }
 0x504   : > { %v2320_v34 = vsel %vm829_vm2, %v2291_v27, 0.0 }
 0x505   : > { %v2176_v41 = vpop.f32.mrf.mxu3 }
 0x506   : > { %v2177_v23 = vadd.f32 %v2176_v41, %v2127_v47  ;;  %v2263_v47 = vadd.f32 %v2262_v1, %v2261_v36 }
 0x507   : > { %v2227_v55 = vpop.f32.mrf.mxu0 }
 0x508   : > { %v4974_v7 = vadd.f32 %v2225_v51, %v2177_v23 }
 0x509   : > { %v2132_v62 = vpop.f32.mrf.mxu1 }
 0x50a   : > { %v2292_v60 = vmul.f32 %v4974_v7, %v4974_v7  ;;  %v2264_v43 = vsel %vm829_vm2, %v4974_v7, 0.0 }
 0x50b   : > { %v2265_v4 = vadd.f32 %v2264_v43, %v2263_v47 }
 0x50c   : > { %v2322_v51 = vsel %vm829_vm2, %v2292_v60, 0.0 }
 0x50d   : > { %v2178_v22 = vpop.f32.mrf.mxu3 }
 0x50e   : > { %v2179_v25 = vadd.f32 %v2178_v22, %v2129_v63 }
 0x50f   : > { %v2230_v39 = vpop.f32.mrf.mxu0 }
 0x510   : > { %v4978_v0 = vadd.f32 %v2227_v55, %v2179_v25 }
 0x511   : > { %v2134_v28 = vpop.f32.mrf.mxu1 }
 0x512   : > { %v2293_v53 = vmul.f32 %v4978_v0, %v4978_v0  ;;  %v2266_v63 = vsel %vm829_vm2, %v4978_v0, 0.0 }
 0x513   : > { %v2267_v23 = vadd.f32 %v2266_v63, %v2265_v4 }
 0x514   : > { %v2324_v29 = vsel %vm829_vm2, %v2293_v53, 0.0 }
 0x515   : > { %v2181_v44 = vpop.f32.mrf.mxu3 }
 0x516   : > { %v2182_v42 = vadd.f32 %v2181_v44, %v2132_v62  ;;  %v2321_v62 = vadd.f32 %v2320_v34, %v2319_v61 }
 0x517   : > { %v2232_v41 = vpop.f32.mrf.mxu0 }
 0x518   : > { %v4986_v35 = vadd.f32 %v2230_v39, %v2182_v42 }
 0x51d   : > { %v2183_v24 = vpop.f32.mrf.mxu3 }
 0x51e   : > { %v2184_v50 = vadd.f32 %v2183_v24, %v2134_v28  ;;  %v2294_v24 = vmul.f32 %v4986_v35, %v4986_v35  ;;  %v2323_v28 = vadd.f32 %v2322_v51, %v2321_v62 }
 0x520   : > { %v4995_v46 = vadd.f32 %v2232_v41, %v2184_v50  ;;  %v2326_v25 = vsel %vm829_vm2, %v2294_v24, 0.0  ;;  %v2325_v50 = vadd.f32 %v2324_v29, %v2323_v28 }
 0x522   : > { %v2295_v39 = vmul.f32 %v4995_v46, %v4995_v46  ;;  %v2270_v42 = vsel %vm829_vm2, %v4995_v46, 0.0  ;;  %v2327_v34 = vadd.f32 %v2326_v25, %v2325_v50 }
 0x524   : > { %v2328_v1 = vsel %vm829_vm2, %v2295_v39, 0.0 }
 0x525   : > { %v2329_v47 = vadd.f32 %v2328_v1, %v2327_v34 }
 0x565   : > { %v2137_v58 = vpop.f32.mrf.mxu1 }
 0x56c   : > { %v2186_v2 = vpop.f32.mrf.mxu3 }
 0x56d   : > { %v2187_v22 = vadd.f32 %v2186_v2, %v2137_v58  ;;  %v2268_v2 = vsel %vm829_vm2, %v4986_v35, 0.0  ;;  %v2139_v58 = vpop.f32.mrf.mxu1 }
 0x56e   : > { %v2269_v6 = vadd.f32 %v2268_v2, %v2267_v23 }
 0x570   : > { %v2271_v41 = vadd.f32 %v2270_v42, %v2269_v6 }
 0x574   : > { %v2188_v9 = vpop.f32.mrf.mxu3 }
 0x575   : > { %v2189_v60 = vadd.f32 %v2188_v9, %v2139_v58 }
 0x57c   : > { %v2235_v44 = vpop.f32.mrf.mxu3 }
 0x57d   : > { %v5003_v55 = vadd.f32 %v2235_v44, %v2187_v22 }
 0x57f   : > { %v2296_v27 = vmul.f32 %v5003_v55, %v5003_v55  ;;  %v2272_v36 = vsel %vm829_vm2, %v5003_v55, 0.0 }
 0x580   : > { %v2273_v61 = vadd.f32 %v2272_v36, %v2271_v41 }
 0x581   : > { %v2330_v53 = vsel %vm829_vm2, %v2296_v27, 0.0 }
 0x582   : > { %v2331_v63 = vadd.f32 %v2330_v53, %v2329_v47 }
 0x584   : > { %v2237_v43 = vpop.f32.mrf.mxu3 }
 0x585   : > { %v2238_v22 = vadd.f32 %v2237_v43, %v2189_v60 }
 0x587   : > { %v2274_v44 = vsel %vm829_vm2, %v2238_v22, 0.0  ;;  %v2297_v51 = vmul.f32 %v2238_v22, %v2238_v22 }
 0x588   : > { %v2275_v24 = vadd.f32 %v2274_v44, %v2273_v61  ;;  %v3445_v44 = vld [vmem:[%s5338_s3] sm:$0xff] }
 0x589   : > { %v2332_v62 = vsel %vm829_vm2, %v2297_v51, 0.0  ;;  %2625 = vmatpush.bf16.msrb.mxu2 %v3445_v44 }
 0x58a   : > { %v2276_v4 = vrot.slane %v2275_v24, 4  ;;  %v2333_v9 = vadd.f32 %v2332_v62, %v2331_v63 }
 0x58c   : > { %v2277_v29 = vadd.f32 %v2276_v4, %v2275_v24  ;;  %v2334_v2 = vrot.slane %v2333_v9, 4 }
 0x58e   : > { %v2278_v39 = vrot.slane %v2277_v29, 2  ;;  %v2335_v28 = vadd.f32 %v2334_v2, %v2333_v9  ;;  %v2399_v2 = vpack.c.bf16 %v4970_v5, %v4970_v5 }
 0x590   : > { %v2279_v23 = vadd.f32 %v2278_v39, %v2277_v29  ;;  %v2336_v25 = vrot.slane %v2335_v28, 2  ;;  %v2398_v29 = vpack.c.bf16 %v4972_v59, %v4972_v59  ;;  %v2400_v39 = vpack.c.bf16 %v4974_v7, %v4974_v7 }
 0x591   : > { %v2403_v59 = vpack.c.bf16 %v4995_v46, %v4995_v46 }
 0x592   : > { %v2280_v42 = vrot.slane %v2279_v23, 1  ;;  %v2337_v27 = vadd.f32 %v2336_v25, %v2335_v28  ;;  %v2401_v28 = vpack.c.bf16 %v4978_v0, %v4978_v0  ;;  %v2451_v0 = vpack.c.bf16 %v4942_v45, %v4942_v45 }
 0x594   : > { %v2281_v50 = vadd.f32 %v2280_v42, %v2279_v23  ;;  %v2338_v6 = vrot.slane %v2337_v27, 1  ;;  %v3709_v23 = vld [vmem:[%s5343_s8] ss:$0 sm:$0xff]  ;;  %v2405_v42 = vpack.c.bf16 %v2238_v22, %v2238_v22  ;;  %v2430_v22 = vunpack.c.l.bf16 %v2403_v59 }
 0x596   : > { %v2339_v58 = vadd.f32 %v2338_v6, %v2337_v27  ;;  %v2341_v1 = vmul.f32 %v2281_v50, %v4231_v3  ;;  %v2425_v50 = vunpack.c.l.bf16 %v2398_v29  ;;  %v2426_v6 = vunpack.c.l.bf16 %v2399_v2 }
 0x597   : > { %v2455_v29 = vpack.c.bf16 %v4950_v33, %v4950_v33  ;;  %v2488_v2 = vunpack.c.l.bf16 %v2451_v0 }
 0x598   : > { %v2343_v60 = vmul.f32 %v2339_v58, %v4231_v3  ;;  %v2345_v36 = vmul.f32 %v2341_v1, %v2341_v1  ;;  %v2427_v58 = vunpack.c.l.bf16 %v2400_v39  ;;  %v2456_v39 = vpack.c.bf16 %v4952_v52, %v4952_v52 }
 0x59a   : > { %v2347_v34 = vsub.f32 %v2343_v60, %v2345_v36  ;;  %v2428_v60 = vunpack.c.l.bf16 %v2401_v28  ;;  %v2458_v28 = vpack.c.bf16 %v4956_v54, %v4956_v54  ;;  %v2493_v54 = vunpack.c.l.bf16 %v2456_v39 }
 0x59c   : > { %v2349_v41 = vmax.f32 %v2347_v34, 0.0 }
 0x59e   : > { %v2351_v43 = vadd.f32 1e-05, %v2349_v41  ;;  %v2404_v41 = vpack.c.bf16 %v5003_v55, %v5003_v55  ;;  %v2454_v55 = vpack.c.bf16 %v4948_v8, %v4948_v8 }
 0x5a0   : > { %3720 = vrsqrt.f32 %v2351_v43  ;;  %vm2368_vm10 = vweird.f32 %v2351_v43 }
 0x5a6   : > { %v3721_v53 = vpop.eup %3720 }
 0x5a7   : > { %v2363_v61 = vmul.f32 %v3721_v53, %v2351_v43  ;;  %vm2369_vm0 = vweird.f32 %v3721_v53 }
 0x5a8   : > { %vm2370_vm11 = vmor %vm2368_vm10, %vm2369_vm0 }
 0x5a9   : > { %v2364_v47 = vmul.f32 %v3721_v53, %v2363_v61 }
 0x5ab   : > { %v2365_v51 = vmul.f32 0.5, %v2364_v47 }
 0x5ad   : > { %v2366_v63 = vsub.f32 1.5, %v2365_v51 }
 0x5af   : > { %v2367_v24 = vmul.f32 %v3721_v53, %v2366_v63  ;;  %v2452_v63 = vpack.c.bf16 %v4944_v32, %v4944_v32  ;;  %v2457_v32 = vpack.c.bf16 %v4954_v37, %v4954_v37 }
 0x5b1   : > { %v2371_v3 = vsel %vm2370_vm11, %v3721_v53, %v2367_v24 }
 0x5b2   : > { %v2377_v62 = vmul.f32 %v4920_v57, %v2371_v3  ;;  %v2402_v57 = vpack.c.bf16 %v4986_v35, %v4986_v35  ;;  %v2432_v35 = vunpack.c.l.bf16 %v2405_v42  ;;  %v2453_v3 = vpack.c.bf16 %v4946_v49, %v4946_v49 }
 0x5b4   : > { %v2380_v4 = vmul.f32 %v2377_v62, %v2341_v1  ;;  %v2407_v9 = vpack.c.bf16 %v2377_v62, %v2377_v62  ;;  %v2429_v36 = vunpack.c.l.bf16 %v2402_v57  ;;  %v2431_v62 = vunpack.c.l.bf16 %v2404_v41 }
 0x5b5   : > { %v2489_v57 = vunpack.c.l.bf16 %v2452_v63  ;;  %v2490_v42 = vunpack.c.l.bf16 %v2453_v3 }
 0x5b6   : > { %v2386_v25 = vrot.slane %v2380_v4, 7  ;;  %v2414_v27 = vpack.i.b16 %v2407_v9, %v2407_v9 }
 0x5b8   : > { %v2387_v5 = vsel %vm806_vm1, %v2386_v25, %v4926_v38  ;;  %v2416_v7 = vperm.slane %v2414_v27, 0  ;;  %v2491_v27 = vunpack.c.l.bf16 %v2454_v55 }
 0x5b9   : > { %v2389_v1 = vsub.f32 %v3709_v23, %v2387_v5 }
 0x5ba   : > { %v2434_v34 = vunpack.c.l.bf16 %v2416_v7 }
 0x5bb   : > { %v2408_v46 = vpack.c.bf16 %v2389_v1, %v2389_v1 }
 0x5bc   : > { %v2450_v43 = vmul.f32 %v2434_v34, %v2432_v35  ;;  %v2443_v38 = vmul.f32 %v2434_v34, %v2425_v50  ;;  %v2444_v53 = vmul.f32 %v2434_v34, %v2426_v6  ;;  %v2445_v61 = vmul.f32 %v2434_v34, %v2427_v58 }
 0x5bd   : > { %v2468_v47 = vrot.slane %v2408_v46, 3  ;;  %v2446_v45 = vmul.f32 %v2434_v34, %v2428_v60  ;;  %v2447_v44 = vmul.f32 %v2434_v34, %v2429_v36  ;;  %v2448_v51 = vmul.f32 %v2434_v34, %v2430_v22 }
 0x5be   : > { %v2449_v8 = vmul.f32 %v2434_v34, %v2431_v62  ;;  %v2466_v25 = vpack.c.bf16 %v2450_v43, %v2450_v43  ;;  %v2459_v59 = vpack.c.bf16 %v2443_v38, %v2443_v38  ;;  %v2460_v7 = vpack.c.bf16 %v2444_v53, %v2444_v53 }
 0x5bf   : > { %v2472_v24 = vsel %vm2469_vm12, %v2408_v46, %v2468_v47  ;;  %v2461_v0 = vpack.c.bf16 %v2445_v61, %v2445_v61  ;;  %v2462_v50 = vpack.c.bf16 %v2446_v45, %v2446_v45  ;;  %v2463_v52 = vpack.c.bf16 %v2447_v44, %v2447_v44 }
 0x5c0   : > { %v2475_v4 = vunpack.i.h.s16 %v2472_v24  ;;  %v3361_v9 = vpack.i.b16 %v2472_v24, %v2472_v24  ;;  %v2464_v6 = vpack.c.bf16 %v2448_v51, %v2448_v51  ;;  %v2465_v58 = vpack.c.bf16 %v2449_v8, %v2449_v8 }
 0x5c1   : > { %v2492_v60 = vunpack.c.l.bf16 %v2455_v29  ;;  %v2503_v36 = vunpack.c.l.bf16 %v2466_v25  ;;  %v2494_v35 = vunpack.c.l.bf16 %v2457_v32  ;;  %v2495_v22 = vunpack.c.l.bf16 %v2458_v28 }
 0x5c2   : > { %v2477_v49 = vpack.i.b16 %v2475_v4, %v2475_v4  ;;  %v2478_v23 = vperm.slane %v3361_v9, 0  ;;  %v2496_v34 = vunpack.c.l.bf16 %v2459_v59  ;;  %v2497_v43 = vunpack.c.l.bf16 %v2460_v7 }
 0x5c3   : > { %v2498_v38 = vunpack.c.l.bf16 %v2461_v0  ;;  %v2499_v47 = vunpack.c.l.bf16 %v2462_v50  ;;  %v2500_v63 = vunpack.c.l.bf16 %v2463_v52  ;;  %v2501_v53 = vunpack.c.l.bf16 %v2464_v6 }
 0x5c4   : > { %v2479_v5 = vperm.slane %v2477_v49, 0  ;;  %v2481_v33 = vpack.i.b16 %v2478_v23, %v2478_v23  ;;  %v2502_v61 = vunpack.c.l.bf16 %v2465_v58 }
 0x5c6   : > { %v2483_v37 = vperm.slane %v2481_v33, 0  ;;  %v2485_v1 = vpack.i.b16 %v2479_v5, %v2479_v5 }
 0x5c8   : > { %v2487_v41 = vperm.slane %v2485_v1, 0  ;;  %v2504_v46 = vunpack.c.l.bf16 %v2483_v37 }
 0x5ca   : > { %v2505_v45 = vunpack.c.l.bf16 %v2487_v41  ;;  %v2506_v44 = vadd.f32 %v2504_v46, %v2488_v2  ;;  %v2507_v51 = vadd.f32 %v2504_v46, %v2489_v57  ;;  %v2508_v24 = vadd.f32 %v2504_v46, %v2490_v42 }
 0x5cb   : > { %v2509_v3 = vadd.f32 %v2504_v46, %v2491_v27  ;;  %v2510_v55 = vadd.f32 %v2504_v46, %v2492_v60  ;;  %v2511_v62 = vadd.f32 %v2504_v46, %v2493_v54  ;;  %v2512_v4 = vadd.f32 %v2504_v46, %v2494_v35 }
 0x5cc   : > { %v2554_v9 = vmax.f32 %v2506_v44, 0.0  ;;  %v2555_v29 = vmax.f32 %v2507_v51, 0.0  ;;  %v2556_v39 = vmax.f32 %v2508_v24, 0.0  ;;  %v2513_v32 = vadd.f32 %v2504_v46, %v2495_v22  ;;  %v2746_v44 = vld [vmem:[%s5350_s15 + $0x58] sm:$0xff]  ;;  %v2745_v24 = vld [vmem:[%s5350_s15 + $0x50] sm:$0xff] }
 0x5cd   : > { %v2557_v28 = vmax.f32 %v2509_v3, 0.0  ;;  %v2558_v49 = vmax.f32 %v2510_v55, 0.0  ;;  %v2559_v23 = vmax.f32 %v2511_v62, 0.0  ;;  %v2560_v8 = vmax.f32 %v2512_v4, 0.0  ;;  %v2744_v62 = vld [vmem:[%s5350_s15 + $0x48] sm:$0xff]  ;;  %v2743_v4 = vld [vmem:[%s5350_s15 + $0x40] sm:$0xff] }
 0x5ce   : > { %v2570_v25 = vpack.c.bf16 %v2555_v29, %v2554_v9  ;;  %v2561_v59 = vmax.f32 %v2513_v32, 0.0  ;;  %v2514_v5 = vadd.f32 %v2505_v45, %v2496_v34  ;;  %v2515_v33 = vadd.f32 %v2505_v45, %v2497_v43  ;;  %v2742_v29 = vld [vmem:[%s5350_s15 + $0x38] sm:$0xff]  ;;  %v2741_v32 = vld [vmem:[%s5350_s15 + $0x30] sm:$0xff] }
 0x5cf   : > { %v2571_v7 = vpack.c.bf16 %v2557_v28, %v2556_v39  ;;  %v2572_v2 = vpack.c.bf16 %v2559_v23, %v2558_v49  ;;  %v2516_v57 = vadd.f32 %v2505_v45, %v2498_v38  ;;  %v2517_v42 = vadd.f32 %v2505_v45, %v2499_v47  ;;  %v2749_v47 = vld [vmem:[%s5350_s15 + $0x70] sm:$0xff]  ;;  %v2740_v49 = vld [vmem:[%s5350_s15 + $0x28] sm:$0xff] }
 0x5d0   : > { %3370 = vmatmul.msk.bf16.vlgmr.msrb.gmra.mxu2 %vm829_vm2, %v2570_v25  ;;  %v2573_v27 = vpack.c.bf16 %v2561_v59, %v2560_v8  ;;  %v2562_v0 = vmax.f32 %v2514_v5, 0.0  ;;  %v2563_v50 = vmax.f32 %v2515_v33, 0.0  ;;  %v2518_v52 = vadd.f32 %v2505_v45, %v2500_v63  ;;  %v2748_v63 = vld [vmem:[%s5350_s15 + $0x68] sm:$0xff]  ;;  %v2739_v8 = vld [vmem:[%s5350_s15 + $0x20] sm:$0xff]  ;;  %v2738_v59 = vld [vmem:[%s5350_s15 + $0x18] sm:$0xff] }
 0x5d1   : > { %v2564_v6 = vmax.f32 %v2516_v57, 0.0  ;;  %v2565_v58 = vmax.f32 %v2517_v42, 0.0  ;;  %v2519_v37 = vadd.f32 %v2505_v45, %v2501_v53  ;;  %v2520_v1 = vadd.f32 %v2505_v45, %v2502_v61  ;;  %v2747_v61 = vld [vmem:[%s5350_s15 + $0x60] sm:$0xff]  ;;  %v2737_v5 = vld [vmem:[%s5350_s15 + $0x10] sm:$0xff]  ;;  %v2736_v33 = vld [vmem:[%s5350_s15 + $0x8] sm:$0xff] }
 0x5d2   : > { %v2574_v60 = vpack.c.bf16 %v2563_v50, %v2562_v0  ;;  %v2566_v54 = vmax.f32 %v2518_v52, 0.0  ;;  %v2521_v35 = vadd.f32 %v2505_v45, %v2503_v36  ;;  %v2750_v36 = vld [vmem:[%s5350_s15 + $0x78] sm:$0xff] }
 0x5d3   : > { %v2575_v22 = vpack.c.bf16 %v2565_v58, %v2564_v6  ;;  %v2567_v34 = vmax.f32 %v2519_v37, 0.0  ;;  %v2568_v41 = vmax.f32 %v2520_v1, 0.0  ;;  %2759 = vmatpush.msra.mxu1 %v2750_v36 }
 0x5d4   : > { %v2569_v46 = vmax.f32 %v2521_v35, 0.0 }
 0x5d5   : > { %v2576_v43 = vpack.c.bf16 %v2567_v34, %v2566_v54  ;;  %2760 = vmatpush.msra.mxu1 %v2749_v47 }
 0x5d6   : > { %v2577_v38 = vpack.c.bf16 %v2569_v46, %v2568_v41 }
 0x5d7   : > { %2761 = vmatpush.msra.mxu1 %v2748_v63 }
 0x5d9   : > { %2762 = vmatpush.msra.mxu1 %v2747_v61 }
 0x5db   : > { %2763 = vmatpush.msra.mxu1 %v2746_v44 }
 0x5dd   : > { %2764 = vmatpush.msra.mxu1 %v2745_v24 }
 0x5df   : > { %2765 = vmatpush.msra.mxu1 %v2744_v62 }
 0x5e0   : > { %3371 = vmatmul.msk.bf16.gmra.mxu2 %vm829_vm2, %v2571_v7 }
 0x5e1   : > { %2766 = vmatpush.msra.mxu1 %v2743_v4 }
 0x5e3   : > { %2767 = vmatpush.msra.mxu1 %v2742_v29 }
 0x5e5   : > { %2768 = vmatpush.msra.mxu1 %v2741_v32 }
 0x5e7   : > { %2769 = vmatpush.msra.mxu1 %v2740_v49 }
 0x5e9   : > { %2770 = vmatpush.msra.mxu1 %v2739_v8 }
 0x5eb   : > { %2771 = vmatpush.msra.mxu1 %v2738_v59 }
 0x5ed   : > { %2772 = vmatpush.msra.mxu1 %v2737_v5 }
 0x5ef   : > { %2773 = vmatpush.msra.mxu1 %v2736_v33 }
 0x5f0   : > { %3372 = vmatmul.msk.bf16.gmra.mxu2 %vm829_vm2, %v2572_v2  ;;  %v2735_v2 = vld [vmem:[%s5350_s15] sm:$0xff] }
 0x5f1   : > { %2774 = vmatpush.msra.mxu1 %v2735_v2 }
 0x5f3   : > { %2806 = vmatpush.msrb.mxu1 %v2750_v36 }
 0x5f5   : > { %2807 = vmatpush.msrb.mxu1 %v2749_v47 }
 0x5f7   : > { %2808 = vmatpush.msrb.mxu1 %v2748_v63 }
 0x5f9   : > { %2809 = vmatpush.msrb.mxu1 %v2747_v61 }
 0x5fb   : > { %2810 = vmatpush.msrb.mxu1 %v2746_v44 }
 0x5fd   : > { %2811 = vmatpush.msrb.mxu1 %v2745_v24 }
 0x5ff   : > { %2812 = vmatpush.msrb.mxu1 %v2744_v62 }
 0x600   : > { %3373 = vmatmul.msk.bf16.gmra.mxu2 %vm829_vm2, %v2573_v27 }
 0x601   : > { %2813 = vmatpush.msrb.mxu1 %v2743_v4 }
 0x603   : > { %2814 = vmatpush.msrb.mxu1 %v2742_v29 }
 0x605   : > { %2815 = vmatpush.msrb.mxu1 %v2741_v32 }
 0x607   : > { %2816 = vmatpush.msrb.mxu1 %v2740_v49 }
 0x609   : > { %2817 = vmatpush.msrb.mxu1 %v2739_v8 }
 0x60b   : > { %2818 = vmatpush.msrb.mxu1 %v2738_v59  ;;  %v2754_v59 = vld [vmem:[%s5351_s16 + $0x18] sm:$0xff] }
 0x60c   : > { %2794 = vmatpush.msra.mxu3 %v2754_v59 }
 0x60d   : > { %2819 = vmatpush.msrb.mxu1 %v2737_v5 }
 0x60f   : > { %2820 = vmatpush.msrb.mxu1 %v2736_v33 }
 0x610   : > { %3374 = vmatmul.msk.bf16.gmra.mxu2 %vm829_vm2, %v2574_v60 }
 0x611   : > { %2821 = vmatpush.msrb.mxu1 %v2735_v2 }
 0x620   : > { %3375 = vmatmul.msk.bf16.gmra.mxu2 %vm829_vm2, %v2575_v22 }
 0x630   : > { %3376 = vmatmul.msk.bf16.gmra.mxu2 %vm829_vm2, %v2576_v43 }
 0x640   : > { %3377 = vmatmul.msk.bf16.gmra.mxu2 %vm829_vm2, %v2577_v38 }
 0x653   : > { %v5079_v53 = vpop.f32.mrf.mxu2 }
 0x654   : > { %v2693_v6 = vmul.f32 %v5079_v53, %v5079_v53 }
 0x65b   : > { %v5084_v45 = vpop.f32.mrf.mxu2 }
 0x65c   : > { %v2667_v27 = vadd.f32 %v5084_v45, %v5079_v53  ;;  %v2694_v50 = vmul.f32 %v5084_v45, %v5084_v45 }
 0x65e   : > { %v2709_v1 = vadd.f32 %v2694_v50, %v2693_v6 }
 0x663   : > { %v5089_v51 = vpop.f32.mrf.mxu2 }
 0x664   : > { %v2668_v0 = vadd.f32 %v2667_v27, %v5089_v51  ;;  %v2695_v58 = vmul.f32 %v5089_v51, %v5089_v51  ;;  %v2753_v27 = vld [vmem:[%s5351_s16 + $0x10] sm:$0xff] }
 0x665   : > { %2795 = vmatpush.msra.mxu3 %v2753_v27 }
 0x666   : > { %v2710_v22 = vadd.f32 %v2709_v1, %v2695_v58  ;;  %v2752_v58 = vld [vmem:[%s5351_s16 + $0x8] sm:$0xff] }
 0x667   : > { %2796 = vmatpush.msra.mxu3 %v2752_v58 }
 0x66b   : > { %v5094_v3 = vpop.f32.mrf.mxu2 }
 0x66c   : > { %v2669_v52 = vadd.f32 %v2668_v0, %v5094_v3  ;;  %v2696_v60 = vmul.f32 %v5094_v3, %v5094_v3 }
 0x66e   : > { %v2711_v43 = vadd.f32 %v2710_v22, %v2696_v60  ;;  %v2751_v22 = vld [vmem:[%s5351_s16] sm:$0xff] }
 0x66f   : > { %2797 = vmatpush.msra.mxu3 %v2751_v22 }
 0x671   : > { %2841 = vmatpush.msrb.mxu3 %v2754_v59 }
 0x673   : > { %v5096_v55 = vpop.f32.mrf.mxu2  ;;  %2842 = vmatpush.msrb.mxu3 %v2753_v27 }
 0x674   : > { %v2670_v37 = vadd.f32 %v2669_v52, %v5096_v55  ;;  %v2697_v34 = vmul.f32 %v5096_v55, %v5096_v55 }
 0x675   : > { %2843 = vmatpush.msrb.mxu3 %v2752_v58 }
 0x676   : > { %v2712_v44 = vadd.f32 %v2711_v43, %v2697_v34 }
 0x677   : > { %2844 = vmatpush.msrb.mxu3 %v2751_v22 }
 0x67b   : > { %v5104_v9 = vpop.f32.mrf.mxu2 }
 0x67c   : > { %v2671_v35 = vadd.f32 %v2670_v37, %v5104_v9  ;;  %v2698_v38 = vmul.f32 %v5104_v9, %v5104_v9 }
 0x67e   : > { %v2713_v32 = vadd.f32 %v2712_v44, %v2698_v38 }
 0x683   : > { %v5109_v39 = vpop.f32.mrf.mxu2 }
 0x684   : > { %v2672_v41 = vadd.f32 %v2671_v35, %v5109_v39  ;;  %v2699_v24 = vmul.f32 %v5109_v39, %v5109_v39 }
 0x686   : > { %v2714_v6 = vadd.f32 %v2713_v32, %v2699_v24 }
 0x68b   : > { %v5114_v28 = vpop.f32.mrf.mxu2 }
 0x68c   : > { %v2673_v36 = vadd.f32 %v2672_v41, %v5114_v28  ;;  %v2700_v49 = vmul.f32 %v5114_v28, %v5114_v28 }
 0x68e   : > { %v2674_v0 = vrot.slane %v2673_v36, 4  ;;  %v2715_v35 = vadd.f32 %v2714_v6, %v2700_v49 }
 0x690   : > { %v2675_v33 = vadd.f32 %v2674_v0, %v2673_v36 }
 0x693   : > { %v5119_v23 = vpop.f32.mrf.mxu2 }
 0x694   : > { %v2701_v47 = vmul.f32 %v5119_v23, %v5119_v23 }
 0x69b   : > { %v5124_v25 = vpop.f32.mrf.mxu2 }
 0x69c   : > { %v2702_v46 = vmul.f32 %v5124_v25, %v5124_v25  ;;  %v2680_v63 = vadd.f32 %v5124_v25, %v5119_v23 }
 0x69e   : > { %v2722_v62 = vadd.f32 %v2702_v46, %v2701_v47  ;;  %v2716_v47 = vrot.slane %v2715_v35, 4 }
 0x6a3   : > { %v5135_v7 = vpop.f32.mrf.mxu2 }
 0x6a4   : > { %v2703_v61 = vmul.f32 %v5135_v7, %v5135_v7  ;;  %v2681_v4 = vadd.f32 %v2680_v63, %v5135_v7  ;;  %v2676_v63 = vrot.slane %v2675_v33, 2 }
 0x6a6   : > { %v2723_v50 = vadd.f32 %v2722_v62, %v2703_v61 }
 0x6ab   : > { %v5140_v57 = vpop.f32.mrf.mxu2 }
 0x6ac   : > { %v2704_v29 = vmul.f32 %v5140_v57, %v5140_v57  ;;  %v2682_v52 = vadd.f32 %v2681_v4, %v5140_v57  ;;  %v2677_v4 = vadd.f32 %v2676_v63, %v2675_v33 }
 0x6ae   : > { %v2724_v37 = vadd.f32 %v2723_v50, %v2704_v29  ;;  %v2717_v29 = vadd.f32 %v2716_v47, %v2715_v35  ;;  %v3797_v47 = vmov 256.0  }
 0x6af   : > { %3722 = vrcp.f32 %v3797_v47 }
 0x6b0   : > { %v2718_v59 = vrot.slane %v2717_v29, 2 }
 0x6b3   : > { %v5142_v42 = vpop.f32.mrf.mxu2 }
 0x6b4   : > { %v2705_v5 = vmul.f32 %v5142_v42, %v5142_v42  ;;  %v2683_v1 = vadd.f32 %v2682_v52, %v5142_v42  ;;  %v2678_v52 = vrot.slane %v2677_v4, 1 }
 0x6b5   : > { %v3723_v63 = vpop.eup %3722 }
 0x6b6   : > { %v2725_v34 = vadd.f32 %v2724_v37, %v2705_v5  ;;  %vm905_vm13 = vweird.f32 %v3723_v63 }
 0x6bb   : > { %v5157_v54 = vpop.f32.mrf.mxu2 }
 0x6bc   : > { %v2706_v60 = vmul.f32 %v5157_v54, %v5157_v54  ;;  %v2684_v41 = vadd.f32 %v2683_v1, %v5157_v54 }
 0x6be   : > { %v2726_v43 = vadd.f32 %v2725_v34, %v2706_v60  ;;  %v2719_v60 = vadd.f32 %v2718_v59, %v2717_v29 }
 0x6c0   : > { %v2720_v58 = vrot.slane %v2719_v60, 1 }
 0x6c2   : > { %v2721_v33 = vadd.f32 %v2720_v58, %v2719_v60 }
 0x6c3   : > { %v5181_v8 = vpop.f32.mrf.mxu2 }
 0x6c4   : > { %v2707_v46 = vmul.f32 %v5181_v8, %v5181_v8  ;;  %v2685_v38 = vadd.f32 %v2684_v41, %v5181_v8  ;;  %v2679_v41 = vadd.f32 %v2678_v52, %v2677_v4 }
 0x6c6   : > { %v2727_v61 = vadd.f32 %v2726_v43, %v2707_v46 }
 0x6cb   : > { %v5205_v2 = vpop.f32.mrf.mxu2 }
 0x6cc   : > { %v2686_v44 = vadd.f32 %v2685_v38, %v5205_v2  ;;  %v2708_v36 = vmul.f32 %v5205_v2, %v5205_v2 }
 0x6ce   : > { %v2687_v24 = vrot.slane %v2686_v44, 4  ;;  %v2728_v62 = vadd.f32 %v2727_v61, %v2708_v36  ;;  %v901_v61 = vmul.f32 256.0, %v3723_v63 }
 0x6d0   : > { %v2688_v32 = vadd.f32 %v2687_v24, %v2686_v44  ;;  %v2729_v49 = vrot.slane %v2728_v62, 4  ;;  %v902_v44 = vsub.f32 1.0, %v901_v61 }
 0x6d2   : > { %v2689_v0 = vrot.slane %v2688_v32, 2  ;;  %v2730_v50 = vadd.f32 %v2729_v49, %v2728_v62  ;;  %v903_v36 = vmul.f32 %v3723_v63, %v902_v44 }
 0x6d4   : > { %v2690_v5 = vadd.f32 %v2689_v0, %v2688_v32  ;;  %v2731_v6 = vrot.slane %v2730_v50, 2  ;;  %v904_v24 = vadd.f32 %v3723_v63, %v903_v36 }
 0x6d6   : > { %v2691_v37 = vrot.slane %v2690_v5, 1  ;;  %v2732_v1 = vadd.f32 %v2731_v6, %v2730_v50  ;;  %v906_v62 = vsel %vm905_vm13, %v3723_v63, %v904_v24 }
 0x6d7   : > { %v907_v4 = vmul.f32 %v906_v62, %v4157_v10  ;;  %v908_v29 = vmul.f32 %v906_v62, %v4159_v11  ;;  %v3704_v10 = vld [vmem:[%s5346_s11] ss:$0 sm:$0xff] }
 0x6d8   : > { %v2692_v34 = vadd.f32 %v2691_v37, %v2690_v5  ;;  %v2733_v27 = vrot.slane %v2732_v1, 1 }
 0x6d9   : > { %v909_v32 = vmul.f32 %v907_v4, %v907_v4 }
 0x6da   : > { %v2757_v46 = vsel %vm806_vm1, %v2692_v34, %v2679_v41  ;;  %v2734_v35 = vadd.f32 %v2733_v27, %v2732_v1 }
 0x6db   : > { %2775 = vmatmul.f32.vlgmr.msra.gmra.mxu1 %v2757_v46  ;;  %v910_v49 = vsub.f32 %v908_v29, %v909_v32 }
 0x6dc   : > { %v2804_v22 = vsel %vm806_vm1, %v2734_v35, %v2721_v33 }
 0x6dd   : > { %v911_v0 = vmax.f32 %v910_v49, 0.0 }
 0x6df   : > { %v912_v50 = vadd.f32 1e-05, %v911_v0 }
 0x6e1   : > { %3724 = vrsqrt.f32 %v912_v50 }
 0x6e3   : > { %2822 = vmatmul.f32.vlgmr.msrb.gmra.mxu1 %v2804_v22  ;;  %v3705_v22 = vld [vmem:[%s5347_s12] ss:$0 sm:$0xff] }
 0x6e7   : > { %v3725_v52 = vpop.eup %3724 }
 0x6e8   : > { %v914_v59 = vmul.f32 %v3725_v52, %v912_v50  ;;  %vm920_vm1 = vweird.f32 %v3725_v52 }
 0x6ea   : > { %v915_v5 = vmul.f32 %v3725_v52, %v914_v59 }
 0x6ec   : > { %v916_v6 = vmul.f32 0.5, %v915_v5 }
 0x6ee   : > { %v917_v37 = vsub.f32 1.5, %v916_v6 }
 0x6f0   : > { %v918_v60 = vmul.f32 %v3725_v52, %v917_v37 }
 0x758   : > { %v2776_v43 = vpop.f32.mrf.mxu1 }
 0x759   : > { %3378 = vmatmul.msk.f32.vlgmr.msra.gmra.mxu3 %vm829_vm2, %v2776_v43 }
 0x760   : > { %v2823_v38 = vpop.f32.mrf.mxu1 }
 0x761   : > { %3379 = vmatmul.msk.f32.vlgmr.msrb.gmra.mxu3 %vm829_vm2, %v2823_v38  ;;  %vm919_vm2 = vweird.f32 %v912_v50 }
 0x762   : > { %vm921_vm14 = vmor %vm919_vm2, %vm920_vm1 }
 0x763   : > { %v922_v11 = vsel %vm921_vm14, %v3725_v52, %v918_v60 }
 0x764   : > { %v927_v41 = vmul.f32 %v3704_v10, %v922_v11 }
 0x766   : > { %v929_v33 = vmul.f32 %v927_v41, %v907_v4  ;;  %v935_v38 = vrot.slane %v927_v41, 1  ;;  %v936_v61 = vperm.slane %v927_v41, 0 }
 0x768   : > { %v933_v63 = vsub.f32 %v3705_v22, %v929_v33  ;;  %v937_v44 = vperm.slane %v935_v38, 0  ;;  %v940_v24 = vmul.f32 %v936_v61, %v3985_v12  ;;  %v941_v29 = vmul.f32 %v936_v61, %v3987_v13  ;;  %v3710_v22 = vld [vmem:[%s5344_s9] ss:$0 sm:$0xff] }
 0x769   : > { %v943_v4 = vmul.f32 %v936_v61, %v3991_v15  ;;  %v944_v32 = vmul.f32 %v936_v61, %v3993_v16  ;;  %v945_v49 = vmul.f32 %v936_v61, %v3995_v17  ;;  %v946_v52 = vmul.f32 %v936_v61, %v3997_v18 }
 0x76a   : > { %v957_v36 = vrot.slane %v933_v63, 1  ;;  %v958_v0 = vperm.slane %v933_v63, 0  ;;  %v947_v59 = vmul.f32 %v936_v61, %v3999_v19  ;;  %v948_v5 = vmul.f32 %v937_v44, %v4001_v20 }
 0x76b   : > { %v949_v12 = vmul.f32 %v937_v44, %v4003_v21  ;;  %v950_v13 = vmul.f32 %v937_v44, %v4017_v26  ;;  %v952_v16 = vmul.f32 %v937_v44, %v4054_v40  ;;  %v953_v17 = vmul.f32 %v937_v44, %v4078_v56 }
 0x76c   : > { %v959_v6 = vperm.slane %v957_v36, 0  ;;  %v954_v37 = vmul.f32 %v937_v44, %v4108_v30  ;;  %v955_v18 = vmul.f32 %v937_v44, %v4120_v48  ;;  %v962_v19 = vadd.f32 %v958_v0, %v940_v24 }
 0x76d   : > { %v963_v60 = vadd.f32 %v958_v0, %v941_v29  ;;  %v965_v10 = vadd.f32 %v958_v0, %v943_v4  ;;  %v966_v21 = vadd.f32 %v958_v0, %v944_v32  ;;  %v967_v11 = vadd.f32 %v958_v0, %v945_v49  ;;  %v3711_v49 = vld [vmem:[%s5345_s10] ss:$0 sm:$0xff] }
 0x76e   : > { %v968_v26 = vadd.f32 %v958_v0, %v946_v52  ;;  %v975_v56 = vadd.f32 %v959_v6, %v953_v17  ;;  %v976_v30 = vadd.f32 %v959_v6, %v954_v37  ;;  %v977_v48 = vadd.f32 %v959_v6, %v955_v18 }
 0x770   : > { %v5259_v4 = vpack.c.bf16 %v977_v48, %v976_v30 }
 0x7dc   : > { %v2799_v1 = vpop.f32.mrf.mxu3 }
 0x7dd   : > { %v5219_v34 = vmul.f32 %v2799_v1, %v906_v62 }
 0x7df   : > { %v2851_v46 = vmul.f32 %v5219_v34, %v5219_v34 }
 0x7e4   : > { %v2846_v27 = vpop.f32.mrf.mxu3 }
 0x7e5   : > { %v2850_v58 = vmul.f32 %v2846_v27, %v906_v62  ;;  %v942_v62 = vmul.f32 %v936_v61, %v3989_v14  ;;  %v951_v14 = vmul.f32 %v937_v44, %v4031_v31  ;;  %v969_v31 = vadd.f32 %v958_v0, %v947_v59 }
 0x7e6   : > { %v970_v27 = vadd.f32 %v959_v6, %v948_v5  ;;  %v5249_v61 = vpack.c.bf16 %v967_v11, %v966_v21  ;;  %v3519_v21 = vunpack.c.l.bf16 %v5259_v4  ;;  %v3520_v11 = vunpack.c.h.bf16 %v5259_v4 }
 0x7e7   : > { %v2852_v35 = vsub.f32 %v2850_v58, %v2851_v46  ;;  %v964_v20 = vadd.f32 %v958_v0, %v942_v62  ;;  %v971_v46 = vadd.f32 %v959_v6, %v949_v12  ;;  %v972_v58 = vadd.f32 %v959_v6, %v950_v13 }
 0x7e8   : > { %v973_v40 = vadd.f32 %v959_v6, %v951_v14  ;;  %v5251_v44 = vpack.c.bf16 %v969_v31, %v968_v26  ;;  %v3500_v5 = vunpack.c.h.bf16 %v5249_v61 }
 0x7e9   : > { %v2853_v43 = vmax.f32 %v2852_v35, 0.0  ;;  %v974_v35 = vadd.f32 %v959_v6, %v952_v16  ;;  %v5247_v38 = vpack.c.bf16 %v965_v10, %v964_v20  ;;  %v5253_v36 = vpack.c.bf16 %v971_v46, %v970_v27 }
 0x7ea   : > { %v5255_v29 = vpack.c.bf16 %v973_v40, %v972_v58  ;;  %v3503_v12 = vunpack.c.l.bf16 %v5251_v44 }
 0x7eb   : > { %v2854_v47 = vadd.f32 1e-05, %v2853_v43  ;;  %v5245_v43 = vpack.c.bf16 %v963_v60, %v962_v19  ;;  %v5257_v62 = vpack.c.bf16 %v975_v56, %v974_v35  ;;  %v3495_v52 = vunpack.c.l.bf16 %v5247_v38 }
 0x7ec   : > { %v3496_v59 = vunpack.c.h.bf16 %v5247_v38  ;;  %v3507_v16 = vunpack.c.l.bf16 %v5253_v36  ;;  %v3508_v17 = vunpack.c.h.bf16 %v5253_v36  ;;  %v3511_v37 = vunpack.c.l.bf16 %v5255_v29 }
 0x7ed   : > { %3726 = vrsqrt.f32 %v2854_v47  ;;  %vm2861_vm3 = vweird.f32 %v2854_v47  ;;  %v3492_v0 = vunpack.c.h.bf16 %v5245_v43  ;;  %v3512_v18 = vunpack.c.h.bf16 %v5255_v29 }
 0x7ee   : > { %v3515_v60 = vunpack.c.l.bf16 %v5257_v62  ;;  %v3516_v20 = vunpack.c.h.bf16 %v5257_v62 }
 0x7f3   : > { %v3727_v50 = vpop.eup %3726 }
 0x7f4   : > { %v2856_v15 = vmul.f32 %v3727_v50, %v2854_v47  ;;  %vm2862_vm15 = vweird.f32 %v3727_v50  ;;  %v3491_v47 = vunpack.c.l.bf16 %v5245_v43 }
 0x7f5   : > { %vm2863_vm4 = vmor %vm2861_vm3, %vm2862_vm15 }
 0x7f6   : > { %v2857_v1 = vmul.f32 %v3727_v50, %v2856_v15  ;;  %v3504_v15 = vunpack.c.h.bf16 %v5251_v44 }
 0x7f8   : > { %v2858_v41 = vmul.f32 0.5, %v2857_v1 }
 0x7fa   : > { %v2859_v33 = vsub.f32 1.5, %v2858_v41 }
 0x7fc   : > { %v2860_v63 = vmul.f32 %v3727_v50, %v2859_v33 }
 0x7fe   : > { %v2864_v24 = vsel %vm2863_vm4, %v3727_v50, %v2860_v63  ;;  %v3499_v50 = vunpack.c.l.bf16 %v5249_v61 }
 0x7ff   : > { %v2869_v32 = vmul.f32 %v3710_v22, %v2864_v24 }
 0x801   : > { %v2871_v13 = vmul.f32 %v2869_v32, %v5219_v34  ;;  %v2877_v14 = vrot.slane %v2869_v32, 1  ;;  %v2878_v6 = vperm.slane %v2869_v32, 0 }
 0x803   : > { %v2875_v1 = vsub.f32 %v3711_v49, %v2871_v13  ;;  %v2879_v19 = vperm.slane %v2877_v14, 0  ;;  %v2882_v34 = vmul.f32 %v2878_v6, %v5079_v53  ;;  %v2883_v10 = vmul.f32 %v2878_v6, %v5084_v45 }
 0x804   : > { %v2884_v26 = vmul.f32 %v2878_v6, %v5089_v51  ;;  %v2885_v41 = vmul.f32 %v2878_v6, %v5094_v3  ;;  %v2886_v31 = vmul.f32 %v2878_v6, %v5096_v55  ;;  %v2887_v27 = vmul.f32 %v2878_v6, %v5104_v9 }
 0x805   : > { %v2888_v46 = vmul.f32 %v2878_v6, %v5109_v39  ;;  %v2889_v58 = vmul.f32 %v2878_v6, %v5114_v28  ;;  %v2890_v53 = vmul.f32 %v2879_v19, %v5119_v23  ;;  %v2891_v45 = vmul.f32 %v2879_v19, %v5124_v25 }
 0x806   : > { %v2892_v40 = vmul.f32 %v2879_v19, %v5135_v7  ;;  %v2893_v35 = vmul.f32 %v2879_v19, %v5140_v57  ;;  %v2899_v56 = vrot.slane %v2875_v1, 1  ;;  %v2900_v51 = vperm.slane %v2875_v1, 0 }
 0x807   : > { %v2894_v3 = vmul.f32 %v2879_v19, %v5142_v42  ;;  %v2895_v55 = vmul.f32 %v2879_v19, %v5157_v54  ;;  %v2896_v9 = vmul.f32 %v2879_v19, %v5181_v8  ;;  %v2897_v39 = vmul.f32 %v2879_v19, %v5205_v2 }
 0x808   : > { %v2901_v33 = vperm.slane %v2899_v56, 0  ;;  %v2904_v28 = vadd.f32 %v2900_v51, %v2882_v34  ;;  %v2905_v30 = vadd.f32 %v2900_v51, %v2883_v10  ;;  %v2906_v23 = vadd.f32 %v2900_v51, %v2884_v26 }
 0x809   : > { %v2907_v48 = vadd.f32 %v2900_v51, %v2885_v41  ;;  %v2908_v25 = vadd.f32 %v2900_v51, %v2886_v31  ;;  %v2909_v7 = vadd.f32 %v2900_v51, %v2887_v27  ;;  %v2910_v22 = vadd.f32 %v2900_v51, %v2888_v46 }
 0x80a   : > { %v2911_v57 = vadd.f32 %v2900_v51, %v2889_v58  ;;  %v2912_v43 = vadd.f32 %v2901_v33, %v2890_v53  ;;  %v2913_v38 = vadd.f32 %v2901_v33, %v2891_v45  ;;  %v2914_v63 = vadd.f32 %v2901_v33, %v2892_v40 }
 0x80b   : > { %v2915_v42 = vadd.f32 %v2901_v33, %v2893_v35  ;;  %v2916_v61 = vadd.f32 %v2901_v33, %v2894_v3  ;;  %v2917_v54 = vadd.f32 %v2901_v33, %v2895_v55  ;;  %v2918_v44 = vadd.f32 %v2901_v33, %v2896_v9 }
 0x80c   : > { %v2919_v8 = vadd.f32 %v2901_v33, %v2897_v39  ;;  %v2952_v36 = vadd.f32 %v3491_v47, %v2904_v28  ;;  %v2953_v2 = vadd.f32 %v3492_v0, %v2905_v30  ;;  %v2954_v24 = vadd.f32 %v3495_v52, %v2906_v23 }
 0x80d   : > { %v2955_v29 = vadd.f32 %v3496_v59, %v2907_v48  ;;  %v2956_v62 = vadd.f32 %v3499_v50, %v2908_v25  ;;  %v2957_v4 = vadd.f32 %v3500_v5, %v2909_v7  ;;  %v2958_v32 = vadd.f32 %v3503_v12, %v2910_v22 }
 0x80e   : > { %v2959_v49 = vadd.f32 %v3504_v15, %v2911_v57  ;;  %v2960_v13 = vadd.f32 %v3507_v16, %v2912_v43  ;;  %v2961_v14 = vadd.f32 %v3508_v17, %v2913_v38  ;;  %v2962_v6 = vadd.f32 %v3511_v37, %v2914_v63 }
 0x80f   : > { %v2963_v1 = vadd.f32 %v3512_v18, %v2915_v42  ;;  %v2964_v19 = vadd.f32 %v3515_v60, %v2916_v61  ;;  %v2965_v34 = vadd.f32 %v3516_v20, %v2917_v54  ;;  %v2966_v10 = vadd.f32 %v3519_v21, %v2918_v44 }
 0x810   : > { %v2967_v47 = vadd.f32 %v3520_v11, %v2919_v8  ;;  %v2968_v26 = vmax.f32 %v2952_v36, 0.0  ;;  %v2969_v0 = vmax.f32 %v2953_v2, 0.0  ;;  %v2970_v52 = vmax.f32 %v2954_v24, 0.0 }
 0x811   : > { %v2971_v41 = vmax.f32 %v2955_v29, 0.0  ;;  %v2972_v59 = vmax.f32 %v2956_v62, 0.0  ;;  %v2973_v50 = vmax.f32 %v2957_v4, 0.0  ;;  %v2974_v5 = vmax.f32 %v2958_v32, 0.0 }
 0x812   : > { %v2975_v12 = vmax.f32 %v2959_v49, 0.0  ;;  %v2976_v15 = vmax.f32 %v2960_v13, 0.0  ;;  %v2977_v16 = vmax.f32 %v2961_v14, 0.0  ;;  %v2978_v17 = vmax.f32 %v2962_v6, 0.0 }
 0x813   : > { %v2979_v37 = vmax.f32 %v2963_v1, 0.0  ;;  %v2980_v18 = vmax.f32 %v2964_v19, 0.0  ;;  %v2981_v60 = vmax.f32 %v2965_v34, 0.0  ;;  %v3524_v20 = vpack.c.bf16 %v2969_v0, %v2968_v26 }
 0x814   : > { %v3529_v21 = vpack.c.bf16 %v2971_v41, %v2970_v52  ;;  %v3534_v31 = vpack.c.bf16 %v2973_v50, %v2972_v59  ;;  %v2982_v27 = vmax.f32 %v2966_v10, 0.0  ;;  %v2983_v11 = vmax.f32 %v2967_v47, 0.0 }
 0x815   : > { %v3539_v46 = vpack.c.bf16 %v2975_v12, %v2974_v5  ;;  %3525 = vst [vmem:[%s544_s0] sm:$0xff] %v3524_v20   ;;  %v3544_v58 = vpack.c.bf16 %v2977_v16, %v2976_v15  ;;  %v3549_v53 = vpack.c.bf16 %v2979_v37, %v2978_v17  ;;  %v3554_v45 = vpack.c.bf16 %v2981_v60, %v2980_v18 }
 0x816   : > { %3575 = vst [vmem:[%s544_s0 + $0x8] sm:$0xff] %v3529_v21   ;;  %v3559_v40 = vpack.c.bf16 %v2983_v11, %v2982_v27 }
 0x817   : > { %3576 = vst [vmem:[%s544_s0 + $0x10] sm:$0xff] %v3534_v31  }
 0x818   : > { %3577 = vst [vmem:[%s544_s0 + $0x18] sm:$0xff] %v3539_v46  }
 0x819   : > { %3578 = vst [vmem:[%s544_s0 + $0x20] sm:$0xff] %v3544_v58  }
 0x81a   : > { %3579 = vst [vmem:[%s544_s0 + $0x28] sm:$0xff] %v3549_v53  }
 0x81b   : > { %3580 = vst [vmem:[%s544_s0 + $0x30] sm:$0xff] %v3554_v45  }
 0x81c   : > { %3581 = vst [vmem:[%s544_s0 + $0x38] sm:$0xff] %v3559_v40  }
 0x81d   : > { %3755 = shalt.err (!%p3752_p3)
}
 0x81e   : > { %s3798_s28 = smov 4   ;;  %s5385_s0 = smov 64  }
 0x81f   : > { %3588 = dma.vmem_to_hbm [thread:$0]  (%p3927_p5), %s3031_s14, 1024, %s3033_s1, %s3017_s20, %s5385_s0, %s5385_s0, %s3798_s28  }
 0x820 PF: > { %p3594_p4 = scmp.ge.s32.totalorder %s3790_s13, 2  ;;  %s3047_s19 = sand.u32 1, %s3778_s24  }
 0x821   : > { %s3048_s27 = scalar_lea.sflag [#allocation4], %s3047_s19 }
 0x822   : > { %p3591_p7 = pnand %p3594_p4, %p3931_p6 }
 0x824   : > { %p3592_p8 = pneg %p3591_p7 }
 0x826   : > { %3773 = dma.done.wait (%p3592_p8), %s3048_s27, 1024  }
 0x827   : > { %3775 = vsyncadd (%p3592_p8), %s3048_s27, 4294966272  ;;  %s5387_s13 = sld [smem:[#allocation7_spill]]  ;;  %s5390_s24 = smov %s3782_s25 }
 0x828   : > { %s5388_s26 = sld [smem:[#allocation6_spill]] }
 0x829   : > { %s5389_s30 = sld [smem:[#allocation8_spill]] }
 0x82d   : > { %p27_p9 = scmp.ge.s32.totalorder %s5387_s13, 4  }
 0x82e   : > { %s5391_s25 = smov %s5388_s26 }
 0x82f   : > { %s5392_s26 = smov %s5389_s30  ;;  %29 = sbr.rel (!%p27_p9) target bundleno = 7 (0x7), region = 125 }
 0x834   :  { %3054 = vsyncpa [#allocation4], 1 }
 0x835   :  { %3056 = vsyncpa [#allocation4 + $0x1], 1 }

</bundles_post_ra>
